<compile_context>
chip_gen: v5e
topology: v5e:2x2
jax: 0.10.0
libtpu: 0.0.40
codegen_flags: <defaults>
</compile_context>

<pallas_src>
import jax
import jax.numpy as jnp
from jax.experimental import pallas as pl
from jax.experimental.pallas import tpu as pltpu


def _round_up(x, m):
    return (x + m - 1) // m * m


def stem_forward(x_nchw, w_oihw, gamma, beta, running_mean, running_var,
                 eps=1e-5):
    """conv1 -> bn1 -> relu of the ResNet module, via one fused Pallas kernel.

    Returns the activation in NHWC (channel-minor, lane-dense) bf16 layout.
    """
    N, Cin, H, W = x_nchw.shape
    Cout = w_oihw.shape[0]

    HW = H * W                 # output rows per image
    HW2 = (H + 2) * W          # input rows per image (row-halo'd, kw-concat)
    K3 = 3 * Cin               # contraction per kh tap
    K3_pad = _round_up(K3, 128)  # lane-align the contraction axis

    # ---- wrapper-side layout plumbing (XLA ops, not the kernel hot loop) ----
    # Cast to bf16 FIRST so the 3x-expanded im2col intermediate is half-size.
    x = jnp.transpose(x_nchw, (0, 2, 3, 1)).astype(jnp.bfloat16)   # NHWC bf16
    xp = jnp.pad(x, ((0, 0), (1, 1), (1, 1), (0, 0)))              # pad=1 H & W
    # kw-concat only (3x read amplification instead of 9x); kh handled in-kernel.
    x_kw = jnp.concatenate([xp[:, :, kw:kw + W, :] for kw in range(3)],
                           axis=-1)                                # (N,H+2,W,3Cin)
    x_kw = jnp.pad(x_kw, ((0, 0), (0, 0), (0, 0), (0, K3_pad - K3)))
    # Flatten rows: output row (h,w) -> flat h*W+w; its kh tap lives at flat
    # input row (h+kh)*W + w, i.e. a contiguous slice offset by kh*W.
    x_kw = x_kw.reshape(N, HW2, K3_pad)

    # Weights: (Cout,Cin,3,3) -> (kh,kw,cin,cout) -> (3, 3*Cin, Cout), matching
    # the kw-major / channel-minor column order of x_kw.  Fold the BN scale
    # into the weight columns in f32, THEN cast to bf16.
    inv_std = 1.0 / jnp.sqrt(running_var + eps)
    scale = (gamma * inv_std).astype(jnp.float32)                  # (Cout,)
    w3 = jnp.transpose(w_oihw, (2, 3, 1, 0)).reshape(3, K3, Cout)
    w3 = (w3.astype(jnp.float32) * scale[None, None, :])
    w3 = jnp.pad(w3, ((0, 0), (0, K3_pad - K3), (0, 0))).astype(jnp.bfloat16)

    shift = (beta - running_mean * scale).reshape(1, Cout).astype(jnp.float32)

    def conv_bn_relu_kernel(x_ref, w_ref, shift_ref, o_ref):
        """One image per grid step.

        x_ref:     ((H+2)*W, K3_pad)  bf16  row-halo'd, kw-concat activations
        w_ref:     (3, K3_pad, Cout)  bf16  per-kh weights, BN scale folded in
        shift_ref: (1, Cout)          f32   folded BN shift
        o_ref:     (H*W, Cout)        bf16
        """
        # 3 accumulating MXU dots over sublane-aligned row-shifted views
        # (offsets 0, W, 2W are multiples of 8 when W is), f32 accumulation.
        acc = jnp.dot(x_ref[pl.ds(0, HW), :], w_ref[0],
                      preferred_element_type=jnp.float32)
        acc = acc + jnp.dot(x_ref[pl.ds(W, HW), :], w_ref[1],
                            preferred_element_type=jnp.float32)
        acc = acc + jnp.dot(x_ref[pl.ds(2 * W, HW), :], w_ref[2],
                            preferred_element_type=jnp.float32)
        y = acc + shift_ref[...]                      # BatchNorm (eval, folded)
        o_ref[...] = jnp.maximum(y, 0.0).astype(o_ref.dtype)   # ReLU, bf16 out

    out = pl.pallas_call(
        conv_bn_relu_kernel,
        out_shape=jax.ShapeDtypeStruct((N, HW, Cout), jnp.bfloat16),
        grid_spec=pltpu.PrefetchScalarGridSpec(
            num_scalar_prefetch=0,
            grid=(N,),                                # 2 parallel steps -> both v7x TCs
            in_specs=[
                pl.BlockSpec((None, HW2, K3_pad), lambda n: (n, 0, 0)),
                pl.BlockSpec((3, K3_pad, Cout), lambda n: (0, 0, 0)),
                pl.BlockSpec((1, Cout), lambda n: (0, 0)),
            ],
            out_specs=pl.BlockSpec((None, HW, Cout), lambda n: (n, 0, 0)),
        ),
        compiler_params=pltpu.CompilerParams(
            dimension_semantics=("parallel",)),
    )(x_kw, w3, shift)

    # Keep channel-minor (NHWC) layout for downstream consumers; no NCHW
    # transpose round-trip.  (At larger H the grid would also tile rows.)
    return out.reshape(N, H, W, Cout)


def reference_stem_nhwc(x_nchw, w_oihw, gamma, beta, mean, var, eps=1e-5):
    y = jax.lax.conv_general_dilated(
        x_nchw, w_oihw, window_strides=(1, 1), padding="SAME",
        dimension_numbers=("NCHW", "OIHW", "NCHW"))
    inv_std = 1.0 / jnp.sqrt(var + eps)
    y = (y - mean[None, :, None, None]) * (gamma * inv_std)[None, :, None, None]
    y = y + beta[None, :, None, None]
    y = jnp.maximum(y, 0.0)
    return jnp.transpose(y, (0, 2, 3, 1))            # NHWC for comparison


if __name__ == "__main__":
    key = jax.random.PRNGKey(0)
    k_x, k_w = jax.random.split(key)

    # Module-implied shapes (small spatial): conv1 expects 90*2 = 180 input
    # channels and produces self.inplanes = 128 channels.
    N, Cin, H, W = 2, 180, 16, 16
    Cout = 128

    x = jax.random.normal(k_x, (N, Cin, H, W), dtype=jnp.float32)

    # Deterministic parameter init (kaiming-normal-like for conv; BN as in
    # __init__: weight=1, bias=0, default running stats mean=0, var=1).
    fan_out = Cout * 3 * 3
    w_std = jnp.sqrt(2.0 / fan_out)
    w_conv1 = jax.random.normal(k_w, (Cout, Cin, 3, 3), dtype=jnp.float32) * w_std
    bn_gamma = jnp.ones((Cout,), jnp.float32)
    bn_beta = jnp.zeros((Cout,), jnp.float32)
    bn_mean = jnp.zeros((Cout,), jnp.float32)
    bn_var = jnp.ones((Cout,), jnp.float32)

    out = stem_forward(x, w_conv1, bn_gamma, bn_beta, bn_mean, bn_var)
    out = jax.block_until_ready(out)

    ref = jax.block_until_ready(
        reference_stem_nhwc(x, w_conv1, bn_gamma, bn_beta, bn_mean, bn_var))

    assert out.shape == (N, H, W, Cout), out.shape
    # bf16 MXU inputs + bf16 output with f32 accumulation -> loose tolerance.
    err = jnp.max(jnp.abs(out.astype(jnp.float32) - ref))
    assert jnp.allclose(out.astype(jnp.float32), ref, atol=5e-2, rtol=3e-2), (
        float(err))

    print("KERNEL_OK")
</pallas_src>

<mosaic_0001>
module attributes {stable_mosaic.version = 11 : i64} {
  func.func @conv_bn_relu_kernel(%arg0: i32, %arg1: memref<1x288x640xbf16, #tpu.memory_space<vmem>>, %arg2: memref<3x640x128xbf16, #tpu.memory_space<vmem>>, %arg3: memref<1x128xf32, #tpu.memory_space<vmem>>, %arg4: memref<1x256x128xbf16, #tpu.memory_space<vmem>>) attributes {dimension_semantics = [#tpu.dimension_semantics<parallel>], iteration_bounds = array<i64: 2>, scalar_prefetch = 0 : i64, scratch_operands = 0 : i64, tpu.core_type = #tpu.core_type<tc>, window_params = [{transform_indices = @transform_0, window_bounds = array<i64: 1, 288, 640>}, {pipeline_mode = #tpu.pipeline_mode<synchronous>, transform_indices = @transform_1, window_bounds = array<i64: 3, 640, 128>}, {pipeline_mode = #tpu.pipeline_mode<synchronous>, transform_indices = @transform_2, window_bounds = array<i64: 1, 128>}, {transform_indices = @transform_3, window_bounds = array<i64: 1, 256, 128>}]} {
    %c0 = arith.constant 0 : index
    %c0_0 = arith.constant 0 : index
    %c0_1 = arith.constant 0 : index
    %0 = vector.load %arg1[%c0, %c0_0, %c0_1] : memref<1x288x640xbf16, #tpu.memory_space<vmem>>, vector<1x256x640xbf16>
    %1 = vector.shape_cast %0 : vector<1x256x640xbf16> to vector<256x640xbf16>
    %c0_2 = arith.constant 0 : index
    %c0_3 = arith.constant 0 : index
    %c0_4 = arith.constant 0 : index
    %2 = vector.load %arg2[%c0_2, %c0_3, %c0_4] : memref<3x640x128xbf16, #tpu.memory_space<vmem>>, vector<1x640x128xbf16>
    %3 = vector.shape_cast %2 : vector<1x640x128xbf16> to vector<640x128xbf16>
    %cst = arith.constant dense<0.000000e+00> : vector<256x128xf32>
    %4 = tpu.matmul %1, %3, %cst {dimension_numbers = #tpu.dot_dimension_numbers<[1], [0], [0], [1], [0, 0, 1, 1], [], []>} : vector<256x640xbf16>, vector<640x128xbf16>, vector<256x128xf32> -> vector<256x128xf32>
    %c0_5 = arith.constant 0 : index
    %c16 = arith.constant 16 : index
    %c0_6 = arith.constant 0 : index
    %5 = vector.load %arg1[%c0_5, %c16, %c0_6] : memref<1x288x640xbf16, #tpu.memory_space<vmem>>, vector<1x256x640xbf16>
    %6 = vector.shape_cast %5 : vector<1x256x640xbf16> to vector<256x640xbf16>
    %c1 = arith.constant 1 : index
    %c0_7 = arith.constant 0 : index
    %c0_8 = arith.constant 0 : index
    %7 = vector.load %arg2[%c1, %c0_7, %c0_8] : memref<3x640x128xbf16, #tpu.memory_space<vmem>>, vector<1x640x128xbf16>
    %8 = vector.shape_cast %7 : vector<1x640x128xbf16> to vector<640x128xbf16>
    %cst_9 = arith.constant dense<0.000000e+00> : vector<256x128xf32>
    %9 = tpu.matmul %6, %8, %cst_9 {dimension_numbers = #tpu.dot_dimension_numbers<[1], [0], [0], [1], [0, 0, 1, 1], [], []>} : vector<256x640xbf16>, vector<640x128xbf16>, vector<256x128xf32> -> vector<256x128xf32>
    %10 = arith.addf %4, %9 : vector<256x128xf32>
    %c0_10 = arith.constant 0 : index
    %c32 = arith.constant 32 : index
    %c0_11 = arith.constant 0 : index
    %11 = vector.load %arg1[%c0_10, %c32, %c0_11] : memref<1x288x640xbf16, #tpu.memory_space<vmem>>, vector<1x256x640xbf16>
    %12 = vector.shape_cast %11 : vector<1x256x640xbf16> to vector<256x640xbf16>
    %c2 = arith.constant 2 : index
    %c0_12 = arith.constant 0 : index
    %c0_13 = arith.constant 0 : index
    %13 = vector.load %arg2[%c2, %c0_12, %c0_13] : memref<3x640x128xbf16, #tpu.memory_space<vmem>>, vector<1x640x128xbf16>
    %14 = vector.shape_cast %13 : vector<1x640x128xbf16> to vector<640x128xbf16>
    %cst_14 = arith.constant dense<0.000000e+00> : vector<256x128xf32>
    %15 = tpu.matmul %12, %14, %cst_14 {dimension_numbers = #tpu.dot_dimension_numbers<[1], [0], [0], [1], [0, 0, 1, 1], [], []>} : vector<256x640xbf16>, vector<640x128xbf16>, vector<256x128xf32> -> vector<256x128xf32>
    %16 = arith.addf %10, %15 : vector<256x128xf32>
    %c0_15 = arith.constant 0 : index
    %c0_16 = arith.constant 0 : index
    %17 = vector.load %arg3[%c0_15, %c0_16] : memref<1x128xf32, #tpu.memory_space<vmem>>, vector<1x128xf32>
    %18 = vector.broadcast %17 : vector<1x128xf32> to vector<256x128xf32>
    %19 = arith.addf %16, %18 : vector<256x128xf32>
    %cst_17 = arith.constant 0.000000e+00 : f32
    %20 = vector.broadcast %cst_17 : f32 to vector<256x128xf32>
    %21 = arith.maximumf %19, %20 : vector<256x128xf32>
    %22 = arith.truncf %21 : vector<256x128xf32> to vector<256x128xbf16>
    %c0_18 = arith.constant 0 : index
    %c0_19 = arith.constant 0 : index
    %c0_20 = arith.constant 0 : index
    %23 = vector.load %arg4[%c0_18, %c0_19, %c0_20] : memref<1x256x128xbf16, #tpu.memory_space<vmem>>, vector<1x256x128xbf16>
    %24 = vector.shape_cast %23 : vector<1x256x128xbf16> to vector<256x128xbf16>
    %25 = vector.shape_cast %22 : vector<256x128xbf16> to vector<1x256x128xbf16>
    tpu.vector_store %arg4[%c0_18, %c0_19, %c0_20], %25 {strides = array<i32>} : memref<1x256x128xbf16, #tpu.memory_space<vmem>>, vector<1x256x128xbf16>,
    return
  }
  func.func @transform_0(%arg0: i32) -> (i32, i32, i32) {
    %c0_i32 = arith.constant 0 : i32
    %c0_i32_0 = arith.constant 0 : i32
    %c0_i32_1 = arith.constant 0 : i32
    return %arg0, %c0_i32, %c0_i32_0 : i32, i32, i32
  }
  func.func @transform_1(%arg0: i32) -> (i32, i32, i32) {
    %c0_i32 = arith.constant 0 : i32
    %c0_i32_0 = arith.constant 0 : i32
    %c0_i32_1 = arith.constant 0 : i32
    %c0_i32_2 = arith.constant 0 : i32
    return %c0_i32, %c0_i32_0, %c0_i32_1 : i32, i32, i32
  }
  func.func @transform_2(%arg0: i32) -> (i32, i32) {
    %c0_i32 = arith.constant 0 : i32
    %c0_i32_0 = arith.constant 0 : i32
    %c0_i32_1 = arith.constant 0 : i32
    return %c0_i32, %c0_i32_0 : i32, i32
  }
  func.func @transform_3(%arg0: i32) -> (i32, i32, i32) {
    %c0_i32 = arith.constant 0 : i32
    %c0_i32_0 = arith.constant 0 : i32
    %c0_i32_1 = arith.constant 0 : i32
    return %arg0, %c0_i32, %c0_i32_0 : i32, i32, i32
  }
}

</mosaic_0001>

<bundles_post_ra>
// kernel: tpu_custom_call.1
= control target key start
LH: loop header
LB: loop body
LE: loop exit
PB: predicated region body
PF: predicated region fallthrough
CT: control target
= control target key end

     0   :  { %8 = vsyncpa [#allocation3], 0  ;;  %s6931_s0 = inlined_call_operand.hbm [shape: bf16[2,288,640], index: 0, kind: input, shape index: {}]   ;;  %s6932_s1 = inlined_call_operand.hbm [shape: bf16[3,640,128], index: 1, kind: input, shape index: {}]   ;;  %s6933_s2 = inlined_call_operand.vmem [shape: f32[1,128], index: 2, kind: input, shape index: {}]   ;;  %s6934_s3 = inlined_call_operand.hbm [shape: bf16[2,256,128], index: 3, kind: output, shape index: {}]  }
   0x1   :  { %10 = vsyncpa [#allocation3 + $0x1], 0 }
   0x2   :  { %11 = vsyncpa [#allocation6], 0 }
   0x3   :  { %12 = vsyncpa [#allocation4], 0 }
   0x4   :  { %14 = vsyncpa [#allocation4 + $0x1], 0  ;;  %s5608_s12 = smov 0   ;;  %s5610_s13 = smov 0  }
   0x5   :  { %s5612_s14 = smov 0   ;;  %s5614_s15 = smov 0  }
   0x6 LB: > { %s5629_s16 = sadd.s32 4294967295, %s5579_s15   ;;  %s3824_s17 = sadd.s32 4294967294, %s5579_s15   ;;  %s5579_s15 = sphi %s5614_s15, %s7100_s15   ;;  %s5575_s14 = sphi %s5612_s14, %s7099_s14   ;;  %s5571_s13 = sphi %s5610_s13, %s7098_s13   ;;  %s5567_s12 = sphi %s5608_s12, %s7097_s12  }
   0x7   : > { %p40_p0 = scmp.ne.s32.totalorder %s5571_s13, %s5567_s12  ;;  %p41_p1 = scmp.eq.s32.totalorder %s5629_s16, 0 }
   0x8   : > { %p106_p2 = scmp.eq.s32.totalorder %s5629_s16, 1  ;;  %p112_p3 = scmp.eq.s32.totalorder %s3824_s17, 1 }
   0x9   : > { %p5638_p4 = por %p41_p1, %p40_p0  ;;  %p3825_p5 = scmp.ge.s32.totalorder %s5579_s15, 1 }
   0xa   : > { %p5643_p6 = por %p112_p3, %p40_p0  ;;  %p119_p7 = scmp.lt.s32.totalorder %s5579_s15, 3 }
   0xb   : > { %s130_s22 = sshll.u32 %s6932_s1, 4  ;;  %s5581_s24 = smov [#allocation5]   ;;  %s131_s22 = int_to_ptr.hbm [resolvable:$true] %s130_s22 }
   0xc   : > { %p5651_p8 = pnand %p3825_p5, %p119_p7  ;;  %s132_s25 = sshll.u32 %s5581_s24, 4  ;;  %s133_s25 = int_to_ptr.vmem [resolvable:$true] %s132_s25 }
   0xd   : > { %s5661_s26 = sadd.s32 1, %s5579_s15   ;;  %s5582_s27 = smov 64  }
   0xe   : > { %p5393_p9 = pneg %p5651_p8  ;;  %s5583_s28 = smov 4  }
   0xf   : > { %s24_s29 = ssub.s32 %s5579_s15, %s5661_s26  ;;  %s27_s30 = sadd.s32 1, %s5575_s14 }
  0x10   : > { %p5394_p10 = pnand %p5393_p9, %p41_p1  ;;  %p25_p12 = scmp.eq.s32.totalorder %s24_s29, 0 }
  0x11   : > { %p34_p13 = scmp.ne.s32.totalorder %s5575_s14, %s5571_s13  ;;  %p35_p0 = scmp.eq.s32.totalorder %s5579_s15, 0 }
  0x12   : > { %5396 = dma.hbm_to_vmem [thread:$0]  (!%p5394_p10), %s131_s22, 15360, %s133_s25, [#allocation6], %s5582_s27, %s5582_s27, %s5583_s28  }
  0x13   : > { %p5406_p3 = scmp.lt.s32.totalorder %s5579_s15, 2  ;;  %p36_p5 = por %p35_p0, %p34_p13 }
  0x14   : > { %s5671_s4 = scalar_select %p25_p12, %s5575_s14, %s27_s30  }
  0x15   : > { %p5675_p7 = por %p106_p2, %p34_p13  ;;  %s149_s6 = sand.u32 1, %s5575_s14  }
  0x16   : > { %s5383_s7 = smul.u32 720, %s5579_s15  ;;  %p5684_p9 = pnand %p5406_p3, %p36_p5 }
  0x17   : > { %s5382_s8 = smul.u32 720, %s149_s6  ;;  %s150_s24 = scalar_lea.sflag [#allocation3], %s149_s6 }
  0x18   : > { %s158_s11 = scalar_lea.hbm %s6931_s0, %s5383_s7  ;;  %p5483_p10 = pneg %p5684_p9 }
  0x19   : > { %s159_s20 = sshll.u32 %s158_s11, 4  ;;  %s153_s21 = scalar_lea.vmem [#allocation2], %s5382_s8  ;;  %s160_s20 = int_to_ptr.hbm [resolvable:$true] %s159_s20 }
  0x1a   : > { %s161_s22 = sshll.u32 %s153_s21, 4  ;;  %s5479_s25 = sshra.s32 %s160_s20, 4  ;;  %s162_s22 = int_to_ptr.vmem [resolvable:$true] %s161_s22  ;;  %s5480_s25 = int_to_ptr.hbm [resolvable:$true] %s5479_s25 }
  0x1b   : > { %s5481_s27 = scalar_lea.hbm %s5480_s25, 720  ;;  %s5486_s30 = scalar_lea.hbm %s6931_s0, 1440 }
  0x1c   : > { %p5482_p2 = scmp.ne.s32.totalorder %s5480_s25, %s5481_s27  ;;  %p5487_p0 = scmp.lt.s32.totalorder %s5480_s25, %s6931_s0 }
  0x1d   : > { %p5488_p3 = scmp.lt.s32.totalorder %s5486_s30, %s5481_s27 }
  0x1e   : > { %p5484_p12 = pnand %p5483_p10, %p5482_p2 }
  0x1f   : > { %p5489_p5 = por %p5488_p3, %p5487_p0 }
  0x20   : > { %p5485_p13 = pneg %p5484_p12 }
  0x22   : > { %p5490_p11 = pnand %p5489_p5, %p5485_p13 }
  0x24   : > { %5493 = shalt.err (!%p5490_p11)
}
  0x25   : > { %s5584_s6 = smov 320   ;;  %s5585_s8 = smov 20  }
  0x26   : > { %5400 = dma.hbm_to_vmem [thread:$0]  (!%p5684_p9), %s160_s20, 11520, %s162_s22, %s150_s24, %s5584_s6, %s5584_s6, %s5585_s8  }
  0x27   : > { %173 = sbr.rel (%p5651_p8) target bundleno = 1187 (0x4a3), region = 32 }
  0x2c   : > { %s5701_s10 = sand.u32 1, %s5571_s13  }
  0x2d   : > { %s5384_s11 = smul.u32 720, %s5701_s10  ;;  %s176_s21 = scalar_lea.sflag [#allocation3], %s5701_s10 }
  0x2f   : > { %s5705_s25 = scalar_lea.vmem [#allocation2], %s5384_s11 }
  0x30   : > { %5554 = dma.done.wait (%p5638_p4), %s176_s21, 11520  }
  0x31   : > { %5556 = vsyncadd (%p5638_p4), %s176_s21, 4294955776 }
  0x32   : > { %5558 = dma.done.wait (%p41_p1), [#allocation6], 15360  }
  0x33   : > { %5560 = vsyncadd (%p41_p1), [#allocation6], 4294951936  ;;  %v5109_v0 = vld [vmem:[#allocation5 + $0x178] sm:$0xff]  ;;  %v5108_v3 = vld [vmem:[#allocation5 + $0x170] sm:$0xff]  ;;  %s3831_s17 = sshll.u32 %s5701_s10, 7  ;;  %s5262_s22 = sshll.u32 %s5629_s16, 7 }
  0x34   : > { %v5715_v1 = vld [vmem:[#allocation5 + $0x1b8] sm:$0xff]  ;;  %1127 = vmatpush.bf16.msra.mxu0 %v5109_v0  ;;  %5358 = vmatpush.bf16.msra.mxu3 %v5109_v0  ;;  %v5721_v4 = vld [vmem:[#allocation5 + $0x1b0] sm:$0xff]  ;;  %v5107_v6 = vld [vmem:[#allocation5 + $0x168] sm:$0xff]  ;;  %s6750_s20 = scalar_lea.vmem [#allocation7], %s3831_s17  ;;  %s3737_s28 = scalar_lea.hbm %s6934_s3, %s5262_s22 }
  0x35   : > { %v5717_v2 = vld [vmem:[#allocation5 + $0x1f8] sm:$0xff]  ;;  %1216 = vmatpush.bf16.msra.mxu1 %v5715_v1  ;;  %v5723_v5 = vld [vmem:[#allocation5 + $0x1f0] sm:$0xff]  ;;  %v5727_v7 = vld [vmem:[#allocation5 + $0x1a8] sm:$0xff]  ;;  %s3738_s29 = sshll.u32 %s6750_s20, 4  ;;  %s3740_s30 = sshll.u32 %s3737_s28, 4  ;;  %s3739_s29 = int_to_ptr.vmem [resolvable:$true] %s3738_s29  ;;  %s3741_s30 = int_to_ptr.hbm [resolvable:$true] %s3740_s30 }
  0x36   : > { %1305 = vmatpush.bf16.msra.mxu2 %v5717_v2  ;;  %v5729_v8 = vld [vmem:[#allocation5 + $0x1e8] sm:$0xff]  ;;  %v5106_v9 = vld [vmem:[#allocation5 + $0x160] sm:$0xff]  ;;  %v5105_v12 = vld [vmem:[#allocation5 + $0x158] sm:$0xff]  ;;  %s3726_s16 = scalar_lea.sflag [#allocation4], %s5701_s10  ;;  %s5523_s7 = sshra.s32 %s3741_s30, 4  ;;  %s5524_s7 = int_to_ptr.hbm [resolvable:$true] %s5523_s7 }
  0x37   : > { %v5733_v10 = vld [vmem:[#allocation5 + $0x1a0] sm:$0xff]  ;;  %v5739_v13 = vld [vmem:[#allocation5 + $0x198] sm:$0xff]  ;;  %v5104_v15 = vld [vmem:[#allocation5 + $0x150] sm:$0xff]  ;;  %s5525_s9 = scalar_lea.hbm %s5524_s7, 128  ;;  %s5529_s11 = scalar_lea.hbm %s6934_s3, 256 }
  0x38   : > { %1128 = vmatpush.bf16.msra.mxu0 %v5108_v3  ;;  %5359 = vmatpush.bf16.msra.mxu3 %v5108_v3  ;;  %v5735_v11 = vld [vmem:[#allocation5 + $0x1e0] sm:$0xff]  ;;  %v5741_v14 = vld [vmem:[#allocation5 + $0x1d8] sm:$0xff]  ;;  %v5745_v16 = vld [vmem:[#allocation5 + $0x190] sm:$0xff]  ;;  %p5526_p1 = scmp.ne.s32.totalorder %s5524_s7, %s5525_s9  ;;  %p5530_p11 = scmp.lt.s32.totalorder %s5524_s7, %s6934_s3 }
  0x39   : > { %1217 = vmatpush.bf16.msra.mxu1 %v5721_v4  ;;  %v5747_v17 = vld [vmem:[#allocation5 + $0x1d0] sm:$0xff]  ;;  %v5103_v18 = vld [vmem:[#allocation5 + $0x148] sm:$0xff]  ;;  %v5102_v21 = vld [vmem:[#allocation5 + $0x140] sm:$0xff]  ;;  %p5531_p9 = scmp.lt.s32.totalorder %s5529_s11, %s5525_s9 }
  0x3a   : > { %1306 = vmatpush.bf16.msra.mxu2 %v5723_v5  ;;  %v5751_v19 = vld [vmem:[#allocation5 + $0x188] sm:$0xff]  ;;  %v5755_v22 = vld [vmem:[#allocation5 + $0x180] sm:$0xff]  ;;  %v5072_v32 = vld [vmem:[#allocation5 + $0x78] sm:$0xff]  ;;  %p5527_p4 = pnand %p5526_p1, %p5675_p7 }
  0x3b   : > { %v5753_v20 = vld [vmem:[#allocation5 + $0x1c8] sm:$0xff]  ;;  %v5757_v23 = vld [vmem:[#allocation5 + $0x1c0] sm:$0xff]  ;;  %v5141_v37 = vld [vmem:[#allocation5 + $0x278] sm:$0xff]  ;;  %p5532_p2 = por %p5531_p9, %p5530_p11 }
  0x3c   : > { %1129 = vmatpush.bf16.msra.mxu0 %v5107_v6  ;;  %5360 = vmatpush.bf16.msra.mxu3 %v5107_v6  ;;  %v3834_v24 = vld [vmem:[%s5705_s25 + $0x28] sm:$0xf]  ;;  %v4984_v25 = vld [vmem:[%s5705_s25 + $0x38] sm:$0xf0]  ;;  %v4982_v28 = vld [vmem:[%s5705_s25 + $0x2c] sm:$0xf]  ;;  %p5528_p8 = pneg %p5527_p4 }
  0x3d   : > { %1218 = vmatpush.bf16.msra.mxu1 %v5727_v7  ;;  %v4074_v26 = vld [vmem:[%s5705_s25 + $0x208] sm:$0xf]  ;;  %v5044_v27 = vld [vmem:[%s5705_s25 + $0x218] sm:$0xf0]  ;;  %v3836_v29 = vld [vmem:[%s5705_s25 + $0x3c] sm:$0xf0]  ;;  %v5769_v33 = vor.u32 %v4984_v25, %v3834_v24 }
  0x3e   : > { %1307 = vmatpush.bf16.msra.mxu2 %v5729_v8  ;;  %v3842_v30 = vld [vmem:[%s5705_s25 + $0x30] sm:$0xf]  ;;  %v4985_v31 = vld [vmem:[%s5705_s25 + $0x40] sm:$0xf0]  ;;  %v5771_v34 = vor.u32 %v5044_v27, %v4074_v26  ;;  %v5773_v35 = vor.u32 %v4982_v28, %v3836_v29  ;;  %v5064_v38 = vld [vmem:[#allocation5 + $0x38] sm:$0xff]  ;;  %p5533_p10 = pnand %p5532_p2, %p5528_p8 }
  0x3f   : > { %v5775_v36 = vor.u32 %v4985_v31, %v3842_v30  ;;  %v5071_v39 = vld [vmem:[#allocation5 + $0x70] sm:$0xff]  ;;  %v3856_v47 = vld [vmem:[%s5705_s25 + $0x64] sm:$0xf0]  ;;  %v3862_v48 = vld [vmem:[%s5705_s25 + $0x58] sm:$0xf] }
  0x40   : > { %1130 = vmatpush.bf16.msra.mxu0 %v5106_v9  ;;  %5361 = vmatpush.bf16.msra.mxu3 %v5106_v9  ;;  %v5140_v40 = vld [vmem:[#allocation5 + $0x270] sm:$0xff]  ;;  %v4990_v49 = vld [vmem:[%s5705_s25 + $0x68] sm:$0xf0]  ;;  %v3874_v57 = vld [vmem:[%s5705_s25 + $0x78] sm:$0xf] }
  0x41   : > { %1219 = vmatpush.bf16.msra.mxu1 %v5733_v10  ;;  %v5063_v41 = vld [vmem:[#allocation5 + $0x30] sm:$0xff]  ;;  %v5801_v53 = vor.u32 %v4990_v49, %v3862_v48  ;;  %v5070_v54 = vld [vmem:[#allocation5 + $0x68] sm:$0xff] }
  0x42   : > { %1308 = vmatpush.bf16.msra.mxu2 %v5735_v11  ;;  %v3854_v42 = vld [vmem:[%s5705_s25 + $0x50] sm:$0xf]  ;;  %v4989_v43 = vld [vmem:[%s5705_s25 + $0x60] sm:$0xf0]  ;;  %v4987_v46 = vld [vmem:[%s5705_s25 + $0x54] sm:$0xf] }
  0x43   : > { %v4094_v44 = vld [vmem:[%s5705_s25 + $0x230] sm:$0xf]  ;;  %v5049_v45 = vld [vmem:[%s5705_s25 + $0x240] sm:$0xf0]  ;;  %v5795_v50 = vor.u32 %v4989_v43, %v3854_v42  ;;  %v5799_v52 = vor.u32 %v4987_v46, %v3856_v47  ;;  %6972 = vst [vmem:[#allocation11_spill] sm:$0xff] %v5801_v53  ;;  %v5139_v55 = vld [vmem:[#allocation5 + $0x268] sm:$0xff] }
  0x44   : > { %1131 = vmatpush.bf16.msra.mxu0 %v5105_v12  ;;  %5362 = vmatpush.bf16.msra.mxu3 %v5105_v12  ;;  %v5797_v51 = vor.u32 %v5049_v45, %v4094_v44  ;;  %v5062_v56 = vld [vmem:[#allocation5 + $0x28] sm:$0xff]  ;;  %v3876_v62 = vld [vmem:[%s5705_s25 + $0x8c] sm:$0xf0]  ;;  %v3882_v63 = vld [vmem:[%s5705_s25 + $0x80] sm:$0xf] }
  0x45   : > { %1220 = vmatpush.bf16.msra.mxu1 %v5739_v13  ;;  %v4994_v58 = vld [vmem:[%s5705_s25 + $0x88] sm:$0xf0]  ;;  %v4114_v59 = vld [vmem:[%s5705_s25 + $0x258] sm:$0xf]  ;;  %v4992_v61 = vld [vmem:[%s5705_s25 + $0x7c] sm:$0xf] }
  0x46   : > { %1309 = vmatpush.bf16.msra.mxu2 %v5741_v14  ;;  %v5054_v60 = vld [vmem:[%s5705_s25 + $0x268] sm:$0xf0]  ;;  %v4995_v0 = vld [vmem:[%s5705_s25 + $0x90] sm:$0xf0]  ;;  %v3914_v24 = vld [vmem:[%s5705_s25 + $0xc8] sm:$0xf] }
  0x47   : > { %v5821_v3 = vor.u32 %v5054_v60, %v4114_v59  ;;  %v5826_v6 = vor.u32 %v4995_v0, %v3882_v63  ;;  %v4999_v9 = vld [vmem:[%s5705_s25 + $0xb0] sm:$0xf0]  ;;  %v5002_v25 = vld [vmem:[%s5705_s25 + $0xcc] sm:$0xf]  ;;  %v4076_v27 = vld [vmem:[%s5705_s25 + $0x21c] sm:$0xf0] }
  0x48   : > { %1132 = vmatpush.bf16.msra.mxu0 %v5104_v15  ;;  %5363 = vmatpush.bf16.msra.mxu3 %v5104_v15  ;;  %v5099_v12 = vld [vmem:[%s5705_s25 + $0x290] sm:$0xf0]  ;;  %v3896_v15 = vld [vmem:[%s5705_s25 + $0xb4] sm:$0xf0]  ;;  %v5042_v26 = vld [vmem:[%s5705_s25 + $0x20c] sm:$0xf] }
  0x49   : > { %1221 = vmatpush.bf16.msra.mxu1 %v5745_v16  ;;  %6973 = vst [vmem:[#allocation12_spill] sm:$0xff] %v5826_v6  ;;  %v3916_v28 = vld [vmem:[%s5705_s25 + $0xdc] sm:$0xf0]  ;;  %v3922_v29 = vld [vmem:[%s5705_s25 + $0xd0] sm:$0xf] }
  0x4a   : > { %1310 = vmatpush.bf16.msra.mxu2 %v5747_v17  ;;  %v5005_v30 = vld [vmem:[%s5705_s25 + $0xe0] sm:$0xf0]  ;;  %v5047_v42 = vld [vmem:[%s5705_s25 + $0x234] sm:$0xf]  ;;  %v4096_v43 = vld [vmem:[%s5705_s25 + $0x244] sm:$0xf0] }
  0x4b   : > { %v3936_v44 = vld [vmem:[%s5705_s25 + $0x104] sm:$0xf0]  ;;  %v3942_v45 = vld [vmem:[%s5705_s25 + $0xf8] sm:$0xf]  ;;  %v5010_v46 = vld [vmem:[%s5705_s25 + $0x108] sm:$0xf0]  ;;  %v5886_v48 = vor.u32 %v5047_v42, %v4096_v43 }
  0x4c   : > { %1133 = vmatpush.bf16.msra.mxu0 %v5103_v18  ;;  %5364 = vmatpush.bf16.msra.mxu3 %v5103_v18  ;;  %v5000_v18 = vld [vmem:[%s5705_s25 + $0xb8] sm:$0xf0]  ;;  %v4116_v59 = vld [vmem:[%s5705_s25 + $0x26c] sm:$0xf0]  ;;  %v5022_v42 = vld [vmem:[%s5705_s25 + $0x16c] sm:$0xf] }
  0x4d   : > { %1222 = vmatpush.bf16.msra.mxu1 %v5751_v19  ;;  %v3956_v60 = vld [vmem:[%s5705_s25 + $0x12c] sm:$0xf0] }
  0x4e   : > { %1311 = vmatpush.bf16.msra.mxu2 %v5753_v20  ;;  %v4082_v43 = vld [vmem:[%s5705_s25 + $0x210] sm:$0xf] }
  0x50   : > { %1134 = vmatpush.bf16.msra.mxu0 %v5102_v21  ;;  %5365 = vmatpush.bf16.msra.mxu3 %v5102_v21 }
  0x51   : > { %1223 = vmatpush.bf16.msra.mxu1 %v5755_v22 }
  0x52   : > { %1312 = vmatpush.bf16.msra.mxu2 %v5757_v23 }
  0x53   : > { %1135 = vmatmul.bf16.vlgmr.msra.gmra.mxu0 %v5769_v33  ;;  %1195 = vmatmul.bf16.vlgmr.msra.gmra.mxu3 %v5771_v34 }
  0x54   : > { %5366 = vmatpush.bf16.msrb.mxu3 %v5715_v1  ;;  %1224 = vmatmul.bf16.vlgmr.msra.gmra.mxu1 %v5773_v35  ;;  %v5819_v1 = vor.u32 %v4994_v58, %v3874_v57  ;;  %v5012_v57 = vld [vmem:[%s5705_s25 + $0x11c] sm:$0xf] }
  0x55   : > { %1313 = vmatmul.bf16.vlgmr.msra.gmra.mxu2 %v5775_v36  ;;  %1483 = vmatpush.bf16.msrb.mxu0 %v5141_v37  ;;  %v5137_v37 = vld [vmem:[#allocation5 + $0x258] sm:$0xff] }
  0x56   : > { %1927 = vmatpush.bf16.msrb.mxu2 %v5072_v32  ;;  %1838 = vmatpush.bf16.msrb.mxu1 %v5064_v38  ;;  %v5868_v32 = vor.u32 %v5002_v25, %v3916_v28  ;;  %v5060_v38 = vld [vmem:[#allocation5 + $0x18] sm:$0xff] }
  0x57   : > { %v5052_v58 = vld [vmem:[%s5705_s25 + $0x25c] sm:$0xf] }
  0x58   : > { %5367 = vmatpush.bf16.msrb.mxu3 %v5721_v4  ;;  %v5824_v4 = vor.u32 %v4992_v61, %v3876_v62  ;;  %v3962_v61 = vld [vmem:[%s5705_s25 + $0x120] sm:$0xf]  ;;  %v5015_v62 = vld [vmem:[%s5705_s25 + $0x130] sm:$0xf0]  ;;  %v5906_v0 = vor.u32 %v5052_v58, %v4116_v59  ;;  %v5020_v25 = vld [vmem:[%s5705_s25 + $0x158] sm:$0xf0] }
  0x59   : > { %1484 = vmatpush.bf16.msrb.mxu0 %v5140_v40  ;;  %v5009_v40 = vld [vmem:[%s5705_s25 + $0x100] sm:$0xf0] }
  0x5a   : > { %1928 = vmatpush.bf16.msrb.mxu2 %v5071_v39  ;;  %1839 = vmatpush.bf16.msrb.mxu1 %v5063_v41  ;;  %v3934_v39 = vld [vmem:[%s5705_s25 + $0xf0] sm:$0xf]  ;;  %v5007_v41 = vld [vmem:[%s5705_s25 + $0xf4] sm:$0xf] }
  0x5b   : > { %v5884_v47 = vor.u32 %v5009_v40, %v3934_v39  ;;  %v5888_v49 = vor.u32 %v5007_v41, %v3936_v44  ;;  %v3994_v39 = vld [vmem:[%s5705_s25 + $0x168] sm:$0xf]  ;;  %v5024_v40 = vld [vmem:[%s5705_s25 + $0x178] sm:$0xf0]  ;;  %v5045_v44 = vld [vmem:[%s5705_s25 + $0x220] sm:$0xf0] }
  0x5c   : > { %5368 = vmatpush.bf16.msrb.mxu3 %v5727_v7  ;;  %v5069_v7 = vld [vmem:[#allocation5 + $0x60] sm:$0xff]  ;;  %v5058_v41 = vld [vmem:[#allocation5 + $0x8] sm:$0xff] }
  0x5d   : > { %1485 = vmatpush.bf16.msrb.mxu0 %v5139_v55  ;;  %v3954_v55 = vld [vmem:[%s5705_s25 + $0x118] sm:$0xf] }
  0x5e   : > { %1929 = vmatpush.bf16.msrb.mxu2 %v5070_v54  ;;  %1840 = vmatpush.bf16.msrb.mxu1 %v5062_v56  ;;  %v5890_v54 = vor.u32 %v5010_v46, %v3942_v45  ;;  %v5014_v56 = vld [vmem:[%s5705_s25 + $0x128] sm:$0xf0]  ;;  %v3996_v45 = vld [vmem:[%s5705_s25 + $0x17c] sm:$0xf0]  ;;  %v4002_v46 = vld [vmem:[%s5705_s25 + $0x170] sm:$0xf] }
  0x5f   : > { %v5904_v63 = vor.u32 %v5014_v56, %v3954_v55  ;;  %v5025_v55 = vld [vmem:[%s5705_s25 + $0x180] sm:$0xf0]  ;;  %v5941_v56 = vor.u32 %v5024_v40, %v3994_v39  ;;  %v5945_v59 = vor.u32 %v5022_v42, %v3996_v45 }
  0x60   : > { %5369 = vmatpush.bf16.msrb.mxu3 %v5733_v10  ;;  %v4134_v10 = vld [vmem:[%s5705_s25 + $0x280] sm:$0xf]  ;;  %6976 = vst [vmem:[#allocation15_spill] sm:$0xff] %v5890_v54 }
  0x61   : > { %v4135_v21 = vor.u32 %v5099_v12, %v4134_v10  ;;  %v5133_v10 = vld [vmem:[#allocation5 + $0x238] sm:$0xff]  ;;  %v5136_v12 = vld [vmem:[#allocation5 + $0x250] sm:$0xff] }
  0x62   : > { %1930 = vmatpush.bf16.msrb.mxu2 %v5069_v7  ;;  %v5908_v7 = vor.u32 %v5012_v57, %v3956_v60  ;;  %v5943_v57 = vor.u32 %v5045_v44, %v4082_v43  ;;  %v5947_v60 = vor.u32 %v5025_v55, %v4002_v46  ;;  %v5065_v55 = vld [vmem:[#allocation5 + $0x40] sm:$0xff] }
  0x63   : > { %1140 = vmatmul.bf16.gmra.mxu0 %v5795_v50  ;;  %1200 = vmatmul.bf16.gmra.mxu3 %v5797_v51 }
  0x64   : > { %5370 = vmatpush.bf16.msrb.mxu3 %v5739_v13  ;;  %1229 = vmatmul.bf16.gmra.mxu1 %v5799_v52  ;;  %v4997_v13 = vld [vmem:[%s5705_s25 + $0xa4] sm:$0xf]  ;;  %6979 = vst [vmem:[#allocation18_spill] sm:$0xff] %v5943_v57 }
  0x65   : > { %1318 = vmatmul.bf16.gmra.mxu2 %v5801_v53  ;;  %6980 = vst [vmem:[#allocation19_spill] sm:$0xff] %v5947_v60 }
  0x68   : > { %5371 = vmatpush.bf16.msrb.mxu3 %v5745_v16  ;;  %v3902_v16 = vld [vmem:[%s5705_s25 + $0xa8] sm:$0xf] }
  0x6c   : > { %5372 = vmatpush.bf16.msrb.mxu3 %v5751_v19 }
  0x70   : > { %5373 = vmatpush.bf16.msrb.mxu3 %v5755_v22  ;;  %v5061_v22 = vld [vmem:[#allocation5 + $0x20] sm:$0xff] }
  0x71   : > { %1841 = vmatpush.bf16.msrb.mxu1 %v5061_v22  ;;  %v4136_v22 = vld [vmem:[%s5705_s25 + $0x294] sm:$0xf0] }
  0x73   : > { %1145 = vmatmul.bf16.gmra.mxu0 %v5819_v1  ;;  %1205 = vmatmul.bf16.gmra.mxu3 %v5821_v3 }
  0x74   : > { %5374 = vmatpush.bf16.msra.mxu3 %v5717_v2  ;;  %1234 = vmatmul.bf16.gmra.mxu1 %v5824_v4  ;;  %v3894_v2 = vld [vmem:[%s5705_s25 + $0xa0] sm:$0xf] }
  0x75   : > { %1323 = vmatmul.bf16.gmra.mxu2 %v5826_v6  ;;  %v5843_v19 = vor.u32 %v4999_v9, %v3894_v2  ;;  %1842 = vmatpush.bf16.msrb.mxu1 %v5060_v38  ;;  %v5910_v2 = vor.u32 %v5015_v62, %v3962_v61  ;;  %v5067_v9 = vld [vmem:[#allocation5 + $0x50] sm:$0xff]  ;;  %v5135_v38 = vld [vmem:[#allocation5 + $0x248] sm:$0xff] }
  0x77   : > { %6977 = vst [vmem:[#allocation16_spill] sm:$0xff] %v5910_v2 }
  0x78   : > { %5375 = vmatpush.bf16.msra.mxu3 %v5723_v5  ;;  %v5845_v5 = vor.u32 %v4997_v13, %v3896_v15  ;;  %v5059_v13 = vld [vmem:[#allocation5 + $0x10] sm:$0xff] }
  0x79   : > { %1843 = vmatpush.bf16.msrb.mxu1 %v5059_v13  ;;  %v5132_v15 = vld [vmem:[#allocation5 + $0x230] sm:$0xff] }
  0x7c   : > { %5376 = vmatpush.bf16.msra.mxu3 %v5729_v8  ;;  %v5847_v8 = vor.u32 %v5000_v18, %v3902_v16  ;;  %v3974_v16 = vld [vmem:[%s5705_s25 + $0x140] sm:$0xf]  ;;  %v5019_v18 = vld [vmem:[%s5705_s25 + $0x150] sm:$0xf0] }
  0x7d   : > { %1844 = vmatpush.bf16.msrb.mxu1 %v5058_v41 }
  0x7e   : > { %6974 = vst [vmem:[#allocation13_spill] sm:$0xff] %v5847_v8 }
  0x80   : > { %5377 = vmatpush.bf16.msra.mxu3 %v5735_v11  ;;  %v5138_v11 = vld [vmem:[#allocation5 + $0x260] sm:$0xff] }
  0x81   : > { %1486 = vmatpush.bf16.msrb.mxu0 %v5138_v11  ;;  %v5097_v11 = vld [vmem:[%s5705_s25 + $0x284] sm:$0xf] }
  0x83   : > { %1150 = vmatmul.bf16.gmra.mxu0 %v5843_v19  ;;  %1210 = vmatmul.bf16.gmra.mxu3 %v4135_v21  ;;  %v5017_v21 = vld [vmem:[%s5705_s25 + $0x144] sm:$0xf] }
  0x84   : > { %5378 = vmatpush.bf16.msra.mxu3 %v5741_v14  ;;  %1239 = vmatmul.bf16.gmra.mxu1 %v5845_v5  ;;  %v5004_v14 = vld [vmem:[%s5705_s25 + $0xd8] sm:$0xf0] }
  0x85   : > { %1328 = vmatmul.bf16.gmra.mxu2 %v5847_v8  ;;  %v5864_v31 = vor.u32 %v5004_v14, %v3914_v24  ;;  %1487 = vmatpush.bf16.msrb.mxu0 %v5137_v37  ;;  %v3976_v24 = vld [vmem:[%s5705_s25 + $0x154] sm:$0xf0]  ;;  %v3982_v14 = vld [vmem:[%s5705_s25 + $0x148] sm:$0xf]  ;;  %v5130_v37 = vld [vmem:[#allocation5 + $0x220] sm:$0xff] }
  0x86   : > { %v5926_v28 = vor.u32 %v5017_v21, %v3976_v24  ;;  %v5128_v21 = vld [vmem:[#allocation5 + $0x210] sm:$0xff] }
  0x87   : > { %v5027_v24 = vld [vmem:[%s5705_s25 + $0x194] sm:$0xf] }
  0x88   : > { %5379 = vmatpush.bf16.msra.mxu3 %v5747_v17  ;;  %v5866_v17 = vor.u32 %v5042_v26, %v4076_v27  ;;  %v5924_v26 = vor.u32 %v5019_v18, %v3974_v16  ;;  %v4139_v27 = vor.u32 %v5097_v11, %v4136_v22  ;;  %v4014_v11 = vld [vmem:[%s5705_s25 + $0x190] sm:$0xf]  ;;  %v5029_v22 = vld [vmem:[%s5705_s25 + $0x1a0] sm:$0xf0] }
  0x89   : > { %1488 = vmatpush.bf16.msrb.mxu0 %v5136_v12  ;;  %v5967_v39 = vor.u32 %v5029_v22, %v4014_v11  ;;  %v5126_v11 = vld [vmem:[#allocation5 + $0x200] sm:$0xff]  ;;  %v4034_v22 = vld [vmem:[%s5705_s25 + $0x1b8] sm:$0xf] }
  0x8c   : > { %5380 = vmatpush.bf16.msra.mxu3 %v5753_v20  ;;  %v5870_v20 = vor.u32 %v5005_v30, %v3922_v29  ;;  %v5928_v29 = vor.u32 %v5020_v25, %v3982_v14  ;;  %v5131_v30 = vld [vmem:[#allocation5 + $0x228] sm:$0xff] }
  0x8d   : > { %1489 = vmatpush.bf16.msrb.mxu0 %v5135_v38  ;;  %v4102_v14 = vld [vmem:[%s5705_s25 + $0x238] sm:$0xf]  ;;  %v5050_v25 = vld [vmem:[%s5705_s25 + $0x248] sm:$0xf0] }
  0x8e   : > { %6975 = vst [vmem:[#allocation14_spill] sm:$0xff] %v5870_v20  ;;  %v5969_v40 = vor.u32 %v5050_v25, %v4102_v14  ;;  %v5032_v14 = vld [vmem:[%s5705_s25 + $0x1bc] sm:$0xf]  ;;  %v4122_v25 = vld [vmem:[%s5705_s25 + $0x260] sm:$0xf] }
  0x8f   : > { %6978 = vst [vmem:[#allocation17_spill] sm:$0xff] %v5928_v29 }
  0x90   : > { %5381 = vmatpush.bf16.msra.mxu3 %v5757_v23  ;;  %v5068_v23 = vld [vmem:[#allocation5 + $0x58] sm:$0xff]  ;;  %6981 = vst [vmem:[#allocation20_spill] sm:$0xff] %v5969_v40 }
  0x91   : > { %1931 = vmatpush.bf16.msrb.mxu2 %v5068_v23  ;;  %v5066_v23 = vld [vmem:[#allocation5 + $0x48] sm:$0xff] }
  0x93   : > { %1155 = vmatmul.bf16.gmra.mxu0 %v5864_v31  ;;  %1284 = vmatmul.bf16.vlgmr.msrb.gmra.mxu3 %v5866_v17 }
  0x94   : > { %1244 = vmatmul.bf16.gmra.mxu1 %v5868_v32  ;;  %1394 = vmatpush.bf16.msrb.mxu3 %v5133_v10 }
  0x95   : > { %1333 = vmatmul.bf16.gmra.mxu2 %v5870_v20 }
  0x96   : > { %1932 = vmatpush.bf16.msrb.mxu2 %v5067_v9  ;;  %v5129_v9 = vld [vmem:[#allocation5 + $0x218] sm:$0xff] }
  0x98   : > { %1395 = vmatpush.bf16.msrb.mxu3 %v5132_v15 }
  0x9a   : > { %1933 = vmatpush.bf16.msrb.mxu2 %v5066_v23  ;;  %v5030_v23 = vld [vmem:[%s5705_s25 + $0x1a8] sm:$0xf0] }
  0x9c   : > { %1396 = vmatpush.bf16.msrb.mxu3 %v5131_v30  ;;  %v4022_v30 = vld [vmem:[%s5705_s25 + $0x198] sm:$0xf] }
  0x9d   : > { %v5975_v44 = vor.u32 %v5030_v23, %v4022_v30  ;;  %v4036_v30 = vld [vmem:[%s5705_s25 + $0x1cc] sm:$0xf0]  ;;  %v4042_v23 = vld [vmem:[%s5705_s25 + $0x1c0] sm:$0xf] }
  0x9e   : > { %1934 = vmatpush.bf16.msrb.mxu2 %v5065_v55 }
  0x9f   : > { %6982 = vst [vmem:[#allocation21_spill] sm:$0xff] %v5975_v44 }
  0xa0   : > { %1397 = vmatpush.bf16.msrb.mxu3 %v5130_v37 }
  0xa3   : > { %1160 = vmatmul.bf16.gmra.mxu0 %v5884_v47  ;;  %1289 = vmatmul.bf16.gmra.mxu3 %v5886_v48 }
  0xa4   : > { %1249 = vmatmul.bf16.gmra.mxu1 %v5888_v49  ;;  %1398 = vmatpush.bf16.msrb.mxu3 %v5129_v9 }
  0xa5   : > { %1338 = vmatmul.bf16.gmra.mxu2 %v5890_v54 }
  0xa8   : > { %1399 = vmatpush.bf16.msrb.mxu3 %v5128_v21 }
  0xb3   : > { %1165 = vmatmul.bf16.gmra.mxu0 %v5904_v63  ;;  %1294 = vmatmul.bf16.gmra.mxu3 %v5906_v0 }
  0xb4   : > { %1254 = vmatmul.bf16.gmra.mxu1 %v5908_v7 }
  0xb5   : > { %1343 = vmatmul.bf16.gmra.mxu2 %v5910_v2  ;;  %v4979_v2 = vld [vmem:[%s5705_s25 + $0x10] sm:$0xf0] }
  0xc3   : > { %1170 = vmatmul.bf16.gmra.mxu0 %v5924_v26  ;;  %1299 = vmatmul.bf16.gmra.mxu3 %v4139_v27  ;;  %v4016_v27 = vld [vmem:[%s5705_s25 + $0x1a4] sm:$0xf0] }
  0xc4   : > { %1259 = vmatmul.bf16.gmra.mxu1 %v5926_v28  ;;  %v5973_v43 = vor.u32 %v5027_v24, %v4016_v27  ;;  %v5034_v24 = vld [vmem:[%s5705_s25 + $0x1c8] sm:$0xf0]  ;;  %v5055_v27 = vld [vmem:[%s5705_s25 + $0x270] sm:$0xf0] }
  0xc5   : > { %1348 = vmatmul.bf16.gmra.mxu2 %v5928_v29  ;;  %v5995_v55 = vor.u32 %v5034_v24, %v4034_v22 }
  0xd0   : > { %v1136_v58 = vpop.f32.mrf.mxu0 }
  0xd1   : > { %v1225_v61 = vpop.f32.mrf.mxu1 }
  0xd2   : > { %v1226_v62 = vadd.f32 %v1225_v61, %v1136_v58  ;;  %v5127_v58 = vld [vmem:[#allocation5 + $0x208] sm:$0xff]  ;;  %v5134_v61 = vld [vmem:[#allocation5 + $0x240] sm:$0xff] }
  0xd3   : > { %1175 = vmatmul.bf16.gmra.mxu0 %v5941_v56  ;;  %1373 = vmatmul.bf16.vlgmr.msra.gmra.mxu3 %v5943_v57  ;;  %v4062_v57 = vld [vmem:[%s5705_s25 + $0x1e8] sm:$0xf] }
  0xd4   : > { %1264 = vmatmul.bf16.gmra.mxu1 %v5945_v59  ;;  %1400 = vmatpush.bf16.msrb.mxu3 %v5127_v58 }
  0xd5   : > { %1353 = vmatmul.bf16.gmra.mxu2 %v5947_v60  ;;  %1490 = vmatpush.bf16.msrb.mxu0 %v5134_v61 }
  0xd6   : > { %v5953_v10 = vpop.f32.mrf.mxu3 }
  0xd8   : > { %v1314_v12 = vpop.f32.mrf.mxu2  ;;  %v1138_v15 = vpop.f32.mrf.mxu0  ;;  %1401 = vmatpush.bf16.msrb.mxu3 %v5126_v11 }
  0xd9   : > { %v5955_v13 = vadd.f32 %v1314_v12, %v1226_v62  ;;  %v1227_v16 = vpop.f32.mrf.mxu1  ;;  %v5057_v62 = vld [vmem:[#allocation5] sm:$0xff] }
  0xda   : > { %v1228_v18 = vadd.f32 %v1227_v16, %v1138_v15  ;;  %1845 = vmatpush.bf16.msrb.mxu1 %v5057_v62  ;;  %v6001_v62 = vor.u32 %v5032_v14, %v4036_v30  ;;  %v5229_v30 = vld [vmem:[#allocation5 + $0x2b8] sm:$0xff] }
  0xdb   : > { %3116 = vmatpush.bf16.msra.mxu2 %v5229_v30 }
  0xde   : > { %v5965_v37 = vpop.f32.mrf.mxu3 }
  0xe0   : > { %v1316_v38 = vpop.f32.mrf.mxu2  ;;  %v1141_v42 = vpop.f32.mrf.mxu0 }
  0xe1   : > { %v5971_v41 = vadd.f32 %v1316_v38, %v1228_v18  ;;  %v1230_v45 = vpop.f32.mrf.mxu1  ;;  %v5035_v38 = vld [vmem:[%s5705_s25 + $0x1d0] sm:$0xf0] }
  0xe2   : > { %v1231_v46 = vadd.f32 %v1230_v45, %v1141_v42 }
  0xe3   : > { %1180 = vmatmul.bf16.gmra.mxu0 %v5967_v39  ;;  %1378 = vmatmul.bf16.gmra.mxu3 %v5969_v40  ;;  %v5100_v40 = vld [vmem:[%s5705_s25 + $0x298] sm:$0xf0] }
  0xe4   : > { %1269 = vmatmul.bf16.gmra.mxu1 %v5973_v43 }
  0xe5   : > { %1358 = vmatmul.bf16.gmra.mxu2 %v5975_v44 }
  0xe6   : > { %v5981_v9 = vpop.f32.mrf.mxu3 }
  0xe8   : > { %v1319_v12 = vpop.f32.mrf.mxu2  ;;  %v1143_v16 = vpop.f32.mrf.mxu0 }
  0xe9   : > { %v5983_v15 = vadd.f32 %v1319_v12, %v1231_v46  ;;  %v1232_v18 = vpop.f32.mrf.mxu1  ;;  %v5997_v46 = vor.u32 %v5055_v27, %v4122_v25  ;;  %v6003_v12 = vor.u32 %v5035_v38, %v4042_v23  ;;  %v5088_v23 = vld [vmem:[#allocation5 + $0xf8] sm:$0xff] }
  0xea   : > { %v1233_v21 = vadd.f32 %v1232_v18, %v1143_v16  ;;  %v5096_v38 = vld [vmem:[#allocation5 + $0x138] sm:$0xff]  ;;  %2105 = vmatpush.bf16.msra.mxu0 %v5088_v23 }
  0xeb   : > { %6983 = vst [vmem:[#allocation22_spill] sm:$0xff] %v5997_v46  ;;  %2194 = vmatpush.bf16.msra.mxu1 %v5096_v38 }
  0xec   : > { %6984 = vst [vmem:[#allocation23_spill] sm:$0xff] %v6003_v12 }
  0xee   : > { %v5993_v42 = vpop.f32.mrf.mxu3 }
  0xf0   : > { %v1321_v45 = vpop.f32.mrf.mxu2  ;;  %v1146_v61 = vpop.f32.mrf.mxu0 }
  0xf1   : > { %v5999_v58 = vadd.f32 %v1321_v45, %v1233_v21  ;;  %v1235_v16 = vpop.f32.mrf.mxu1  ;;  %v5080_v21 = vld [vmem:[#allocation5 + $0xb8] sm:$0xff]  ;;  %v4054_v45 = vld [vmem:[%s5705_s25 + $0x1e0] sm:$0xf] }
  0xf2   : > { %v1236_v18 = vadd.f32 %v1235_v16, %v1146_v61  ;;  %2016 = vmatpush.bf16.msra.mxu3 %v5080_v21  ;;  %v5039_v61 = vld [vmem:[%s5705_s25 + $0x1f0] sm:$0xf0]  ;;  %v5037_v16 = vld [vmem:[%s5705_s25 + $0x1e4] sm:$0xf]  ;;  %v4056_v21 = vld [vmem:[%s5705_s25 + $0x1f4] sm:$0xf0] }
  0xf3   : > { %1185 = vmatmul.bf16.gmra.mxu0 %v5995_v55  ;;  %1383 = vmatmul.bf16.gmra.mxu3 %v5997_v46  ;;  %v4142_v46 = vld [vmem:[%s5705_s25 + $0x288] sm:$0xf]  ;;  %v6023_v44 = vor.u32 %v5039_v61, %v4054_v45  ;;  %v6027_v29 = vor.u32 %v5037_v16, %v4056_v21  ;;  %v4983_v61 = vld [vmem:[%s5705_s25 + $0x34] sm:$0xf]  ;;  %v3850_v16 = vld [vmem:[%s5705_s25 + $0x38] sm:$0xf] }
  0xf4   : > { %1274 = vmatmul.bf16.gmra.mxu1 %v6001_v62  ;;  %v4986_v21 = vld [vmem:[%s5705_s25 + $0x48] sm:$0xf0] }
  0xf5   : > { %1363 = vmatmul.bf16.gmra.mxu2 %v6003_v12  ;;  %v5040_v12 = vld [vmem:[%s5705_s25 + $0x1f8] sm:$0xf0]  ;;  %v6050_v8 = vor.u32 %v4986_v21, %v3850_v16 }
  0xf6   : > { %v6009_v11 = vpop.f32.mrf.mxu3  ;;  %v6029_v30 = vor.u32 %v5040_v12, %v4062_v57 }
  0xf7   : > { %6987 = vst [vmem:[#allocation26_spill] sm:$0xff] %v6050_v8 }
  0xf8   : > { %v1324_v22 = vpop.f32.mrf.mxu2  ;;  %v1148_v14 = vpop.f32.mrf.mxu0  ;;  %6985 = vst [vmem:[#allocation24_spill] sm:$0xff] %v6029_v30 }
  0xf9   : > { %v6011_v24 = vadd.f32 %v1324_v22, %v1236_v18  ;;  %v1237_v25 = vpop.f32.mrf.mxu1 }
  0xfa   : > { %v1238_v27 = vadd.f32 %v1237_v25, %v1148_v14  ;;  %v4143_v14 = vor.u32 %v5100_v40, %v4142_v46 }
  0xfe   : > { %v6021_v18 = vpop.f32.mrf.mxu3 }
 0x100   : > { %v1326_v22 = vpop.f32.mrf.mxu2  ;;  %v1151_v60 = vpop.f32.mrf.mxu0 }
 0x101   : > { %v6025_v25 = vadd.f32 %v1326_v22, %v1238_v27  ;;  %v1240_v23 = vpop.f32.mrf.mxu1  ;;  %v4977_v22 = vld [vmem:[%s5705_s25 + $0x4] sm:$0xf] }
 0x102   : > { %v1241_v38 = vadd.f32 %v1240_v23, %v1151_v60  ;;  %v3844_v60 = vld [vmem:[%s5705_s25 + $0x44] sm:$0xf0]  ;;  %v4316_v23 = vld [vmem:[%s5705_s25 + $0x14] sm:$0xf0] }
 0x103   : > { %1190 = vmatmul.bf16.gmra.mxu0 %v6023_v44  ;;  %1388 = vmatmul.bf16.gmra.mxu3 %v4143_v14  ;;  %v4314_v14 = vld [vmem:[%s5705_s25] sm:$0xf]  ;;  %v4319_v6 = vor.u32 %v4977_v22, %v4316_v23 }
 0x104   : > { %1279 = vmatmul.bf16.gmra.mxu1 %v6027_v29  ;;  %v5228_v23 = vld [vmem:[#allocation5 + $0x2b0] sm:$0xff] }
 0x105   : > { %1368 = vmatmul.bf16.gmra.mxu2 %v6029_v30  ;;  %v6048_v30 = vor.u32 %v4983_v61, %v3844_v60  ;;  %v5079_v61 = vld [vmem:[#allocation5 + $0xb0] sm:$0xff] }
 0x106   : > { %v6034_v40 = vpop.f32.mrf.mxu3  ;;  %2017 = vmatpush.bf16.msra.mxu3 %v5079_v61  ;;  %3117 = vmatpush.bf16.msra.mxu2 %v5228_v23 }
 0x107   : > { %6986 = vst [vmem:[#allocation25_spill] sm:$0xff] %v6048_v30 }
 0x108   : > { %v1329_v46 = vpop.f32.mrf.mxu2  ;;  %v1153_v57 = vpop.f32.mrf.mxu0 }
 0x109   : > { %v6036_v27 = vadd.f32 %v1329_v46, %v1241_v38  ;;  %v1242_v12 = vpop.f32.mrf.mxu1 }
 0x10a   : > { %v1243_v45 = vadd.f32 %v1242_v12, %v1153_v57  ;;  %v4315_v57 = vor.u32 %v4979_v2, %v4314_v14  ;;  %v5087_v14 = vld [vmem:[#allocation5 + $0xf0] sm:$0xff] }
 0x10b   : > { %2106 = vmatpush.bf16.msra.mxu0 %v5087_v14 }
 0x10e   : > { %v6046_v54 = vpop.f32.mrf.mxu3 }
 0x110   : > { %v1331_v20 = vpop.f32.mrf.mxu2  ;;  %v1156_v46 = vpop.f32.mrf.mxu0 }
 0x111   : > { %v6052_v38 = vadd.f32 %v1331_v20, %v1243_v45  ;;  %v1245_v12 = vpop.f32.mrf.mxu1 }
 0x112   : > { %v1246_v53 = vadd.f32 %v1245_v12, %v1156_v46  ;;  %v5095_v46 = vld [vmem:[#allocation5 + $0x130] sm:$0xff]  ;;  %v4988_v12 = vld [vmem:[%s5705_s25 + $0x5c] sm:$0xf] }
 0x113   : > { %1402 = vmatmul.bf16.vlgmr.msrb.gmra.mxu3 %v6048_v30  ;;  %1491 = vmatmul.bf16.vlgmr.msrb.gmra.mxu0 %v6050_v8  ;;  %v3870_v8 = vld [vmem:[%s5705_s25 + $0x60] sm:$0xf] }
 0x114   : > { %1846 = vmatmul.bf16.vlgmr.msrb.gmra.mxu1 %v4315_v57  ;;  %v4991_v57 = vld [vmem:[%s5705_s25 + $0x70] sm:$0xf0] }
 0x115   : > { %1935 = vmatmul.bf16.vlgmr.msrb.gmra.mxu2 %v4319_v6  ;;  %v3864_v6 = vld [vmem:[%s5705_s25 + $0x6c] sm:$0xf0]  ;;  %2195 = vmatpush.bf16.msra.mxu1 %v5095_v46 }
 0x116   : > { %v1285_v60 = vpop.f32.mrf.mxu3 }
 0x117   : > { %v6057_v20 = vadd.f32 %v1285_v60, %v5953_v10 }
 0x118   : > { %v1334_v45 = vpop.f32.mrf.mxu2  ;;  %v1158_v16 = vpop.f32.mrf.mxu0 }
 0x119   : > { %v6059_v2 = vadd.f32 %v1334_v45, %v1246_v53  ;;  %v1247_v21 = vpop.f32.mrf.mxu1  ;;  %v6068_v53 = vor.u32 %v4988_v12, %v3864_v6  ;;  %v6070_v45 = vor.u32 %v4991_v57, %v3870_v8  ;;  %v4993_v57 = vld [vmem:[%s5705_s25 + $0x84] sm:$0xf] }
 0x11a   : > { %v1248_v22 = vadd.f32 %v1247_v21, %v1158_v16 }
 0x11b   : > { %6988 = vst [vmem:[#allocation27_spill] sm:$0xff] %v6068_v53 }
 0x11c   : > { %6989 = vst [vmem:[#allocation28_spill] sm:$0xff] %v6070_v45 }
 0x11e   : > { %v1287_v61 = vpop.f32.mrf.mxu3 }
 0x11f   : > { %v6066_v10 = vadd.f32 %v1287_v61, %v5965_v37  ;;  %v3890_v61 = vld [vmem:[%s5705_s25 + $0x88] sm:$0xf] }
 0x120   : > { %v1336_v60 = vpop.f32.mrf.mxu2  ;;  %v1161_v21 = vpop.f32.mrf.mxu0 }
 0x121   : > { %v6072_v16 = vadd.f32 %v1336_v60, %v1248_v22  ;;  %v1250_v30 = vpop.f32.mrf.mxu1  ;;  %v4996_v60 = vld [vmem:[%s5705_s25 + $0x98] sm:$0xf0] }
 0x122   : > { %v1251_v23 = vadd.f32 %v1250_v30, %v1161_v21  ;;  %v3884_v30 = vld [vmem:[%s5705_s25 + $0x94] sm:$0xf0] }
 0x123   : > { %1407 = vmatmul.bf16.gmra.mxu3 %v6068_v53  ;;  %1496 = vmatmul.bf16.gmra.mxu0 %v6070_v45  ;;  %v6092_v53 = vor.u32 %v4996_v60, %v3890_v61 }
 0x124   : > { %1851 = vmatmul.bf16.gmra.mxu1 %v5769_v33  ;;  %v6090_v33 = vor.u32 %v4993_v57, %v3884_v30 }
 0x125   : > { %1940 = vmatmul.bf16.gmra.mxu2 %v5773_v35  ;;  %6991 = vst [vmem:[#allocation30_spill] sm:$0xff] %v6092_v53 }
 0x126   : > { %v1290_v37 = vpop.f32.mrf.mxu3  ;;  %6990 = vst [vmem:[#allocation29_spill] sm:$0xff] %v6090_v33 }
 0x127   : > { %v6079_v8 = vadd.f32 %v1290_v37, %v5981_v9 }
 0x128   : > { %v1339_v22 = vpop.f32.mrf.mxu2  ;;  %v1163_v46 = vpop.f32.mrf.mxu0 }
 0x129   : > { %v6081_v14 = vadd.f32 %v1339_v22, %v1251_v23  ;;  %v1252_v12 = vpop.f32.mrf.mxu1 }
 0x12a   : > { %v1253_v6 = vadd.f32 %v1252_v12, %v1163_v46 }
 0x12e   : > { %v1292_v21 = vpop.f32.mrf.mxu3 }
 0x12f   : > { %v6088_v45 = vadd.f32 %v1292_v21, %v5993_v42  ;;  %v5078_v42 = vld [vmem:[#allocation5 + $0xa8] sm:$0xff] }
 0x130   : > { %v1341_v35 = vpop.f32.mrf.mxu2  ;;  %v1166_v23 = vpop.f32.mrf.mxu0  ;;  %2018 = vmatpush.bf16.msra.mxu3 %v5078_v42  ;;  %v5227_v21 = vld [vmem:[#allocation5 + $0x2a8] sm:$0xff] }
 0x131   : > { %v6094_v9 = vadd.f32 %v1341_v35, %v1253_v6  ;;  %v1255_v37 = vpop.f32.mrf.mxu1  ;;  %v5086_v35 = vld [vmem:[#allocation5 + $0xe8] sm:$0xff]  ;;  %3118 = vmatpush.bf16.msra.mxu2 %v5227_v21 }
 0x132   : > { %v1256_v22 = vadd.f32 %v1255_v37, %v1166_v23  ;;  %v5094_v23 = vld [vmem:[#allocation5 + $0x128] sm:$0xff]  ;;  %v3904_v37 = vld [vmem:[%s5705_s25 + $0xbc] sm:$0xf0]  ;;  %2107 = vmatpush.bf16.msra.mxu0 %v5086_v35 }
 0x133   : > { %1412 = vmatmul.bf16.gmra.mxu3 %v6090_v33  ;;  %1501 = vmatmul.bf16.gmra.mxu0 %v6092_v53  ;;  %v3910_v53 = vld [vmem:[%s5705_s25 + $0xb0] sm:$0xf] }
 0x134   : > { %1856 = vmatmul.bf16.gmra.mxu1 %v5795_v50  ;;  %v5001_v50 = vld [vmem:[%s5705_s25 + $0xc0] sm:$0xf0] }
 0x135   : > { %1945 = vmatmul.bf16.gmra.mxu2 %v5799_v52  ;;  %v4998_v52 = vld [vmem:[%s5705_s25 + $0xac] sm:$0xf]  ;;  %2196 = vmatpush.bf16.msra.mxu1 %v5094_v23 }
 0x136   : > { %v1295_v46 = vpop.f32.mrf.mxu3 }
 0x137   : > { %v6101_v12 = vadd.f32 %v1295_v46, %v6009_v11 }
 0x138   : > { %v1344_v6 = vpop.f32.mrf.mxu2  ;;  %v1168_v30 = vpop.f32.mrf.mxu0 }
 0x139   : > { %v6103_v57 = vadd.f32 %v1344_v6, %v1256_v22  ;;  %v1257_v61 = vpop.f32.mrf.mxu1  ;;  %v6112_v22 = vor.u32 %v4998_v52, %v3904_v37  ;;  %v6114_v6 = vor.u32 %v5001_v50, %v3910_v53  ;;  %v5003_v50 = vld [vmem:[%s5705_s25 + $0xd4] sm:$0xf] }
 0x13a   : > { %v1258_v60 = vadd.f32 %v1257_v61, %v1168_v30 }
 0x13b   : > { %6992 = vst [vmem:[#allocation31_spill] sm:$0xff] %v6112_v22 }
 0x13c   : > { %6993 = vst [vmem:[#allocation32_spill] sm:$0xff] %v6114_v6 }
 0x13e   : > { %v1297_v42 = vpop.f32.mrf.mxu3 }
 0x13f   : > { %v6110_v11 = vadd.f32 %v1297_v42, %v6021_v18  ;;  %v3930_v42 = vld [vmem:[%s5705_s25 + $0xd8] sm:$0xf] }
 0x140   : > { %v1346_v46 = vpop.f32.mrf.mxu2  ;;  %v1171_v61 = vpop.f32.mrf.mxu0 }
 0x141   : > { %v6116_v30 = vadd.f32 %v1346_v46, %v1258_v60  ;;  %v1260_v33 = vpop.f32.mrf.mxu1  ;;  %v5006_v46 = vld [vmem:[%s5705_s25 + $0xe8] sm:$0xf0] }
 0x142   : > { %v1261_v21 = vadd.f32 %v1260_v33, %v1171_v61  ;;  %v3924_v33 = vld [vmem:[%s5705_s25 + $0xe4] sm:$0xf0] }
 0x143   : > { %1417 = vmatmul.bf16.gmra.mxu3 %v6112_v22  ;;  %1506 = vmatmul.bf16.gmra.mxu0 %v6114_v6  ;;  %v6136_v22 = vor.u32 %v5006_v46, %v3930_v42 }
 0x144   : > { %1861 = vmatmul.bf16.gmra.mxu1 %v5819_v1  ;;  %v6134_v1 = vor.u32 %v5003_v50, %v3924_v33 }
 0x145   : > { %1950 = vmatmul.bf16.gmra.mxu2 %v5824_v4  ;;  %6995 = vst [vmem:[#allocation34_spill] sm:$0xff] %v6136_v22 }
 0x146   : > { %v1300_v18 = vpop.f32.mrf.mxu3  ;;  %6994 = vst [vmem:[#allocation33_spill] sm:$0xff] %v6134_v1 }
 0x147   : > { %v6123_v53 = vadd.f32 %v1300_v18, %v6034_v40 }
 0x148   : > { %v1349_v60 = vpop.f32.mrf.mxu2  ;;  %v1173_v23 = vpop.f32.mrf.mxu0 }
 0x149   : > { %v6125_v35 = vadd.f32 %v1349_v60, %v1261_v21  ;;  %v1262_v52 = vpop.f32.mrf.mxu1 }
 0x14a   : > { %v1263_v37 = vadd.f32 %v1262_v52, %v1173_v23 }
 0x14e   : > { %v1302_v61 = vpop.f32.mrf.mxu3 }
 0x14f   : > { %v6132_v6 = vadd.f32 %v1302_v61, %v6046_v54  ;;  %v5077_v54 = vld [vmem:[#allocation5 + $0xa0] sm:$0xff] }
 0x150   : > { %v1351_v4 = vpop.f32.mrf.mxu2  ;;  %v1176_v21 = vpop.f32.mrf.mxu0  ;;  %2019 = vmatpush.bf16.msra.mxu3 %v5077_v54  ;;  %v5226_v61 = vld [vmem:[#allocation5 + $0x2a0] sm:$0xff] }
 0x151   : > { %v6138_v40 = vadd.f32 %v1351_v4, %v1263_v37  ;;  %v1265_v18 = vpop.f32.mrf.mxu1  ;;  %v5085_v4 = vld [vmem:[#allocation5 + $0xe0] sm:$0xff]  ;;  %3119 = vmatpush.bf16.msra.mxu2 %v5226_v61 }
 0x152   : > { %v1266_v60 = vadd.f32 %v1265_v18, %v1176_v21  ;;  %v5093_v21 = vld [vmem:[#allocation5 + $0x120] sm:$0xff]  ;;  %2108 = vmatpush.bf16.msra.mxu0 %v5085_v4 }
 0x153   : > { %1422 = vmatmul.bf16.gmra.mxu3 %v6134_v1  ;;  %1511 = vmatmul.bf16.gmra.mxu0 %v6136_v22  ;;  %v3944_v18 = vld [vmem:[%s5705_s25 + $0x10c] sm:$0xf0]  ;;  %v3950_v22 = vld [vmem:[%s5705_s25 + $0x100] sm:$0xf] }
 0x154   : > { %1866 = vmatmul.bf16.gmra.mxu1 %v5843_v19  ;;  %v5011_v19 = vld [vmem:[%s5705_s25 + $0x110] sm:$0xf0] }
 0x155   : > { %1955 = vmatmul.bf16.gmra.mxu2 %v5845_v5  ;;  %v5008_v5 = vld [vmem:[%s5705_s25 + $0xfc] sm:$0xf]  ;;  %2197 = vmatpush.bf16.msra.mxu1 %v5093_v21 }
 0x156   : > { %v1374_v23 = vpop.f32.mrf.mxu3 }
 0x157   : > { %v6145_v37 = vadd.f32 %v1374_v23, %v6057_v20  ;;  %v6158_v23 = vor.u32 %v5011_v19, %v3950_v22  ;;  %v3964_v19 = vld [vmem:[%s5705_s25 + $0x134] sm:$0xf0] }
 0x158   : > { %v1354_v52 = vpop.f32.mrf.mxu2  ;;  %v1178_v33 = vpop.f32.mrf.mxu0 }
 0x159   : > { %v6147_v50 = vadd.f32 %v1354_v52, %v1266_v60  ;;  %v1267_v42 = vpop.f32.mrf.mxu1  ;;  %v6156_v60 = vor.u32 %v5008_v5, %v3944_v18  ;;  %6997 = vst [vmem:[#allocation36_spill] sm:$0xff] %v6158_v23  ;;  %v5013_v18 = vld [vmem:[%s5705_s25 + $0x124] sm:$0xf] }
 0x15a   : > { %v1268_v46 = vadd.f32 %v1267_v42, %v1178_v33 }
 0x15b   : > { %6996 = vst [vmem:[#allocation35_spill] sm:$0xff] %v6156_v60 }
 0x15e   : > { %v1376_v54 = vpop.f32.mrf.mxu3 }
 0x15f   : > { %v6154_v20 = vadd.f32 %v1376_v54, %v6066_v10  ;;  %v3970_v54 = vld [vmem:[%s5705_s25 + $0x128] sm:$0xf] }
 0x160   : > { %v1356_v1 = vpop.f32.mrf.mxu2  ;;  %v1181_v33 = vpop.f32.mrf.mxu0 }
 0x161   : > { %v6160_v52 = vadd.f32 %v1356_v1, %v1268_v46  ;;  %v1270_v42 = vpop.f32.mrf.mxu1 }
 0x162   : > { %v1271_v61 = vadd.f32 %v1270_v42, %v1181_v33  ;;  %v5016_v33 = vld [vmem:[%s5705_s25 + $0x138] sm:$0xf0] }
 0x163   : > { %1427 = vmatmul.bf16.gmra.mxu3 %v6156_v60  ;;  %1516 = vmatmul.bf16.gmra.mxu0 %v6158_v23  ;;  %v6180_v60 = vor.u32 %v5016_v33, %v3970_v54  ;;  %v5018_v33 = vld [vmem:[%s5705_s25 + $0x14c] sm:$0xf] }
 0x164   : > { %1871 = vmatmul.bf16.gmra.mxu1 %v5864_v31  ;;  %v6178_v31 = vor.u32 %v5013_v18, %v3964_v19 }
 0x165   : > { %1960 = vmatmul.bf16.gmra.mxu2 %v5868_v32  ;;  %7001 = vst [vmem:[#allocation40_spill] sm:$0xff] %v6180_v60 }
 0x166   : > { %v1379_v10 = vpop.f32.mrf.mxu3  ;;  %7000 = vst [vmem:[#allocation39_spill] sm:$0xff] %v6178_v31 }
 0x167   : > { %v6167_v4 = vadd.f32 %v1379_v10, %v6079_v8 }
 0x168   : > { %v1359_v22 = vpop.f32.mrf.mxu2  ;;  %v1183_v46 = vpop.f32.mrf.mxu0 }
 0x169   : > { %6998 = vst [vmem:[#allocation37_spill] sm:$0xff] %v6167_v4  ;;  %v6169_v1 = vadd.f32 %v1359_v22, %v1271_v61  ;;  %v1272_v21 = vpop.f32.mrf.mxu1 }
 0x16a   : > { %v1273_v5 = vadd.f32 %v1272_v21, %v1183_v46 }
 0x16e   : > { %v1381_v42 = vpop.f32.mrf.mxu3 }
 0x16f   : > { %v6176_v32 = vadd.f32 %v1381_v42, %v6088_v45  ;;  %v5076_v45 = vld [vmem:[#allocation5 + $0x98] sm:$0xff]  ;;  %v3984_v42 = vld [vmem:[%s5705_s25 + $0x15c] sm:$0xf0] }
 0x170   : > { %v1361_v23 = vpop.f32.mrf.mxu2  ;;  %v1186_v61 = vpop.f32.mrf.mxu0  ;;  %2020 = vmatpush.bf16.msra.mxu3 %v5076_v45  ;;  %v6200_v4 = vor.u32 %v5018_v33, %v3984_v42  ;;  %v5023_v42 = vld [vmem:[%s5705_s25 + $0x174] sm:$0xf] }
 0x171   : > { %6999 = vst [vmem:[#allocation38_spill] sm:$0xff] %v6176_v32  ;;  %v6182_v8 = vadd.f32 %v1361_v23, %v1273_v5  ;;  %v1275_v10 = vpop.f32.mrf.mxu1 }
 0x172   : > { %v1276_v22 = vadd.f32 %v1275_v10, %v1186_v61  ;;  %v3990_v61 = vld [vmem:[%s5705_s25 + $0x150] sm:$0xf]  ;;  %v5021_v10 = vld [vmem:[%s5705_s25 + $0x160] sm:$0xf0]  ;;  %7002 = vst [vmem:[#allocation41_spill] sm:$0xff] %v6200_v4 }
 0x173   : > { %1432 = vmatmul.bf16.gmra.mxu3 %v6178_v31  ;;  %1521 = vmatmul.bf16.gmra.mxu0 %v6180_v60  ;;  %v5225_v60 = vld [vmem:[#allocation5 + $0x298] sm:$0xff] }
 0x174   : > { %1876 = vmatmul.bf16.gmra.mxu1 %v5884_v47  ;;  %v5092_v31 = vld [vmem:[#allocation5 + $0x118] sm:$0xff]  ;;  %3120 = vmatpush.bf16.msra.mxu2 %v5225_v60 }
 0x175   : > { %1965 = vmatmul.bf16.gmra.mxu2 %v5888_v49  ;;  %v5084_v49 = vld [vmem:[#allocation5 + $0xd8] sm:$0xff]  ;;  %2198 = vmatpush.bf16.msra.mxu1 %v5092_v31 }
 0x176   : > { %v1384_v46 = vpop.f32.mrf.mxu3  ;;  %2109 = vmatpush.bf16.msra.mxu0 %v5084_v49  ;;  %v5026_v49 = vld [vmem:[%s5705_s25 + $0x188] sm:$0xf0] }
 0x177   : > { %v6189_v21 = vadd.f32 %v1384_v46, %v6101_v12  ;;  %v6202_v12 = vor.u32 %v5021_v10, %v3990_v61  ;;  %v4004_v61 = vld [vmem:[%s5705_s25 + $0x184] sm:$0xf0]  ;;  %v4010_v10 = vld [vmem:[%s5705_s25 + $0x178] sm:$0xf] }
 0x178   : > { %v1364_v23 = vpop.f32.mrf.mxu2  ;;  %v1188_v18 = vpop.f32.mrf.mxu0 }
 0x179   : > { %v6191_v5 = vadd.f32 %v1364_v23, %v1276_v22  ;;  %v1277_v19 = vpop.f32.mrf.mxu1  ;;  %7003 = vst [vmem:[#allocation42_spill] sm:$0xff] %v6202_v12 }
 0x17a   : > { %v1278_v54 = vadd.f32 %v1277_v19, %v1188_v18 }
 0x17e   : > { %v1386_v47 = vpop.f32.mrf.mxu3 }
 0x17f   : > { %v6198_v45 = vadd.f32 %v1386_v47, %v6110_v11 }
 0x180   : > { %v1366_v32 = vpop.f32.mrf.mxu2  ;;  %v1191_v46 = vpop.f32.mrf.mxu0 }
 0x181   : > { %v6204_v22 = vadd.f32 %v1366_v32, %v1278_v54  ;;  %v1280_v23 = vpop.f32.mrf.mxu1 }
 0x182   : > { %v1281_v18 = vadd.f32 %v1280_v23, %v1191_v46  ;;  %v6224_v23 = vor.u32 %v5026_v49, %v4010_v10  ;;  %v5028_v49 = vld [vmem:[%s5705_s25 + $0x19c] sm:$0xf] }
 0x183   : > { %1437 = vmatmul.bf16.gmra.mxu3 %v6200_v4  ;;  %1526 = vmatmul.bf16.gmra.mxu0 %v6202_v12  ;;  %v5091_v4 = vld [vmem:[#allocation5 + $0x110] sm:$0xff] }
 0x184   : > { %1881 = vmatmul.bf16.gmra.mxu1 %v5904_v63  ;;  %v6222_v63 = vor.u32 %v5023_v42, %v4004_v61  ;;  %7007 = vst [vmem:[#allocation46_spill] sm:$0xff] %v6224_v23 }
 0x185   : > { %1970 = vmatmul.bf16.gmra.mxu2 %v5908_v7  ;;  %2199 = vmatpush.bf16.msra.mxu1 %v5091_v4 }
 0x186   : > { %v1389_v11 = vpop.f32.mrf.mxu3  ;;  %7006 = vst [vmem:[#allocation45_spill] sm:$0xff] %v6222_v63 }
 0x187   : > { %v6211_v32 = vadd.f32 %v1389_v11, %v6123_v53 }
 0x188   : > { %v1369_v60 = vpop.f32.mrf.mxu2  ;;  %v1193_v31 = vpop.f32.mrf.mxu0 }
 0x189   : > { %7004 = vst [vmem:[#allocation43_spill] sm:$0xff] %v6211_v32  ;;  %v6213_v19 = vadd.f32 %v1369_v60, %v1281_v18  ;;  %v1282_v54 = vpop.f32.mrf.mxu1 }
 0x18a   : > { %v1283_v33 = vadd.f32 %v1282_v54, %v1193_v31 }
 0x18e   : > { %v1391_v47 = vpop.f32.mrf.mxu3 }
 0x18f   : > { %v6220_v7 = vadd.f32 %v1391_v47, %v6132_v6  ;;  %v5075_v6 = vld [vmem:[#allocation5 + $0x90] sm:$0xff] }
 0x190   : > { %v1371_v46 = vpop.f32.mrf.mxu2  ;;  %v1492_v18 = vpop.f32.mrf.mxu0  ;;  %2021 = vmatpush.bf16.msra.mxu3 %v5075_v6  ;;  %v4024_v47 = vld [vmem:[%s5705_s25 + $0x1ac] sm:$0xf0] }
 0x191   : > { %7005 = vst [vmem:[#allocation44_spill] sm:$0xff] %v6220_v7  ;;  %v6226_v53 = vadd.f32 %v1371_v46, %v1283_v33  ;;  %v1847_v11 = vpop.f32.mrf.mxu1  ;;  %v4030_v46 = vld [vmem:[%s5705_s25 + $0x1a0] sm:$0xf] }
 0x193   : > { %1442 = vmatmul.bf16.gmra.mxu3 %v6222_v63  ;;  %1531 = vmatmul.bf16.gmra.mxu0 %v6224_v23  ;;  %v5031_v63 = vld [vmem:[%s5705_s25 + $0x1b0] sm:$0xf0] }
 0x194   : > { %1886 = vmatmul.bf16.gmra.mxu1 %v5924_v26  ;;  %v5224_v23 = vld [vmem:[#allocation5 + $0x290] sm:$0xff]  ;;  %v6242_v6 = vor.u32 %v5031_v63, %v4030_v46 }
 0x195   : > { %1975 = vmatmul.bf16.gmra.mxu2 %v5926_v28  ;;  %v5083_v28 = vld [vmem:[#allocation5 + $0xd0] sm:$0xff] }
 0x196   : > { %v1403_v60 = vpop.f32.mrf.mxu3  ;;  %3121 = vmatpush.bf16.msra.mxu2 %v5224_v23  ;;  %2110 = vmatpush.bf16.msra.mxu0 %v5083_v28 }
 0x197   : > { %v1404_v31 = vadd.f32 %v1403_v60, %v5955_v13  ;;  %v6240_v13 = vor.u32 %v5028_v49, %v4024_v47  ;;  %v4050_v49 = vld [vmem:[%s5705_s25 + $0x1c8] sm:$0xf]  ;;  %v5036_v47 = vld [vmem:[%s5705_s25 + $0x1d8] sm:$0xf0] }
 0x198   : > { %v1936_v54 = vpop.f32.mrf.mxu2  ;;  %v1494_v33 = vpop.f32.mrf.mxu0 }
 0x199   : > { %v1493_v42 = vadd.f32 %v1492_v18, %v1404_v31  ;;  %v1849_v61 = vpop.f32.mrf.mxu1 }
 0x19b   : > { %v1848_v10 = vadd.f32 %v1847_v11, %v1493_v42 }
 0x19d   : > { %v6237_v12 = vadd.f32 %v1936_v54, %v1848_v10  ;;  %v4044_v10 = vld [vmem:[%s5705_s25 + $0x1d4] sm:$0xf0] }
 0x19e   : > { %v1405_v26 = vpop.f32.mrf.mxu3 }
 0x19f   : > { %v1406_v7 = vadd.f32 %v1405_v26, %v5971_v41  ;;  %v6260_v26 = vor.u32 %v5036_v47, %v4050_v49  ;;  %v4070_v49 = vld [vmem:[%s5705_s25 + $0x1f0] sm:$0xf]  ;;  %v5041_v47 = vld [vmem:[%s5705_s25 + $0x200] sm:$0xf0] }
 0x1a0   : > { %v1938_v32 = vpop.f32.mrf.mxu2  ;;  %v1497_v18 = vpop.f32.mrf.mxu0 }
 0x1a1   : > { %v1495_v11 = vadd.f32 %v1494_v33, %v1406_v7  ;;  %v1852_v60 = vpop.f32.mrf.mxu1 }
 0x1a3   : > { %v1850_v31 = vadd.f32 %v1849_v61, %v1495_v11  ;;  %1447 = vmatmul.bf16.gmra.mxu3 %v6240_v13  ;;  %1536 = vmatmul.bf16.gmra.mxu0 %v6242_v6  ;;  %v5033_v61 = vld [vmem:[%s5705_s25 + $0x1c4] sm:$0xf] }
 0x1a4   : > { %1891 = vmatmul.bf16.gmra.mxu1 %v5941_v56 }
 0x1a5   : > { %1980 = vmatmul.bf16.gmra.mxu2 %v5945_v59  ;;  %v6248_v41 = vadd.f32 %v1938_v32, %v1850_v31  ;;  %v6258_v32 = vor.u32 %v5033_v61, %v4044_v10  ;;  %v5038_v61 = vld [vmem:[%s5705_s25 + $0x1ec] sm:$0xf]  ;;  %v4064_v10 = vld [vmem:[%s5705_s25 + $0x1fc] sm:$0xf0] }
 0x1a6   : > { %v1408_v63 = vpop.f32.mrf.mxu3 }
 0x1a7   : > { %v1409_v4 = vadd.f32 %v1408_v63, %v5983_v15 }
 0x1a8   : > { %v1941_v23 = vpop.f32.mrf.mxu2  ;;  %v1499_v7 = vpop.f32.mrf.mxu0 }
 0x1a9   : > { %v1498_v54 = vadd.f32 %v1497_v18, %v1409_v4  ;;  %v1854_v33 = vpop.f32.mrf.mxu1 }
 0x1ab   : > { %v1853_v42 = vadd.f32 %v1852_v60, %v1498_v54  ;;  %v5074_v60 = vld [vmem:[#allocation5 + $0x88] sm:$0xff] }
 0x1ac   : > { %2022 = vmatpush.bf16.msra.mxu3 %v5074_v60  ;;  %v6278_v60 = vor.u32 %v5041_v47, %v4070_v49  ;;  %v4084_v47 = vld [vmem:[%s5705_s25 + $0x224] sm:$0xf0] }
 0x1ad   : > { %v6255_v46 = vadd.f32 %v1941_v23, %v1853_v42 }
 0x1ae   : > { %v1410_v28 = vpop.f32.mrf.mxu3 }
 0x1af   : > { %v1411_v59 = vadd.f32 %v1410_v28, %v5999_v58 }
 0x1b0   : > { %v1943_v56 = vpop.f32.mrf.mxu2  ;;  %v1502_v15 = vpop.f32.mrf.mxu0 }
 0x1b1   : > { %v1500_v11 = vadd.f32 %v1499_v7, %v1411_v59  ;;  %v1857_v31 = vpop.f32.mrf.mxu1  ;;  %v5090_v59 = vld [vmem:[#allocation5 + $0x108] sm:$0xff] }
 0x1b2   : > { %2200 = vmatpush.bf16.msra.mxu1 %v5090_v59 }
 0x1b3   : > { %v1855_v18 = vadd.f32 %v1854_v33, %v1500_v11  ;;  %1452 = vmatmul.bf16.gmra.mxu3 %v6258_v32  ;;  %1541 = vmatmul.bf16.gmra.mxu0 %v6260_v26 }
 0x1b4   : > { %1896 = vmatmul.bf16.gmra.mxu1 %v5967_v39  ;;  %v5082_v39 = vld [vmem:[#allocation5 + $0xc8] sm:$0xff] }
 0x1b5   : > { %1985 = vmatmul.bf16.gmra.mxu2 %v5973_v43  ;;  %v6266_v58 = vadd.f32 %v1943_v56, %v1855_v18  ;;  %v5223_v43 = vld [vmem:[#allocation5 + $0x288] sm:$0xff]  ;;  %2111 = vmatpush.bf16.msra.mxu0 %v5082_v39 }
 0x1b6   : > { %v1413_v63 = vpop.f32.mrf.mxu3  ;;  %3122 = vmatpush.bf16.msra.mxu2 %v5223_v43  ;;  %v4090_v43 = vld [vmem:[%s5705_s25 + $0x218] sm:$0xf]  ;;  %v5046_v39 = vld [vmem:[%s5705_s25 + $0x228] sm:$0xf0] }
 0x1b7   : > { %v1414_v4 = vadd.f32 %v1413_v63, %v6011_v24  ;;  %v6276_v24 = vor.u32 %v5038_v61, %v4064_v10 }
 0x1b8   : > { %v1946_v23 = vpop.f32.mrf.mxu2  ;;  %v1504_v7 = vpop.f32.mrf.mxu0 }
 0x1b9   : > { %v1503_v54 = vadd.f32 %v1502_v15, %v1414_v4  ;;  %v1859_v33 = vpop.f32.mrf.mxu1 }
 0x1bb   : > { %v1858_v42 = vadd.f32 %v1857_v31, %v1503_v54 }
 0x1bd   : > { %v6273_v28 = vadd.f32 %v1946_v23, %v1858_v42 }
 0x1be   : > { %v1415_v56 = vpop.f32.mrf.mxu3 }
 0x1bf   : > { %v1416_v11 = vadd.f32 %v1415_v56, %v6025_v25 }
 0x1c0   : > { %v1948_v18 = vpop.f32.mrf.mxu2  ;;  %v1507_v15 = vpop.f32.mrf.mxu0 }
 0x1c1   : > { %v1505_v31 = vadd.f32 %v1504_v7, %v1416_v11  ;;  %v1862_v63 = vpop.f32.mrf.mxu1 }
 0x1c3   : > { %v1860_v4 = vadd.f32 %v1859_v33, %v1505_v31  ;;  %1457 = vmatmul.bf16.gmra.mxu3 %v6276_v24  ;;  %1546 = vmatmul.bf16.gmra.mxu0 %v6278_v60  ;;  %v5043_v33 = vld [vmem:[%s5705_s25 + $0x214] sm:$0xf] }
 0x1c4   : > { %1901 = vmatmul.bf16.gmra.mxu1 %v5995_v55  ;;  %v6294_v11 = vor.u32 %v5043_v33, %v4084_v47  ;;  %v5048_v33 = vld [vmem:[%s5705_s25 + $0x23c] sm:$0xf]  ;;  %v4104_v47 = vld [vmem:[%s5705_s25 + $0x24c] sm:$0xf0] }
 0x1c5   : > { %1990 = vmatmul.bf16.gmra.mxu2 %v6001_v62  ;;  %v6284_v25 = vadd.f32 %v1948_v18, %v1860_v4  ;;  %v6296_v18 = vor.u32 %v5046_v39, %v4090_v43  ;;  %v4110_v43 = vld [vmem:[%s5705_s25 + $0x240] sm:$0xf]  ;;  %v5051_v39 = vld [vmem:[%s5705_s25 + $0x250] sm:$0xf0] }
 0x1c6   : > { %v1418_v23 = vpop.f32.mrf.mxu3 }
 0x1c7   : > { %v1419_v54 = vadd.f32 %v1418_v23, %v6036_v27 }
 0x1c8   : > { %v1951_v42 = vpop.f32.mrf.mxu2  ;;  %v1509_v7 = vpop.f32.mrf.mxu0 }
 0x1c9   : > { %v1508_v61 = vadd.f32 %v1507_v15, %v1419_v54  ;;  %v1864_v10 = vpop.f32.mrf.mxu1 }
 0x1cb   : > { %v1863_v49 = vadd.f32 %v1862_v63, %v1508_v61  ;;  %v5073_v63 = vld [vmem:[#allocation5 + $0x80] sm:$0xff] }
 0x1cc   : > { %2023 = vmatpush.bf16.msra.mxu3 %v5073_v63  ;;  %v6314_v63 = vor.u32 %v5051_v39, %v4110_v43  ;;  %v4124_v39 = vld [vmem:[%s5705_s25 + $0x274] sm:$0xf0] }
 0x1cd   : > { %v6291_v59 = vadd.f32 %v1951_v42, %v1863_v49 }
 0x1ce   : > { %v1420_v56 = vpop.f32.mrf.mxu3 }
 0x1cf   : > { %v1421_v62 = vadd.f32 %v1420_v56, %v6052_v38 }
 0x1d0   : > { %v1953_v55 = vpop.f32.mrf.mxu2  ;;  %v1512_v27 = vpop.f32.mrf.mxu0 }
 0x1d1   : > { %v1510_v31 = vadd.f32 %v1509_v7, %v1421_v62  ;;  %v1867_v4 = vpop.f32.mrf.mxu1  ;;  %v5089_v62 = vld [vmem:[#allocation5 + $0x100] sm:$0xff] }
 0x1d2   : > { %2201 = vmatpush.bf16.msra.mxu1 %v5089_v62 }
 0x1d3   : > { %v1865_v15 = vadd.f32 %v1864_v10, %v1510_v31  ;;  %1462 = vmatmul.bf16.gmra.mxu3 %v6294_v11  ;;  %1551 = vmatmul.bf16.gmra.mxu0 %v6296_v18 }
 0x1d4   : > { %1906 = vmatmul.bf16.gmra.mxu1 %v6023_v44  ;;  %v5081_v44 = vld [vmem:[#allocation5 + $0xc0] sm:$0xff] }
 0x1d5   : > { %1995 = vmatmul.bf16.gmra.mxu2 %v6027_v29  ;;  %v6302_v38 = vadd.f32 %v1953_v55, %v1865_v15  ;;  %v5222_v29 = vld [vmem:[#allocation5 + $0x280] sm:$0xff]  ;;  %2112 = vmatpush.bf16.msra.mxu0 %v5081_v44  ;;  %v5056_v44 = vld [vmem:[%s5705_s25 + $0x278] sm:$0xf0] }
 0x1d6   : > { %v1423_v23 = vpop.f32.mrf.mxu3  ;;  %3123 = vmatpush.bf16.msra.mxu2 %v5222_v29  ;;  %v4130_v29 = vld [vmem:[%s5705_s25 + $0x268] sm:$0xf] }
 0x1d7   : > { %v1424_v54 = vadd.f32 %v1423_v23, %v6059_v2  ;;  %v6312_v2 = vor.u32 %v5048_v33, %v4104_v47 }
 0x1d8   : > { %v1956_v42 = vpop.f32.mrf.mxu2  ;;  %v1514_v7 = vpop.f32.mrf.mxu0 }
 0x1d9   : > { %v1513_v61 = vadd.f32 %v1512_v27, %v1424_v54  ;;  %v1869_v10 = vpop.f32.mrf.mxu1 }
 0x1db   : > { %v1868_v49 = vadd.f32 %v1867_v4, %v1513_v61 }
 0x1dd   : > { %v6309_v56 = vadd.f32 %v1956_v42, %v1868_v49 }
 0x1de   : > { %v1425_v55 = vpop.f32.mrf.mxu3 }
 0x1df   : > { %v1426_v31 = vadd.f32 %v1425_v55, %v6072_v16 }
 0x1e0   : > { %v1958_v15 = vpop.f32.mrf.mxu2  ;;  %v1517_v27 = vpop.f32.mrf.mxu0 }
 0x1e1   : > { %v1515_v4 = vadd.f32 %v1514_v7, %v1426_v31  ;;  %v1872_v23 = vpop.f32.mrf.mxu1 }
 0x1e3   : > { %v1870_v54 = vadd.f32 %v1869_v10, %v1515_v4  ;;  %1467 = vmatmul.bf16.gmra.mxu3 %v6312_v2  ;;  %1556 = vmatmul.bf16.gmra.mxu0 %v6314_v63  ;;  %v5053_v10 = vld [vmem:[%s5705_s25 + $0x264] sm:$0xf] }
 0x1e4   : > { %1911 = vmatmul.bf16.gmra.mxu1 %v5771_v34  ;;  %v6330_v31 = vor.u32 %v5053_v10, %v4124_v39  ;;  %v5098_v10 = vld [vmem:[%s5705_s25 + $0x28c] sm:$0xf]  ;;  %v4144_v39 = vld [vmem:[%s5705_s25 + $0x29c] sm:$0xf0] }
 0x1e5   : > { %2000 = vmatmul.bf16.gmra.mxu2 %v5866_v17  ;;  %v6320_v16 = vadd.f32 %v1958_v15, %v1870_v54  ;;  %v6332_v15 = vor.u32 %v5056_v44, %v4130_v29  ;;  %v4150_v29 = vld [vmem:[%s5705_s25 + $0x290] sm:$0xf]  ;;  %v5101_v44 = vld [vmem:[%s5705_s25 + $0x2a0] sm:$0xf0] }
 0x1e6   : > { %v1428_v42 = vpop.f32.mrf.mxu3 }
 0x1e7   : > { %v1429_v61 = vadd.f32 %v1428_v42, %v6081_v14 }
 0x1e8   : > { %v1961_v49 = vpop.f32.mrf.mxu2  ;;  %v1519_v7 = vpop.f32.mrf.mxu0 }
 0x1e9   : > { %v1518_v33 = vadd.f32 %v1517_v27, %v1429_v61  ;;  %v1874_v47 = vpop.f32.mrf.mxu1 }
 0x1eb   : > { %v1873_v43 = vadd.f32 %v1872_v23, %v1518_v33  ;;  %v5237_v23 = vld [vmem:[#allocation5 + $0x2f8] sm:$0xff] }
 0x1ec   : > { %3205 = vmatpush.bf16.msrb.mxu3 %v5237_v23 }
 0x1ed   : > { %v6327_v62 = vadd.f32 %v1961_v49, %v1873_v43 }
 0x1ee   : > { %v1430_v55 = vpop.f32.mrf.mxu3 }
 0x1ef   : > { %v1431_v17 = vadd.f32 %v1430_v55, %v6094_v9 }
 0x1f0   : > { %v1963_v34 = vpop.f32.mrf.mxu2  ;;  %v1522_v14 = vpop.f32.mrf.mxu0 }
 0x1f1   : > { %v1520_v4 = vadd.f32 %v1519_v7, %v1431_v17  ;;  %v1877_v54 = vpop.f32.mrf.mxu1  ;;  %v5253_v17 = vld [vmem:[#allocation5 + $0x378] sm:$0xff] }
 0x1f2   : > { %3383 = vmatpush.bf16.msrb.mxu1 %v5253_v17 }
 0x1f3   : > { %v1875_v27 = vadd.f32 %v1874_v47, %v1520_v4  ;;  %1472 = vmatmul.bf16.gmra.mxu3 %v6330_v31  ;;  %1561 = vmatmul.bf16.gmra.mxu0 %v6332_v15 }
 0x1f4   : > { %1916 = vmatmul.bf16.gmra.mxu1 %v5797_v51  ;;  %v5245_v51 = vld [vmem:[#allocation5 + $0x338] sm:$0xff] }
 0x1f5   : > { %2005 = vmatmul.bf16.gmra.mxu2 %v5886_v48  ;;  %v6338_v9 = vadd.f32 %v1963_v34, %v1875_v27  ;;  %v5261_v48 = vld [vmem:[#allocation5 + $0x3b8] sm:$0xff]  ;;  %3294 = vmatpush.bf16.msrb.mxu0 %v5245_v51  ;;  %v4324_v51 = vld [vmem:[%s5705_s25 + $0x1c] sm:$0xf0] }
 0x1f6   : > { %v1433_v42 = vpop.f32.mrf.mxu3  ;;  %3472 = vmatpush.bf16.msrb.mxu2 %v5261_v48  ;;  %v4978_v48 = vld [vmem:[%s5705_s25 + $0xc] sm:$0xf] }
 0x1f7   : > { %v1434_v61 = vadd.f32 %v1433_v42, %v6103_v57  ;;  %v4147_v57 = vor.u32 %v5098_v10, %v4144_v39  ;;  %v4151_v42 = vor.u32 %v5101_v44, %v4150_v29  ;;  %v4322_v29 = vld [vmem:[%s5705_s25 + $0x8] sm:$0xf]  ;;  %v4980_v44 = vld [vmem:[%s5705_s25 + $0x18] sm:$0xf0] }
 0x1f8   : > { %v1966_v49 = vpop.f32.mrf.mxu2  ;;  %v1524_v7 = vpop.f32.mrf.mxu0 }
 0x1f9   : > { %v1523_v33 = vadd.f32 %v1522_v14, %v1434_v61  ;;  %v1879_v47 = vpop.f32.mrf.mxu1 }
 0x1fb   : > { %v1878_v43 = vadd.f32 %v1877_v54, %v1523_v33 }
 0x1fd   : > { %v6345_v55 = vadd.f32 %v1966_v49, %v1878_v43 }
 0x1fe   : > { %v1435_v34 = vpop.f32.mrf.mxu3 }
 0x1ff   : > { %v1436_v4 = vadd.f32 %v1435_v34, %v6116_v30  ;;  %v4330_v34 = vld [vmem:[%s5705_s25 + $0x10] sm:$0xf] }
 0x200   : > { %v1968_v27 = vpop.f32.mrf.mxu2  ;;  %v1527_v14 = vpop.f32.mrf.mxu0 }
 0x201   : > { %v1525_v54 = vadd.f32 %v1524_v7, %v1436_v4  ;;  %v1882_v23 = vpop.f32.mrf.mxu1  ;;  %v4981_v4 = vld [vmem:[%s5705_s25 + $0x20] sm:$0xf0] }
 0x203   : > { %v1880_v61 = vadd.f32 %v1879_v47, %v1525_v54  ;;  %1477 = vmatmul.bf16.gmra.mxu3 %v4147_v57  ;;  %1566 = vmatmul.bf16.gmra.mxu0 %v4151_v42  ;;  %v4327_v54 = vor.u32 %v4978_v48, %v4324_v51 }
 0x204   : > { %1921 = vmatmul.bf16.gmra.mxu1 %v5821_v3  ;;  %v5144_v3 = vld [vmem:[%s5705_s25 + $0x60] sm:$0xf0] }
 0x205   : > { %2010 = vmatmul.bf16.gmra.mxu2 %v5906_v0  ;;  %v6350_v30 = vadd.f32 %v1968_v27, %v1880_v61  ;;  %v4494_v0 = vld [vmem:[%s5705_s25 + $0x50] sm:$0xf] }
 0x206   : > { %v1438_v49 = vpop.f32.mrf.mxu3 }
 0x207   : > { %v1439_v7 = vadd.f32 %v1438_v49, %v6125_v35  ;;  %v4323_v35 = vor.u32 %v4980_v44, %v4322_v29  ;;  %v4331_v49 = vor.u32 %v4981_v4, %v4330_v34  ;;  %v5260_v34 = vld [vmem:[#allocation5 + $0x3b0] sm:$0xff] }
 0x208   : > { %v1971_v33 = vpop.f32.mrf.mxu2  ;;  %v1529_v43 = vpop.f32.mrf.mxu0  ;;  %v5244_v4 = vld [vmem:[#allocation5 + $0x330] sm:$0xff]  ;;  %3473 = vmatpush.bf16.msrb.mxu2 %v5260_v34 }
 0x209   : > { %v1528_v10 = vadd.f32 %v1527_v14, %v1439_v7  ;;  %v1884_v47 = vpop.f32.mrf.mxu1  ;;  %v4495_v14 = vor.u32 %v5144_v3, %v4494_v0  ;;  %v4514_v0 = vld [vmem:[%s5705_s25 + $0x78] sm:$0xf]  ;;  %v5149_v3 = vld [vmem:[%s5705_s25 + $0x88] sm:$0xf0]  ;;  %3295 = vmatpush.bf16.msrb.mxu0 %v5244_v4 }
 0x20b   : > { %v1883_v39 = vadd.f32 %v1882_v23, %v1528_v10 }
 0x20d   : > { %v6358_v17 = vadd.f32 %v1971_v33, %v1883_v39  ;;  %v5236_v39 = vld [vmem:[#allocation5 + $0x2f0] sm:$0xff] }
 0x20e   : > { %v1440_v27 = vpop.f32.mrf.mxu3  ;;  %3206 = vmatpush.bf16.msrb.mxu3 %v5236_v39 }
 0x20f   : > { %7008 = vst [vmem:[#allocation47_spill] sm:$0xff] %v6358_v17  ;;  %v1441_v57 = vadd.f32 %v1440_v27, %v6138_v40  ;;  %v5252_v27 = vld [vmem:[#allocation5 + $0x370] sm:$0xff] }
 0x210   : > { %v1973_v42 = vpop.f32.mrf.mxu2  ;;  %v1532_v61 = vpop.f32.mrf.mxu0  ;;  %3384 = vmatpush.bf16.msrb.mxu1 %v5252_v27 }
 0x211   : > { %v1530_v23 = vadd.f32 %v1529_v43, %v1441_v57  ;;  %v1887_v7 = vpop.f32.mrf.mxu1 }
 0x213   : > { %v1885_v10 = vadd.f32 %v1884_v47, %v1530_v23  ;;  %2024 = vmatmul.bf16.vlgmr.msra.gmra.mxu3 %v4323_v35  ;;  %2113 = vmatmul.bf16.vlgmr.msra.gmra.mxu0 %v4327_v54  ;;  %v7010_v23 = vld [vmem:[#allocation26_spill] sm:$0xff] }
 0x214   : > { %2202 = vmatmul.bf16.vlgmr.msra.gmra.mxu1 %v4331_v49  ;;  %v7009_v49 = vld [vmem:[#allocation25_spill] sm:$0xff] }
 0x215   : > { %3124 = vmatmul.bf16.vlgmr.msra.gmra.mxu2 %v4495_v14  ;;  %v6364_v33 = vadd.f32 %v1973_v42, %v1885_v10 }
 0x216   : > { %v1443_v17 = vpop.f32.mrf.mxu3 }
 0x217   : > { %v1444_v40 = vadd.f32 %v1443_v17, %v6147_v50  ;;  %v4515_v17 = vor.u32 %v5149_v3, %v4514_v0  ;;  %v5154_v0 = vld [vmem:[%s5705_s25 + $0xb0] sm:$0xf0] }
 0x218   : > { %v1976_v29 = vpop.f32.mrf.mxu2  ;;  %v1534_v44 = vpop.f32.mrf.mxu0 }
 0x219   : > { %v1533_v48 = vadd.f32 %v1532_v61, %v1444_v40  ;;  %v1889_v51 = vpop.f32.mrf.mxu1 }
 0x21b   : > { %v1888_v43 = vadd.f32 %v1887_v7, %v1533_v48 }
 0x21d   : > { %v6369_v47 = vadd.f32 %v1976_v29, %v1888_v43 }
 0x21e   : > { %v1445_v57 = vpop.f32.mrf.mxu3 }
 0x21f   : > { %v1446_v42 = vadd.f32 %v1445_v57, %v6160_v52 }
 0x220   : > { %v1978_v35 = vpop.f32.mrf.mxu2  ;;  %v1537_v50 = vpop.f32.mrf.mxu0 }
 0x221   : > { %v1535_v54 = vadd.f32 %v1534_v44, %v1446_v42  ;;  %v1892_v61 = vpop.f32.mrf.mxu1 }
 0x223   : > { %v1890_v14 = vadd.f32 %v1889_v51, %v1535_v54  ;;  %2029 = vmatmul.bf16.gmra.mxu3 %v5775_v36  ;;  %2118 = vmatmul.bf16.gmra.mxu0 %v7009_v49  ;;  %v4534_v51 = vld [vmem:[%s5705_s25 + $0xa0] sm:$0xf] }
 0x224   : > { %2207 = vmatmul.bf16.gmra.mxu1 %v7010_v23  ;;  %v4535_v27 = vor.u32 %v5154_v0, %v4534_v51  ;;  %v5243_v51 = vld [vmem:[#allocation5 + $0x328] sm:$0xff] }
 0x225   : > { %3129 = vmatmul.bf16.gmra.mxu2 %v4515_v17  ;;  %v6375_v7 = vadd.f32 %v1978_v35, %v1890_v14  ;;  %v7013_v17 = vld [vmem:[#allocation28_spill] sm:$0xff]  ;;  %3296 = vmatpush.bf16.msrb.mxu0 %v5243_v51 }
 0x226   : > { %v1448_v52 = vpop.f32.mrf.mxu3  ;;  %v5251_v0 = vld [vmem:[#allocation5 + $0x368] sm:$0xff] }
 0x227   : > { %v1449_v10 = vadd.f32 %v1448_v52, %v6169_v1  ;;  %v7011_v1 = vld [vmem:[#allocation11_spill] sm:$0xff]  ;;  %3385 = vmatpush.bf16.msrb.mxu1 %v5251_v0 }
 0x228   : > { %v1981_v39 = vpop.f32.mrf.mxu2  ;;  %v1539_v40 = vpop.f32.mrf.mxu0 }
 0x229   : > { %v1538_v29 = vadd.f32 %v1537_v50, %v1449_v10  ;;  %v1894_v44 = vpop.f32.mrf.mxu1  ;;  %v7012_v50 = vld [vmem:[#allocation27_spill] sm:$0xff] }
 0x22b   : > { %v1893_v48 = vadd.f32 %v1892_v61, %v1538_v29  ;;  %v5235_v61 = vld [vmem:[#allocation5 + $0x2e8] sm:$0xff] }
 0x22c   : > { %3207 = vmatpush.bf16.msrb.mxu3 %v5235_v61  ;;  %v5159_v29 = vld [vmem:[%s5705_s25 + $0xd8] sm:$0xf0] }
 0x22d   : > { %v6378_v43 = vadd.f32 %v1981_v39, %v1893_v48  ;;  %v5259_v48 = vld [vmem:[#allocation5 + $0x3a8] sm:$0xff] }
 0x22e   : > { %v1450_v36 = vpop.f32.mrf.mxu3  ;;  %3474 = vmatpush.bf16.msrb.mxu2 %v5259_v48 }
 0x22f   : > { %v1451_v3 = vadd.f32 %v1450_v36, %v6182_v8 }
 0x230   : > { %v1983_v34 = vpop.f32.mrf.mxu2  ;;  %v1542_v4 = vpop.f32.mrf.mxu0 }
 0x231   : > { %v1540_v57 = vadd.f32 %v1539_v40, %v1451_v3  ;;  %v1897_v42 = vpop.f32.mrf.mxu1  ;;  %v4554_v40 = vld [vmem:[%s5705_s25 + $0xc8] sm:$0xf] }
 0x233   : > { %v1895_v35 = vadd.f32 %v1894_v44, %v1540_v57  ;;  %2034 = vmatmul.bf16.gmra.mxu3 %v7011_v1  ;;  %2123 = vmatmul.bf16.gmra.mxu0 %v7012_v50  ;;  %v7015_v1 = vld [vmem:[#allocation29_spill] sm:$0xff]  ;;  %v7016_v50 = vld [vmem:[#allocation30_spill] sm:$0xff] }
 0x234   : > { %2212 = vmatmul.bf16.gmra.mxu1 %v7013_v17 }
 0x235   : > { %3134 = vmatmul.bf16.gmra.mxu2 %v4535_v27  ;;  %v6386_v54 = vadd.f32 %v1983_v34, %v1895_v35  ;;  %v4555_v27 = vor.u32 %v5159_v29, %v4554_v40  ;;  %v7014_v35 = vld [vmem:[#allocation12_spill] sm:$0xff]  ;;  %v5164_v40 = vld [vmem:[%s5705_s25 + $0x100] sm:$0xf0] }
 0x236   : > { %v1453_v14 = vpop.f32.mrf.mxu3 }
 0x237   : > { %v1454_v8 = vadd.f32 %v1453_v14, %v6191_v5 }
 0x238   : > { %v1986_v49 = vpop.f32.mrf.mxu2  ;;  %v1544_v23 = vpop.f32.mrf.mxu0 }
 0x239   : > { %v1543_v52 = vadd.f32 %v1542_v4, %v1454_v8  ;;  %v1899_v10 = vpop.f32.mrf.mxu1 }
 0x23b   : > { %v1898_v39 = vadd.f32 %v1897_v42, %v1543_v52 }
 0x23d   : > { %v6391_v44 = vadd.f32 %v1986_v49, %v1898_v39 }
 0x23e   : > { %v1455_v36 = vpop.f32.mrf.mxu3 }
 0x23f   : > { %v1456_v3 = vadd.f32 %v1455_v36, %v6204_v22 }
 0x240   : > { %v1988_v34 = vpop.f32.mrf.mxu2  ;;  %v1547_v5 = vpop.f32.mrf.mxu0 }
 0x241   : > { %v1545_v57 = vadd.f32 %v1544_v23, %v1456_v3  ;;  %v1902_v4 = vpop.f32.mrf.mxu1 }
 0x243   : > { %v1900_v42 = vadd.f32 %v1899_v10, %v1545_v57  ;;  %2039 = vmatmul.bf16.gmra.mxu3 %v7014_v35  ;;  %2128 = vmatmul.bf16.gmra.mxu0 %v7015_v1  ;;  %v4574_v10 = vld [vmem:[%s5705_s25 + $0xf0] sm:$0xf]  ;;  %v7019_v57 = vld [vmem:[#allocation32_spill] sm:$0xff] }
 0x244   : > { %2217 = vmatmul.bf16.gmra.mxu1 %v7016_v50  ;;  %v4575_v36 = vor.u32 %v5164_v40, %v4574_v10  ;;  %v5242_v10 = vld [vmem:[#allocation5 + $0x320] sm:$0xff] }
 0x245   : > { %3139 = vmatmul.bf16.gmra.mxu2 %v4555_v27  ;;  %v6397_v17 = vadd.f32 %v1988_v34, %v1900_v42  ;;  %v5234_v42 = vld [vmem:[#allocation5 + $0x2e0] sm:$0xff]  ;;  %3297 = vmatpush.bf16.msrb.mxu0 %v5242_v10  ;;  %v7024_v10 = vld [vmem:[#allocation38_spill] sm:$0xff] }
 0x246   : > { %v1458_v22 = vpop.f32.mrf.mxu3  ;;  %3208 = vmatpush.bf16.msrb.mxu3 %v5234_v42  ;;  %v5250_v40 = vld [vmem:[#allocation5 + $0x360] sm:$0xff]  ;;  %v7023_v42 = vld [vmem:[#allocation37_spill] sm:$0xff] }
 0x247   : > { %v1459_v61 = vadd.f32 %v1458_v22, %v6213_v19  ;;  %v7017_v19 = vld [vmem:[#allocation13_spill] sm:$0xff]  ;;  %3386 = vmatpush.bf16.msrb.mxu1 %v5250_v40 }
 0x248   : > { %v1991_v14 = vpop.f32.mrf.mxu2  ;;  %v1549_v8 = vpop.f32.mrf.mxu0 }
 0x249   : > { %v1548_v49 = vadd.f32 %v1547_v5, %v1459_v61  ;;  %v1904_v23 = vpop.f32.mrf.mxu1  ;;  %v7018_v5 = vld [vmem:[#allocation31_spill] sm:$0xff] }
 0x24b   : > { %v1903_v52 = vadd.f32 %v1902_v4, %v1548_v49  ;;  %v5169_v49 = vld [vmem:[%s5705_s25 + $0x128] sm:$0xf0] }
 0x24d   : > { %v6400_v39 = vadd.f32 %v1991_v14, %v1903_v52  ;;  %v5258_v52 = vld [vmem:[#allocation5 + $0x3a0] sm:$0xff] }
 0x24e   : > { %v1460_v29 = vpop.f32.mrf.mxu3  ;;  %3475 = vmatpush.bf16.msrb.mxu2 %v5258_v52 }
 0x24f   : > { %v1461_v48 = vadd.f32 %v1460_v29, %v6226_v53 }
 0x250   : > { %v1993_v51 = vpop.f32.mrf.mxu2  ;;  %v1552_v0 = vpop.f32.mrf.mxu0 }
 0x251   : > { %v1550_v3 = vadd.f32 %v1549_v8, %v1461_v48  ;;  %v1907_v34 = vpop.f32.mrf.mxu1  ;;  %v4594_v8 = vld [vmem:[%s5705_s25 + $0x118] sm:$0xf] }
 0x253   : > { %v1905_v27 = vadd.f32 %v1904_v23, %v1550_v3  ;;  %2044 = vmatmul.bf16.gmra.mxu3 %v7017_v19  ;;  %2133 = vmatmul.bf16.gmra.mxu0 %v7018_v5  ;;  %v7021_v19 = vld [vmem:[#allocation33_spill] sm:$0xff]  ;;  %v7022_v5 = vld [vmem:[#allocation34_spill] sm:$0xff] }
 0x254   : > { %2222 = vmatmul.bf16.gmra.mxu1 %v7019_v57 }
 0x255   : > { %3144 = vmatmul.bf16.gmra.mxu2 %v4575_v36  ;;  %v6408_v4 = vadd.f32 %v1993_v51, %v1905_v27  ;;  %v4595_v36 = vor.u32 %v5169_v49, %v4594_v8  ;;  %v7020_v27 = vld [vmem:[#allocation14_spill] sm:$0xff]  ;;  %v5174_v49 = vld [vmem:[%s5705_s25 + $0x150] sm:$0xf0] }
 0x256   : > { %v1463_v35 = vpop.f32.mrf.mxu3 }
 0x257   : > { %v1464_v53 = vadd.f32 %v1463_v35, %v6145_v37 }
 0x258   : > { %v1996_v1 = vpop.f32.mrf.mxu2  ;;  %v1554_v50 = vpop.f32.mrf.mxu0 }
 0x259   : > { %v1553_v22 = vadd.f32 %v1552_v0, %v1464_v53  ;;  %v1909_v61 = vpop.f32.mrf.mxu1 }
 0x25b   : > { %v1908_v14 = vadd.f32 %v1907_v34, %v1553_v22 }
 0x25d   : > { %v6413_v23 = vadd.f32 %v1996_v1, %v1908_v14 }
 0x25e   : > { %v1465_v29 = vpop.f32.mrf.mxu3 }
 0x25f   : > { %v1466_v48 = vadd.f32 %v1465_v29, %v6154_v20 }
 0x260   : > { %v1998_v51 = vpop.f32.mrf.mxu2  ;;  %v1557_v37 = vpop.f32.mrf.mxu0 }
 0x261   : > { %v1555_v3 = vadd.f32 %v1554_v50, %v1466_v48  ;;  %v1912_v0 = vpop.f32.mrf.mxu1 }
 0x263   : > { %v1910_v34 = vadd.f32 %v1909_v61, %v1555_v3  ;;  %2049 = vmatmul.bf16.gmra.mxu3 %v7020_v27  ;;  %2138 = vmatmul.bf16.gmra.mxu0 %v7021_v19  ;;  %v4614_v61 = vld [vmem:[%s5705_s25 + $0x140] sm:$0xf] }
 0x264   : > { %2227 = vmatmul.bf16.gmra.mxu1 %v7022_v5  ;;  %v7025_v27 = vld [vmem:[#allocation15_spill] sm:$0xff]  ;;  %v5233_v5 = vld [vmem:[#allocation5 + $0x2d8] sm:$0xff] }
 0x265   : > { %3149 = vmatmul.bf16.gmra.mxu2 %v4595_v36  ;;  %v6419_v57 = vadd.f32 %v1998_v51, %v1910_v34  ;;  %v4615_v36 = vor.u32 %v5174_v49, %v4614_v61  ;;  %v7026_v19 = vld [vmem:[#allocation35_spill] sm:$0xff]  ;;  %3209 = vmatpush.bf16.msrb.mxu3 %v5233_v5  ;;  %v5249_v61 = vld [vmem:[#allocation5 + $0x358] sm:$0xff]  ;;  %v7030_v5 = vld [vmem:[#allocation40_spill] sm:$0xff] }
 0x266   : > { %v1468_v20 = vpop.f32.mrf.mxu3  ;;  %3387 = vmatpush.bf16.msrb.mxu1 %v5249_v61 }
 0x267   : > { %v1469_v35 = vadd.f32 %v1468_v20, %v7023_v42 }
 0x268   : > { %v2001_v53 = vpop.f32.mrf.mxu2  ;;  %v1559_v1 = vpop.f32.mrf.mxu0 }
 0x269   : > { %v1558_v22 = vadd.f32 %v1557_v37, %v1469_v35  ;;  %v1914_v50 = vpop.f32.mrf.mxu1  ;;  %v7027_v37 = vld [vmem:[#allocation36_spill] sm:$0xff] }
 0x26b   : > { %v1913_v14 = vadd.f32 %v1912_v0, %v1558_v22 }
 0x26d   : > { %v6422_v8 = vadd.f32 %v2001_v53, %v1913_v14  ;;  %v5241_v14 = vld [vmem:[#allocation5 + $0x318] sm:$0xff] }
 0x26e   : > { %v1470_v52 = vpop.f32.mrf.mxu3  ;;  %3298 = vmatpush.bf16.msrb.mxu0 %v5241_v14 }
 0x26f   : > { %v1471_v40 = vadd.f32 %v1470_v52, %v7024_v10  ;;  %v4634_v10 = vld [vmem:[%s5705_s25 + $0x168] sm:$0xf] }
 0x270   : > { %v2003_v29 = vpop.f32.mrf.mxu2  ;;  %v1562_v48 = vpop.f32.mrf.mxu0 }
 0x271   : > { %v1560_v51 = vadd.f32 %v1559_v1, %v1471_v40  ;;  %v1917_v3 = vpop.f32.mrf.mxu1  ;;  %v5179_v40 = vld [vmem:[%s5705_s25 + $0x178] sm:$0xf0] }
 0x273   : > { %v1915_v34 = vadd.f32 %v1914_v50, %v1560_v51  ;;  %2054 = vmatmul.bf16.gmra.mxu3 %v7025_v27  ;;  %2143 = vmatmul.bf16.gmra.mxu0 %v7026_v19  ;;  %v5257_v50 = vld [vmem:[#allocation5 + $0x398] sm:$0xff] }
 0x274   : > { %2232 = vmatmul.bf16.gmra.mxu1 %v7027_v37  ;;  %3476 = vmatpush.bf16.msrb.mxu2 %v5257_v50  ;;  %v7028_v37 = vld [vmem:[#allocation16_spill] sm:$0xff] }
 0x275   : > { %3154 = vmatmul.bf16.gmra.mxu2 %v4615_v36  ;;  %v6430_v0 = vadd.f32 %v2003_v29, %v1915_v34  ;;  %v4635_v34 = vor.u32 %v5179_v40, %v4634_v10  ;;  %v5184_v10 = vld [vmem:[%s5705_s25 + $0x1a0] sm:$0xf0] }
 0x276   : > { %v1473_v20 = vpop.f32.mrf.mxu3 }
 0x277   : > { %v1474_v42 = vadd.f32 %v1473_v20, %v6189_v21 }
 0x278   : > { %v2006_v35 = vpop.f32.mrf.mxu2  ;;  %v1564_v53 = vpop.f32.mrf.mxu0 }
 0x279   : > { %v1563_v1 = vadd.f32 %v1562_v48, %v1474_v42  ;;  %v1919_v22 = vpop.f32.mrf.mxu1 }
 0x27b   : > { %v1918_v49 = vadd.f32 %v1917_v3, %v1563_v1  ;;  %v7029_v3 = vld [vmem:[#allocation39_spill] sm:$0xff] }
 0x27d   : > { %v6433_v52 = vadd.f32 %v2006_v35, %v1918_v49  ;;  %v7031_v35 = vld [vmem:[#allocation43_spill] sm:$0xff] }
 0x27e   : > { %v1475_v29 = vpop.f32.mrf.mxu3 }
 0x27f   : > { %v1476_v36 = vadd.f32 %v1475_v29, %v6198_v45  ;;  %v7032_v29 = vld [vmem:[#allocation44_spill] sm:$0xff] }
 0x280   : > { %v2008_v21 = vpop.f32.mrf.mxu2  ;;  %v1567_v51 = vpop.f32.mrf.mxu0 }
 0x281   : > { %v1565_v27 = vadd.f32 %v1564_v53, %v1476_v36  ;;  %v1922_v48 = vpop.f32.mrf.mxu1 }
 0x283   : > { %v1920_v19 = vadd.f32 %v1919_v22, %v1565_v27  ;;  %2059 = vmatmul.bf16.gmra.mxu3 %v7028_v37  ;;  %2148 = vmatmul.bf16.gmra.mxu0 %v7029_v3  ;;  %v4654_v22 = vld [vmem:[%s5705_s25 + $0x190] sm:$0xf] }
 0x284   : > { %2237 = vmatmul.bf16.gmra.mxu1 %v7030_v5  ;;  %v4655_v37 = vor.u32 %v5184_v10, %v4654_v22  ;;  %v7033_v5 = vld [vmem:[#allocation17_spill] sm:$0xff] }
 0x285   : > { %3159 = vmatmul.bf16.gmra.mxu2 %v4635_v34  ;;  %v6441_v20 = vadd.f32 %v2008_v21, %v1920_v19  ;;  %v5256_v22 = vld [vmem:[#allocation5 + $0x390] sm:$0xff] }
 0x286   : > { %v1478_v42 = vpop.f32.mrf.mxu3  ;;  %v5240_v10 = vld [vmem:[#allocation5 + $0x310] sm:$0xff]  ;;  %3477 = vmatpush.bf16.msrb.mxu2 %v5256_v22 }
 0x287   : > { %v1479_v45 = vadd.f32 %v1478_v42, %v7031_v35  ;;  %v7034_v42 = vld [vmem:[#allocation41_spill] sm:$0xff]  ;;  %3299 = vmatpush.bf16.msrb.mxu0 %v5240_v10 }
 0x288   : > { %v2011_v1 = vpop.f32.mrf.mxu2  ;;  %v1569_v50 = vpop.f32.mrf.mxu0 }
 0x289   : > { %v1568_v14 = vadd.f32 %v1567_v51, %v1479_v45  ;;  %v1924_v53 = vpop.f32.mrf.mxu1  ;;  %v7035_v51 = vld [vmem:[#allocation42_spill] sm:$0xff] }
 0x28b   : > { %v1923_v61 = vadd.f32 %v1922_v48, %v1568_v14  ;;  %v5232_v48 = vld [vmem:[#allocation5 + $0x2d0] sm:$0xff] }
 0x28c   : > { %3210 = vmatpush.bf16.msrb.mxu3 %v5232_v48  ;;  %v7037_v48 = vld [vmem:[#allocation45_spill] sm:$0xff] }
 0x28d   : > { %v6444_v49 = vadd.f32 %v2011_v1, %v1923_v61 }
 0x28e   : > { %v1480_v40 = vpop.f32.mrf.mxu3 }
 0x28f   : > { %v1481_v36 = vadd.f32 %v1480_v40, %v7032_v29  ;;  %v5248_v40 = vld [vmem:[#allocation5 + $0x350] sm:$0xff] }
 0x290   : > { %v2013_v34 = vpop.f32.mrf.mxu2  ;;  %v2114_v27 = vpop.f32.mrf.mxu0  ;;  %3388 = vmatpush.bf16.msrb.mxu1 %v5248_v40 }
 0x291   : > { %v1570_v21 = vadd.f32 %v1569_v50, %v1481_v36  ;;  %v2203_v19 = vpop.f32.mrf.mxu1  ;;  %v4674_v36 = vld [vmem:[%s5705_s25 + $0x1b8] sm:$0xf] }
 0x293   : > { %v1925_v3 = vadd.f32 %v1924_v53, %v1570_v21  ;;  %2064 = vmatmul.bf16.gmra.mxu3 %v7033_v5  ;;  %2153 = vmatmul.bf16.gmra.mxu0 %v7034_v42 }
 0x294   : > { %2242 = vmatmul.bf16.gmra.mxu1 %v7035_v51  ;;  %v7036_v51 = vld [vmem:[#allocation19_spill] sm:$0xff] }
 0x295   : > { %3164 = vmatmul.bf16.gmra.mxu2 %v4655_v37  ;;  %v6452_v35 = vadd.f32 %v2013_v34, %v1925_v3  ;;  %v5189_v34 = vld [vmem:[%s5705_s25 + $0x1c8] sm:$0xf0] }
 0x296   : > { %v2025_v45 = vpop.f32.mrf.mxu3  ;;  %v4675_v5 = vor.u32 %v5189_v34, %v4674_v36  ;;  %v5194_v34 = vld [vmem:[%s5705_s25 + $0x1f0] sm:$0xf0] }
 0x297   : > { %v2026_v1 = vadd.f32 %v2025_v45, %v6237_v12  ;;  %v7038_v45 = vld [vmem:[#allocation46_spill] sm:$0xff] }
 0x298   : > { %v6455_v14 = vpop.f32.mrf.mxu2  ;;  %v2116_v50 = vpop.f32.mrf.mxu0 }
 0x299   : > { %v2115_v53 = vadd.f32 %v2114_v27, %v2026_v1  ;;  %v2205_v61 = vpop.f32.mrf.mxu1 }
 0x29b   : > { %v6457_v29 = vadd.f32 %v2203_v19, %v2115_v53 }
 0x29e   : > { %v2027_v37 = vpop.f32.mrf.mxu3 }
 0x29f   : > { %v2028_v21 = vadd.f32 %v2027_v37, %v6248_v41 }
 0x2a0   : > { %v6462_v3 = vpop.f32.mrf.mxu2  ;;  %v2119_v12 = vpop.f32.mrf.mxu0 }
 0x2a1   : > { %v2117_v27 = vadd.f32 %v2116_v50, %v2028_v21  ;;  %v2208_v42 = vpop.f32.mrf.mxu1  ;;  %v4694_v50 = vld [vmem:[%s5705_s25 + $0x1e0] sm:$0xf] }
 0x2a3   : > { %2069 = vmatmul.bf16.gmra.mxu3 %v7036_v51  ;;  %2158 = vmatmul.bf16.gmra.mxu0 %v7037_v48  ;;  %v6466_v19 = vadd.f32 %v2205_v61, %v2117_v27  ;;  %v4695_v27 = vor.u32 %v5194_v34, %v4694_v50  ;;  %v5255_v50 = vld [vmem:[#allocation5 + $0x388] sm:$0xff] }
 0x2a4   : > { %2247 = vmatmul.bf16.gmra.mxu1 %v7038_v45  ;;  %v7039_v45 = vld [vmem:[#allocation21_spill] sm:$0xff]  ;;  %v5239_v34 = vld [vmem:[#allocation5 + $0x308] sm:$0xff]  ;;  %3478 = vmatpush.bf16.msrb.mxu2 %v5255_v50 }
 0x2a5   : > { %3169 = vmatmul.bf16.gmra.mxu2 %v4675_v5  ;;  %3300 = vmatpush.bf16.msrb.mxu0 %v5239_v34 }
 0x2a6   : > { %v2030_v1 = vpop.f32.mrf.mxu3 }
 0x2a7   : > { %v2031_v41 = vadd.f32 %v2030_v1, %v6255_v46 }
 0x2a8   : > { %v6470_v53 = vpop.f32.mrf.mxu2  ;;  %v2121_v22 = vpop.f32.mrf.mxu0 }
 0x2a9   : > { %v2120_v10 = vadd.f32 %v2119_v12, %v2031_v41  ;;  %v2210_v40 = vpop.f32.mrf.mxu1  ;;  %v5231_v12 = vld [vmem:[#allocation5 + $0x2c8] sm:$0xff] }
 0x2aa   : > { %3211 = vmatpush.bf16.msrb.mxu3 %v5231_v12 }
 0x2ab   : > { %v6472_v36 = vadd.f32 %v2208_v42, %v2120_v10 }
 0x2ae   : > { %v2032_v37 = vpop.f32.mrf.mxu3 }
 0x2af   : > { %v2033_v21 = vadd.f32 %v2032_v37, %v6266_v58  ;;  %v5199_v37 = vld [vmem:[%s5705_s25 + $0x218] sm:$0xf0] }
 0x2b0   : > { %v6477_v61 = vpop.f32.mrf.mxu2  ;;  %v2124_v5 = vpop.f32.mrf.mxu0 }
 0x2b1   : > { %v2122_v51 = vadd.f32 %v2121_v22, %v2033_v21  ;;  %v2213_v48 = vpop.f32.mrf.mxu1 }
 0x2b3   : > { %2074 = vmatmul.bf16.gmra.mxu3 %v7039_v45  ;;  %2163 = vmatmul.bf16.gmra.mxu0 %v6240_v13  ;;  %v6481_v46 = vadd.f32 %v2210_v40, %v2122_v51  ;;  %v5247_v13 = vld [vmem:[#allocation5 + $0x348] sm:$0xff] }
 0x2b4   : > { %2252 = vmatmul.bf16.gmra.mxu1 %v6242_v6  ;;  %v4714_v6 = vld [vmem:[%s5705_s25 + $0x208] sm:$0xf] }
 0x2b5   : > { %3174 = vmatmul.bf16.gmra.mxu2 %v4695_v27  ;;  %3389 = vmatpush.bf16.msrb.mxu1 %v5247_v13  ;;  %v4715_v45 = vor.u32 %v5199_v37, %v4714_v6  ;;  %v5204_v37 = vld [vmem:[%s5705_s25 + $0x240] sm:$0xf0] }
 0x2b6   : > { %v2035_v42 = vpop.f32.mrf.mxu3 }
 0x2b7   : > { %v2036_v58 = vadd.f32 %v2035_v42, %v6273_v28  ;;  %v7040_v42 = vld [vmem:[#allocation23_spill] sm:$0xff] }
 0x2b8   : > { %v6485_v1 = vpop.f32.mrf.mxu2  ;;  %v2126_v41 = vpop.f32.mrf.mxu0 }
 0x2b9   : > { %v2125_v22 = vadd.f32 %v2124_v5, %v2036_v58  ;;  %v2215_v10 = vpop.f32.mrf.mxu1 }
 0x2bb   : > { %v6487_v40 = vadd.f32 %v2213_v48, %v2125_v22 }
 0x2be   : > { %v2037_v21 = vpop.f32.mrf.mxu3 }
 0x2bf   : > { %v2038_v27 = vadd.f32 %v2037_v21, %v6284_v25 }
 0x2c0   : > { %v6492_v51 = vpop.f32.mrf.mxu2  ;;  %v2129_v28 = vpop.f32.mrf.mxu0 }
 0x2c1   : > { %v2127_v5 = vadd.f32 %v2126_v41, %v2038_v27  ;;  %v2218_v12 = vpop.f32.mrf.mxu1  ;;  %v4734_v41 = vld [vmem:[%s5705_s25 + $0x230] sm:$0xf] }
 0x2c3   : > { %2079 = vmatmul.bf16.gmra.mxu3 %v7040_v42  ;;  %2168 = vmatmul.bf16.gmra.mxu0 %v6258_v32  ;;  %v6496_v48 = vadd.f32 %v2215_v10, %v2127_v5  ;;  %v7041_v42 = vld [vmem:[#allocation24_spill] sm:$0xff] }
 0x2c4   : > { %2257 = vmatmul.bf16.gmra.mxu1 %v6260_v26 }
 0x2c5   : > { %3179 = vmatmul.bf16.gmra.mxu2 %v4715_v45  ;;  %v4735_v45 = vor.u32 %v5204_v37, %v4734_v41  ;;  %v5254_v41 = vld [vmem:[#allocation5 + $0x380] sm:$0xff] }
 0x2c6   : > { %v2040_v58 = vpop.f32.mrf.mxu3  ;;  %v5238_v37 = vld [vmem:[#allocation5 + $0x300] sm:$0xff]  ;;  %3479 = vmatpush.bf16.msrb.mxu2 %v5254_v41 }
 0x2c7   : > { %v2041_v25 = vadd.f32 %v2040_v58, %v6291_v59  ;;  %3301 = vmatpush.bf16.msrb.mxu0 %v5238_v37 }
 0x2c8   : > { %v6500_v22 = vpop.f32.mrf.mxu2  ;;  %v2131_v50 = vpop.f32.mrf.mxu0 }
 0x2c9   : > { %v2130_v34 = vadd.f32 %v2129_v28, %v2041_v25  ;;  %v2220_v13 = vpop.f32.mrf.mxu1  ;;  %v5230_v28 = vld [vmem:[#allocation5 + $0x2c0] sm:$0xff] }
 0x2ca   : > { %3212 = vmatpush.bf16.msrb.mxu3 %v5230_v28 }
 0x2cb   : > { %v6502_v6 = vadd.f32 %v2218_v12, %v2130_v34 }
 0x2ce   : > { %v2042_v21 = vpop.f32.mrf.mxu3 }
 0x2cf   : > { %v2043_v32 = vadd.f32 %v2042_v21, %v6302_v38  ;;  %v5209_v21 = vld [vmem:[%s5705_s25 + $0x268] sm:$0xf0] }
 0x2d0   : > { %v6507_v10 = vpop.f32.mrf.mxu2  ;;  %v2134_v27 = vpop.f32.mrf.mxu0 }
 0x2d1   : > { %v2132_v26 = vadd.f32 %v2131_v50, %v2043_v32  ;;  %v2223_v5 = vpop.f32.mrf.mxu1 }
 0x2d3   : > { %2084 = vmatmul.bf16.gmra.mxu3 %v7041_v42  ;;  %2173 = vmatmul.bf16.gmra.mxu0 %v6276_v24  ;;  %v6511_v59 = vadd.f32 %v2220_v13, %v2132_v26  ;;  %v5246_v24 = vld [vmem:[#allocation5 + $0x340] sm:$0xff] }
 0x2d4   : > { %2262 = vmatmul.bf16.gmra.mxu1 %v6278_v60  ;;  %v4754_v60 = vld [vmem:[%s5705_s25 + $0x258] sm:$0xf] }
 0x2d5   : > { %3184 = vmatmul.bf16.gmra.mxu2 %v4735_v45  ;;  %3390 = vmatpush.bf16.msrb.mxu1 %v5246_v24  ;;  %v4755_v42 = vor.u32 %v5209_v21, %v4754_v60  ;;  %v5214_v21 = vld [vmem:[%s5705_s25 + $0x290] sm:$0xf0] }
 0x2d6   : > { %v2045_v12 = vpop.f32.mrf.mxu3 }
 0x2d7   : > { %v2046_v38 = vadd.f32 %v2045_v12, %v6309_v56  ;;  %v7042_v12 = vld [vmem:[#allocation18_spill] sm:$0xff] }
 0x2d8   : > { %v6515_v58 = vpop.f32.mrf.mxu2  ;;  %v2136_v25 = vpop.f32.mrf.mxu0 }
 0x2d9   : > { %v2135_v50 = vadd.f32 %v2134_v27, %v2046_v38  ;;  %v2225_v34 = vpop.f32.mrf.mxu1 }
 0x2db   : > { %v6517_v13 = vadd.f32 %v2223_v5, %v2135_v50 }
 0x2de   : > { %v2047_v32 = vpop.f32.mrf.mxu3 }
 0x2df   : > { %v2048_v45 = vadd.f32 %v2047_v32, %v6320_v16 }
 0x2e0   : > { %v6522_v26 = vpop.f32.mrf.mxu2  ;;  %v2139_v56 = vpop.f32.mrf.mxu0 }
 0x2e1   : > { %v2137_v27 = vadd.f32 %v2136_v25, %v2048_v45  ;;  %v2228_v28 = vpop.f32.mrf.mxu1  ;;  %v4774_v25 = vld [vmem:[%s5705_s25 + $0x280] sm:$0xf] }
 0x2e3   : > { %2089 = vmatmul.bf16.gmra.mxu3 %v7042_v12  ;;  %2178 = vmatmul.bf16.gmra.mxu0 %v6294_v11  ;;  %v6526_v5 = vadd.f32 %v2225_v34, %v2137_v27  ;;  %v7043_v27 = vld [vmem:[#allocation20_spill] sm:$0xff] }
 0x2e4   : > { %2267 = vmatmul.bf16.gmra.mxu1 %v6296_v18  ;;  %v4775_v18 = vor.u32 %v5214_v21, %v4774_v25  ;;  %v5219_v21 = vld [vmem:[%s5705_s25 + $0x2b8] sm:$0xf0] }
 0x2e5   : > { %3189 = vmatmul.bf16.gmra.mxu2 %v4755_v42 }
 0x2e6   : > { %v2050_v38 = vpop.f32.mrf.mxu3 }
 0x2e7   : > { %v2051_v16 = vadd.f32 %v2050_v38, %v6327_v62 }
 0x2e8   : > { %v6530_v50 = vpop.f32.mrf.mxu2  ;;  %v2141_v41 = vpop.f32.mrf.mxu0 }
 0x2e9   : > { %v2140_v37 = vadd.f32 %v2139_v56, %v2051_v16  ;;  %v2230_v24 = vpop.f32.mrf.mxu1 }
 0x2eb   : > { %v6532_v60 = vadd.f32 %v2228_v28, %v2140_v37 }
 0x2ee   : > { %v2052_v32 = vpop.f32.mrf.mxu3 }
 0x2ef   : > { %v2053_v11 = vadd.f32 %v2052_v32, %v6338_v9 }
 0x2f0   : > { %v6537_v34 = vpop.f32.mrf.mxu2  ;;  %v2144_v45 = vpop.f32.mrf.mxu0 }
 0x2f1   : > { %v2142_v42 = vadd.f32 %v2141_v41, %v2053_v11  ;;  %v2233_v62 = vpop.f32.mrf.mxu1  ;;  %v4794_v41 = vld [vmem:[%s5705_s25 + $0x2a8] sm:$0xf] }
 0x2f3   : > { %2094 = vmatmul.bf16.gmra.mxu3 %v7043_v27  ;;  %2183 = vmatmul.bf16.gmra.mxu0 %v6312_v2  ;;  %v6541_v56 = vadd.f32 %v2230_v24, %v2142_v42  ;;  %v7045_v42 = vld [vmem:[#allocation22_spill] sm:$0xff] }
 0x2f4   : > { %2272 = vmatmul.bf16.gmra.mxu1 %v6314_v63  ;;  %v4795_v63 = vor.u32 %v5219_v21, %v4794_v41  ;;  %v5142_v41 = vld [vmem:[%s5705_s25 + $0x54] sm:$0xf]  ;;  %v4496_v21 = vld [vmem:[%s5705_s25 + $0x64] sm:$0xf0] }
 0x2f5   : > { %3194 = vmatmul.bf16.gmra.mxu2 %v4775_v18 }
 0x2f6   : > { %v2055_v28 = vpop.f32.mrf.mxu3 }
 0x2f7   : > { %v2056_v9 = vadd.f32 %v2055_v28, %v6345_v55 }
 0x2f8   : > { %v6545_v12 = vpop.f32.mrf.mxu2  ;;  %v2146_v38 = vpop.f32.mrf.mxu0 }
 0x2f9   : > { %v2145_v16 = vadd.f32 %v2144_v45, %v2056_v9  ;;  %v2235_v37 = vpop.f32.mrf.mxu1 }
 0x2fb   : > { %v6547_v25 = vadd.f32 %v2233_v62, %v2145_v16  ;;  %v7047_v62 = vld [vmem:[#allocation47_spill] sm:$0xff] }
 0x2fd   : > { %7044 = vst [vmem:[#allocation25_spill] sm:$0xff] %v6547_v25 }
 0x2fe   : > { %v2057_v32 = vpop.f32.mrf.mxu3 }
 0x2ff   : > { %v2058_v2 = vadd.f32 %v2057_v32, %v6350_v30 }
 0x300   : > { %v6552_v24 = vpop.f32.mrf.mxu2  ;;  %v2149_v11 = vpop.f32.mrf.mxu0 }
 0x301   : > { %v2147_v18 = vadd.f32 %v2146_v38, %v2058_v2  ;;  %v2238_v55 = vpop.f32.mrf.mxu1  ;;  %v4510_v2 = vld [vmem:[%s5705_s25 + $0x60] sm:$0xf] }
 0x303   : > { %2099 = vmatmul.bf16.gmra.mxu3 %v7045_v42  ;;  %2188 = vmatmul.bf16.gmra.mxu0 %v6330_v31  ;;  %v6556_v45 = vadd.f32 %v2235_v37, %v2147_v18  ;;  %v4502_v31 = vld [vmem:[%s5705_s25 + $0x58] sm:$0xf]  ;;  %v5145_v37 = vld [vmem:[%s5705_s25 + $0x68] sm:$0xf0]  ;;  %v5146_v18 = vld [vmem:[%s5705_s25 + $0x70] sm:$0xf0] }
 0x304   : > { %2277 = vmatmul.bf16.gmra.mxu1 %v6332_v15  ;;  %v4504_v42 = vld [vmem:[%s5705_s25 + $0x6c] sm:$0xf0] }
 0x305   : > { %7046 = vst [vmem:[#allocation26_spill] sm:$0xff] %v6556_v45  ;;  %3199 = vmatmul.bf16.gmra.mxu2 %v4795_v63  ;;  %v5143_v63 = vld [vmem:[%s5705_s25 + $0x5c] sm:$0xf] }
 0x306   : > { %v2060_v30 = vpop.f32.mrf.mxu3 }
 0x307   : > { %v2061_v27 = vadd.f32 %v2060_v30, %v7047_v62  ;;  %v4499_v30 = vor.u32 %v5142_v41, %v4496_v21  ;;  %v4503_v62 = vor.u32 %v5145_v37, %v4502_v31  ;;  %v5147_v37 = vld [vmem:[%s5705_s25 + $0x7c] sm:$0xf] }
 0x308   : > { %v6560_v28 = vpop.f32.mrf.mxu2  ;;  %v2151_v9 = vpop.f32.mrf.mxu0 }
 0x309   : > { %7048 = vst [vmem:[#allocation11_spill] sm:$0xff] %v6560_v28  ;;  %v2150_v38 = vadd.f32 %v2149_v11, %v2061_v27  ;;  %v2240_v16 = vpop.f32.mrf.mxu1  ;;  %v4511_v11 = vor.u32 %v5146_v18, %v4510_v2  ;;  %v4507_v27 = vor.u32 %v5143_v63, %v4504_v42  ;;  %v4516_v2 = vld [vmem:[%s5705_s25 + $0x8c] sm:$0xf0]  ;;  %v4522_v63 = vld [vmem:[%s5705_s25 + $0x80] sm:$0xf] }
 0x30a   : > { %v5150_v42 = vld [vmem:[%s5705_s25 + $0x90] sm:$0xf0] }
 0x30b   : > { %v6564_v32 = vadd.f32 %v2238_v55, %v2150_v38 }
 0x30d   : > { %7049 = vst [vmem:[#allocation27_spill] sm:$0xff] %v6564_v32 }
 0x30e   : > { %v2062_v45 = vpop.f32.mrf.mxu3 }
 0x30f   : > { %v2063_v15 = vadd.f32 %v2062_v45, %v6364_v33 }
 0x310   : > { %v6573_v25 = vpop.f32.mrf.mxu2  ;;  %v2154_v28 = vpop.f32.mrf.mxu0 }
 0x311   : > { %v2152_v55 = vadd.f32 %v2151_v9, %v2063_v15  ;;  %v2243_v38 = vpop.f32.mrf.mxu1  ;;  %v5151_v15 = vld [vmem:[%s5705_s25 + $0x98] sm:$0xf0] }
 0x313   : > { %3213 = vmatmul.bf16.vlgmr.msrb.gmra.mxu3 %v4499_v30  ;;  %3302 = vmatmul.bf16.vlgmr.msrb.gmra.mxu0 %v4503_v62  ;;  %v6575_v32 = vadd.f32 %v2240_v16, %v2152_v55  ;;  %v4530_v16 = vld [vmem:[%s5705_s25 + $0x88] sm:$0xf]  ;;  %v5148_v30 = vld [vmem:[%s5705_s25 + $0x84] sm:$0xf]  ;;  %v4524_v62 = vld [vmem:[%s5705_s25 + $0x94] sm:$0xf0] }
 0x314   : > { %3391 = vmatmul.bf16.vlgmr.msrb.gmra.mxu1 %v4507_v27 }
 0x315   : > { %3480 = vmatmul.bf16.vlgmr.msrb.gmra.mxu2 %v4511_v11 }
 0x316   : > { %v2065_v33 = vpop.f32.mrf.mxu3 }
 0x317   : > { %v2066_v45 = vadd.f32 %v2065_v33, %v6369_v47  ;;  %v4519_v47 = vor.u32 %v5147_v37, %v4516_v2  ;;  %v4523_v33 = vor.u32 %v5150_v42, %v4522_v63 }
 0x318   : > { %v6578_v41 = vpop.f32.mrf.mxu2  ;;  %v2156_v21 = vpop.f32.mrf.mxu0 }
 0x319   : > { %7050 = vst [vmem:[#allocation28_spill] sm:$0xff] %v6578_v41  ;;  %v2155_v9 = vadd.f32 %v2154_v28, %v2066_v45  ;;  %v2245_v31 = vpop.f32.mrf.mxu1  ;;  %v4531_v28 = vor.u32 %v5151_v15, %v4530_v16  ;;  %v4527_v45 = vor.u32 %v5148_v30, %v4524_v62  ;;  %v5152_v16 = vld [vmem:[%s5705_s25 + $0xa4] sm:$0xf]  ;;  %v4536_v15 = vld [vmem:[%s5705_s25 + $0xb4] sm:$0xf0] }
 0x31a   : > { %v4542_v62 = vld [vmem:[%s5705_s25 + $0xa8] sm:$0xf] }
 0x31b   : > { %v6582_v18 = vadd.f32 %v2243_v38, %v2155_v9 }
 0x31d   : > { %7051 = vst [vmem:[#allocation12_spill] sm:$0xff] %v6582_v18 }
 0x31e   : > { %v2067_v11 = vpop.f32.mrf.mxu3 }
 0x31f   : > { %v2068_v27 = vadd.f32 %v2067_v11, %v6375_v7  ;;  %v5155_v11 = vld [vmem:[%s5705_s25 + $0xb8] sm:$0xf0] }
 0x320   : > { %v6591_v55 = vpop.f32.mrf.mxu2  ;;  %v2159_v41 = vpop.f32.mrf.mxu0 }
 0x321   : > { %v2157_v38 = vadd.f32 %v2156_v21, %v2068_v27  ;;  %v2248_v9 = vpop.f32.mrf.mxu1  ;;  %v5156_v27 = vld [vmem:[%s5705_s25 + $0xc0] sm:$0xf0] }
 0x323   : > { %3218 = vmatmul.bf16.gmra.mxu3 %v4519_v47  ;;  %3307 = vmatmul.bf16.gmra.mxu0 %v4523_v33  ;;  %v6593_v18 = vadd.f32 %v2245_v31, %v2157_v38  ;;  %v4550_v31 = vld [vmem:[%s5705_s25 + $0xb0] sm:$0xf]  ;;  %v5153_v47 = vld [vmem:[%s5705_s25 + $0xac] sm:$0xf]  ;;  %v4544_v33 = vld [vmem:[%s5705_s25 + $0xbc] sm:$0xf0] }
 0x324   : > { %3396 = vmatmul.bf16.gmra.mxu1 %v4527_v45 }
 0x325   : > { %3485 = vmatmul.bf16.gmra.mxu2 %v4531_v28 }
 0x326   : > { %v2070_v7 = vpop.f32.mrf.mxu3 }
 0x327   : > { %v2071_v37 = vadd.f32 %v2070_v7, %v6378_v43  ;;  %v4539_v43 = vor.u32 %v5152_v16, %v4536_v15  ;;  %v4543_v7 = vor.u32 %v5155_v11, %v4542_v62 }
 0x328   : > { %v6596_v2 = vpop.f32.mrf.mxu2  ;;  %v2161_v63 = vpop.f32.mrf.mxu0 }
 0x329   : > { %7052 = vst [vmem:[#allocation29_spill] sm:$0xff] %v6596_v2  ;;  %v2160_v21 = vadd.f32 %v2159_v41, %v2071_v37  ;;  %v2250_v42 = vpop.f32.mrf.mxu1  ;;  %v4551_v41 = vor.u32 %v5156_v27, %v4550_v31  ;;  %v4547_v37 = vor.u32 %v5153_v47, %v4544_v33  ;;  %v5157_v31 = vld [vmem:[%s5705_s25 + $0xcc] sm:$0xf]  ;;  %v4556_v27 = vld [vmem:[%s5705_s25 + $0xdc] sm:$0xf0] }
 0x32a   : > { %v4562_v33 = vld [vmem:[%s5705_s25 + $0xd0] sm:$0xf] }
 0x32b   : > { %v6600_v30 = vadd.f32 %v2248_v9, %v2160_v21 }
 0x32d   : > { %7053 = vst [vmem:[#allocation30_spill] sm:$0xff] %v6600_v30 }
 0x32e   : > { %v2072_v28 = vpop.f32.mrf.mxu3 }
 0x32f   : > { %v2073_v45 = vadd.f32 %v2072_v28, %v6386_v54  ;;  %v5160_v28 = vld [vmem:[%s5705_s25 + $0xe0] sm:$0xf0] }
 0x330   : > { %v6609_v38 = vpop.f32.mrf.mxu2  ;;  %v2164_v2 = vpop.f32.mrf.mxu0 }
 0x331   : > { %v2162_v9 = vadd.f32 %v2161_v63, %v2073_v45  ;;  %v2253_v21 = vpop.f32.mrf.mxu1  ;;  %v5161_v45 = vld [vmem:[%s5705_s25 + $0xe8] sm:$0xf0] }
 0x333   : > { %3223 = vmatmul.bf16.gmra.mxu3 %v4539_v43  ;;  %3312 = vmatmul.bf16.gmra.mxu0 %v4543_v7  ;;  %v6611_v30 = vadd.f32 %v2250_v42, %v2162_v9  ;;  %v4570_v42 = vld [vmem:[%s5705_s25 + $0xd8] sm:$0xf]  ;;  %v5158_v43 = vld [vmem:[%s5705_s25 + $0xd4] sm:$0xf]  ;;  %v4564_v7 = vld [vmem:[%s5705_s25 + $0xe4] sm:$0xf0] }
 0x334   : > { %3401 = vmatmul.bf16.gmra.mxu1 %v4547_v37 }
 0x335   : > { %3490 = vmatmul.bf16.gmra.mxu2 %v4551_v41 }
 0x336   : > { %v2075_v54 = vpop.f32.mrf.mxu3 }
 0x337   : > { %v2076_v16 = vadd.f32 %v2075_v54, %v6391_v44  ;;  %v4559_v44 = vor.u32 %v5157_v31, %v4556_v27  ;;  %v4563_v54 = vor.u32 %v5160_v28, %v4562_v33 }
 0x338   : > { %v6614_v15 = vpop.f32.mrf.mxu2  ;;  %v2166_v62 = vpop.f32.mrf.mxu0 }
 0x339   : > { %7054 = vst [vmem:[#allocation13_spill] sm:$0xff] %v6614_v15  ;;  %v2165_v63 = vadd.f32 %v2164_v2, %v2076_v16  ;;  %v2255_v11 = vpop.f32.mrf.mxu1  ;;  %v4571_v2 = vor.u32 %v5161_v45, %v4570_v42  ;;  %v4567_v16 = vor.u32 %v5158_v43, %v4564_v7  ;;  %v5162_v42 = vld [vmem:[%s5705_s25 + $0xf4] sm:$0xf]  ;;  %v4576_v45 = vld [vmem:[%s5705_s25 + $0x104] sm:$0xf0] }
 0x33a   : > { %v4582_v7 = vld [vmem:[%s5705_s25 + $0xf8] sm:$0xf] }
 0x33b   : > { %v6618_v47 = vadd.f32 %v2253_v21, %v2165_v63 }
 0x33d   : > { %7055 = vst [vmem:[#allocation31_spill] sm:$0xff] %v6618_v47 }
 0x33e   : > { %v2077_v41 = vpop.f32.mrf.mxu3 }
 0x33f   : > { %v2078_v37 = vadd.f32 %v2077_v41, %v6397_v17  ;;  %v5165_v41 = vld [vmem:[%s5705_s25 + $0x108] sm:$0xf0] }
 0x340   : > { %v6627_v9 = vpop.f32.mrf.mxu2  ;;  %v2169_v15 = vpop.f32.mrf.mxu0 }
 0x341   : > { %v2167_v21 = vadd.f32 %v2166_v62, %v2078_v37  ;;  %v2258_v63 = vpop.f32.mrf.mxu1  ;;  %v5166_v37 = vld [vmem:[%s5705_s25 + $0x110] sm:$0xf0] }
 0x343   : > { %3228 = vmatmul.bf16.gmra.mxu3 %v4559_v44  ;;  %3317 = vmatmul.bf16.gmra.mxu0 %v4563_v54  ;;  %v6629_v47 = vadd.f32 %v2255_v11, %v2167_v21  ;;  %v4590_v11 = vld [vmem:[%s5705_s25 + $0x100] sm:$0xf]  ;;  %v5163_v44 = vld [vmem:[%s5705_s25 + $0xfc] sm:$0xf]  ;;  %v4584_v54 = vld [vmem:[%s5705_s25 + $0x10c] sm:$0xf0] }
 0x344   : > { %3406 = vmatmul.bf16.gmra.mxu1 %v4567_v16 }
 0x345   : > { %3495 = vmatmul.bf16.gmra.mxu2 %v4571_v2 }
 0x346   : > { %v2080_v17 = vpop.f32.mrf.mxu3 }
 0x347   : > { %v2081_v31 = vadd.f32 %v2080_v17, %v6400_v39  ;;  %v4579_v39 = vor.u32 %v5162_v42, %v4576_v45  ;;  %v4583_v17 = vor.u32 %v5165_v41, %v4582_v7 }
 0x348   : > { %v6632_v27 = vpop.f32.mrf.mxu2  ;;  %v2171_v33 = vpop.f32.mrf.mxu0 }
 0x349   : > { %7056 = vst [vmem:[#allocation32_spill] sm:$0xff] %v6632_v27  ;;  %v2170_v62 = vadd.f32 %v2169_v15, %v2081_v31  ;;  %v2260_v28 = vpop.f32.mrf.mxu1  ;;  %v4591_v15 = vor.u32 %v5166_v37, %v4590_v11  ;;  %v4587_v31 = vor.u32 %v5163_v44, %v4584_v54  ;;  %v5167_v11 = vld [vmem:[%s5705_s25 + $0x11c] sm:$0xf]  ;;  %v4596_v37 = vld [vmem:[%s5705_s25 + $0x12c] sm:$0xf0] }
 0x34a   : > { %v4602_v54 = vld [vmem:[%s5705_s25 + $0x120] sm:$0xf] }
 0x34b   : > { %v6636_v43 = vadd.f32 %v2258_v63, %v2170_v62 }
 0x34d   : > { %7057 = vst [vmem:[#allocation14_spill] sm:$0xff] %v6636_v43 }
 0x34e   : > { %v2082_v2 = vpop.f32.mrf.mxu3 }
 0x34f   : > { %v2083_v16 = vadd.f32 %v2082_v2, %v6408_v4  ;;  %v5170_v2 = vld [vmem:[%s5705_s25 + $0x130] sm:$0xf0] }
 0x350   : > { %v6645_v21 = vpop.f32.mrf.mxu2  ;;  %v2174_v27 = vpop.f32.mrf.mxu0 }
 0x351   : > { %v2172_v63 = vadd.f32 %v2171_v33, %v2083_v16  ;;  %v2263_v62 = vpop.f32.mrf.mxu1  ;;  %v5171_v16 = vld [vmem:[%s5705_s25 + $0x138] sm:$0xf0] }
 0x353   : > { %3233 = vmatmul.bf16.gmra.mxu3 %v4579_v39  ;;  %3322 = vmatmul.bf16.gmra.mxu0 %v4583_v17  ;;  %v6647_v43 = vadd.f32 %v2260_v28, %v2172_v63  ;;  %v4610_v28 = vld [vmem:[%s5705_s25 + $0x128] sm:$0xf]  ;;  %v5168_v39 = vld [vmem:[%s5705_s25 + $0x124] sm:$0xf]  ;;  %v4604_v17 = vld [vmem:[%s5705_s25 + $0x134] sm:$0xf0] }
 0x354   : > { %3411 = vmatmul.bf16.gmra.mxu1 %v4587_v31 }
 0x355   : > { %3500 = vmatmul.bf16.gmra.mxu2 %v4591_v15 }
 0x356   : > { %v2085_v4 = vpop.f32.mrf.mxu3 }
 0x357   : > { %v2086_v42 = vadd.f32 %v2085_v4, %v6413_v23  ;;  %v4599_v23 = vor.u32 %v5167_v11, %v4596_v37  ;;  %v4603_v4 = vor.u32 %v5170_v2, %v4602_v54 }
 0x358   : > { %v6650_v45 = vpop.f32.mrf.mxu2  ;;  %v2176_v7 = vpop.f32.mrf.mxu0 }
 0x359   : > { %7058 = vst [vmem:[#allocation33_spill] sm:$0xff] %v6650_v45  ;;  %v2175_v33 = vadd.f32 %v2174_v27, %v2086_v42  ;;  %v2265_v41 = vpop.f32.mrf.mxu1  ;;  %v4611_v27 = vor.u32 %v5171_v16, %v4610_v28  ;;  %v4607_v42 = vor.u32 %v5168_v39, %v4604_v17  ;;  %v5172_v28 = vld [vmem:[%s5705_s25 + $0x144] sm:$0xf]  ;;  %v4616_v16 = vld [vmem:[%s5705_s25 + $0x154] sm:$0xf0] }
 0x35a   : > { %v4622_v17 = vld [vmem:[%s5705_s25 + $0x148] sm:$0xf] }
 0x35b   : > { %v6654_v44 = vadd.f32 %v2263_v62, %v2175_v33 }
 0x35d   : > { %7059 = vst [vmem:[#allocation34_spill] sm:$0xff] %v6654_v44 }
 0x35e   : > { %v2087_v15 = vpop.f32.mrf.mxu3 }
 0x35f   : > { %v2088_v31 = vadd.f32 %v2087_v15, %v6419_v57  ;;  %v5175_v15 = vld [vmem:[%s5705_s25 + $0x158] sm:$0xf0] }
 0x360   : > { %v6663_v63 = vpop.f32.mrf.mxu2  ;;  %v2179_v45 = vpop.f32.mrf.mxu0 }
 0x361   : > { %v2177_v62 = vadd.f32 %v2176_v7, %v2088_v31  ;;  %v2268_v33 = vpop.f32.mrf.mxu1  ;;  %v5176_v31 = vld [vmem:[%s5705_s25 + $0x160] sm:$0xf0] }
 0x363   : > { %3238 = vmatmul.bf16.gmra.mxu3 %v4599_v23  ;;  %3327 = vmatmul.bf16.gmra.mxu0 %v4603_v4  ;;  %v6665_v44 = vadd.f32 %v2265_v41, %v2177_v62  ;;  %v4630_v41 = vld [vmem:[%s5705_s25 + $0x150] sm:$0xf]  ;;  %v5173_v23 = vld [vmem:[%s5705_s25 + $0x14c] sm:$0xf]  ;;  %v4624_v4 = vld [vmem:[%s5705_s25 + $0x15c] sm:$0xf0] }
 0x364   : > { %3416 = vmatmul.bf16.gmra.mxu1 %v4607_v42 }
 0x365   : > { %3505 = vmatmul.bf16.gmra.mxu2 %v4611_v27 }
 0x366   : > { %v2090_v57 = vpop.f32.mrf.mxu3 }
 0x367   : > { %v2091_v11 = vadd.f32 %v2090_v57, %v6422_v8  ;;  %v4619_v8 = vor.u32 %v5172_v28, %v4616_v16  ;;  %v4623_v57 = vor.u32 %v5175_v15, %v4622_v17 }
 0x368   : > { %v6668_v37 = vpop.f32.mrf.mxu2  ;;  %v2181_v54 = vpop.f32.mrf.mxu0 }
 0x369   : > { %7060 = vst [vmem:[#allocation37_spill] sm:$0xff] %v6668_v37  ;;  %v2180_v7 = vadd.f32 %v2179_v45, %v2091_v11  ;;  %v2270_v2 = vpop.f32.mrf.mxu1  ;;  %v4631_v45 = vor.u32 %v5176_v31, %v4630_v41  ;;  %v4627_v11 = vor.u32 %v5173_v23, %v4624_v4  ;;  %v5177_v41 = vld [vmem:[%s5705_s25 + $0x16c] sm:$0xf]  ;;  %v4636_v31 = vld [vmem:[%s5705_s25 + $0x17c] sm:$0xf0] }
 0x36a   : > { %v4642_v4 = vld [vmem:[%s5705_s25 + $0x170] sm:$0xf] }
 0x36b   : > { %v6672_v39 = vadd.f32 %v2268_v33, %v2180_v7 }
 0x36d   : > { %7061 = vst [vmem:[#allocation38_spill] sm:$0xff] %v6672_v39 }
 0x36e   : > { %v2092_v27 = vpop.f32.mrf.mxu3 }
 0x36f   : > { %v2093_v42 = vadd.f32 %v2092_v27, %v6430_v0  ;;  %v5180_v27 = vld [vmem:[%s5705_s25 + $0x180] sm:$0xf0] }
 0x370   : > { %v6681_v62 = vpop.f32.mrf.mxu2  ;;  %v2184_v37 = vpop.f32.mrf.mxu0 }
 0x371   : > { %v2182_v33 = vadd.f32 %v2181_v54, %v2093_v42  ;;  %v2273_v7 = vpop.f32.mrf.mxu1  ;;  %v5181_v42 = vld [vmem:[%s5705_s25 + $0x188] sm:$0xf0] }
 0x373   : > { %3243 = vmatmul.bf16.gmra.mxu3 %v4619_v8  ;;  %3332 = vmatmul.bf16.gmra.mxu0 %v4623_v57  ;;  %v6683_v39 = vadd.f32 %v2270_v2, %v2182_v33  ;;  %v4650_v2 = vld [vmem:[%s5705_s25 + $0x178] sm:$0xf]  ;;  %v5178_v8 = vld [vmem:[%s5705_s25 + $0x174] sm:$0xf]  ;;  %v4644_v57 = vld [vmem:[%s5705_s25 + $0x184] sm:$0xf0] }
 0x374   : > { %3421 = vmatmul.bf16.gmra.mxu1 %v4627_v11 }
 0x375   : > { %7062 = vst [vmem:[#allocation15_spill] sm:$0xff] %v6683_v39  ;;  %3510 = vmatmul.bf16.gmra.mxu2 %v4631_v45 }
 0x376   : > { %v2095_v0 = vpop.f32.mrf.mxu3 }
 0x377   : > { %v2096_v28 = vadd.f32 %v2095_v0, %v6433_v52  ;;  %v4639_v52 = vor.u32 %v5177_v41, %v4636_v31  ;;  %v4643_v0 = vor.u32 %v5180_v27, %v4642_v4 }
 0x378   : > { %v6686_v16 = vpop.f32.mrf.mxu2  ;;  %v2186_v17 = vpop.f32.mrf.mxu0 }
 0x379   : > { %7063 = vst [vmem:[#allocation35_spill] sm:$0xff] %v6686_v16  ;;  %v2185_v54 = vadd.f32 %v2184_v37, %v2096_v28  ;;  %v2275_v15 = vpop.f32.mrf.mxu1  ;;  %v4651_v37 = vor.u32 %v5181_v42, %v4650_v2  ;;  %v4647_v28 = vor.u32 %v5178_v8, %v4644_v57  ;;  %v5182_v2 = vld [vmem:[%s5705_s25 + $0x194] sm:$0xf]  ;;  %v4656_v42 = vld [vmem:[%s5705_s25 + $0x1a4] sm:$0xf0] }
 0x37a   : > { %v4662_v57 = vld [vmem:[%s5705_s25 + $0x198] sm:$0xf] }
 0x37b   : > { %v6690_v23 = vadd.f32 %v2273_v7, %v2185_v54 }
 0x37d   : > { %7064 = vst [vmem:[#allocation36_spill] sm:$0xff] %v6690_v23 }
 0x37e   : > { %v2097_v45 = vpop.f32.mrf.mxu3 }
 0x37f   : > { %v2098_v11 = vadd.f32 %v2097_v45, %v6441_v20  ;;  %v5185_v45 = vld [vmem:[%s5705_s25 + $0x1a8] sm:$0xf0] }
 0x380   : > { %v6699_v33 = vpop.f32.mrf.mxu2  ;;  %v2189_v16 = vpop.f32.mrf.mxu0 }
 0x381   : > { %7065 = vst [vmem:[#allocation16_spill] sm:$0xff] %v6699_v33  ;;  %v2187_v7 = vadd.f32 %v2186_v17, %v2098_v11  ;;  %v2278_v54 = vpop.f32.mrf.mxu1  ;;  %v5186_v11 = vld [vmem:[%s5705_s25 + $0x1b0] sm:$0xf0]  ;;  %v6735_v33 = vld [vmem:[%s6933_s2] ss:$0 sm:$0xff] }
 0x383   : > { %3248 = vmatmul.bf16.gmra.mxu3 %v4639_v52  ;;  %3337 = vmatmul.bf16.gmra.mxu0 %v4643_v0  ;;  %v6701_v23 = vadd.f32 %v2275_v15, %v2187_v7  ;;  %v4670_v15 = vld [vmem:[%s5705_s25 + $0x1a0] sm:$0xf]  ;;  %v5183_v52 = vld [vmem:[%s5705_s25 + $0x19c] sm:$0xf]  ;;  %v4664_v0 = vld [vmem:[%s5705_s25 + $0x1ac] sm:$0xf0] }
 0x384   : > { %3426 = vmatmul.bf16.gmra.mxu1 %v4647_v28 }
 0x385   : > { %7066 = vst [vmem:[#allocation39_spill] sm:$0xff] %v6701_v23  ;;  %3515 = vmatmul.bf16.gmra.mxu2 %v4651_v37 }
 0x386   : > { %v2100_v20 = vpop.f32.mrf.mxu3 }
 0x387   : > { %v2101_v41 = vadd.f32 %v2100_v20, %v6444_v49  ;;  %v4659_v49 = vor.u32 %v5182_v2, %v4656_v42  ;;  %v4663_v20 = vor.u32 %v5185_v45, %v4662_v57 }
 0x388   : > { %v6704_v31 = vpop.f32.mrf.mxu2  ;;  %v2191_v4 = vpop.f32.mrf.mxu0 }
 0x389   : > { %7067 = vst [vmem:[#allocation40_spill] sm:$0xff] %v6704_v31  ;;  %v2190_v17 = vadd.f32 %v2189_v16, %v2101_v41  ;;  %v2280_v27 = vpop.f32.mrf.mxu1  ;;  %v4671_v16 = vor.u32 %v5186_v11, %v4670_v15  ;;  %v4667_v41 = vor.u32 %v5183_v52, %v4664_v0  ;;  %v5187_v11 = vld [vmem:[%s5705_s25 + $0x1bc] sm:$0xf]  ;;  %v4676_v52 = vld [vmem:[%s5705_s25 + $0x1cc] sm:$0xf0] }
 0x38a   : > { %v4682_v0 = vld [vmem:[%s5705_s25 + $0x1c0] sm:$0xf] }
 0x38b   : > { %v6708_v8 = vadd.f32 %v2278_v54, %v2190_v17 }
 0x38d   : > { %7068 = vst [vmem:[#allocation43_spill] sm:$0xff] %v6708_v8 }
 0x38e   : > { %v2102_v37 = vpop.f32.mrf.mxu3 }
 0x38f   : > { %v2103_v28 = vadd.f32 %v2102_v37, %v6452_v35  ;;  %v5190_v37 = vld [vmem:[%s5705_s25 + $0x1d0] sm:$0xf0] }
 0x390   : > { %v6717_v7 = vpop.f32.mrf.mxu2  ;;  %v3303_v31 = vpop.f32.mrf.mxu0 }
 0x391   : > { %7069 = vst [vmem:[#allocation44_spill] sm:$0xff] %v6717_v7  ;;  %v2192_v54 = vadd.f32 %v2191_v4, %v2103_v28  ;;  %v3392_v17 = vpop.f32.mrf.mxu1  ;;  %v4690_v28 = vld [vmem:[%s5705_s25 + $0x1c8] sm:$0xf]  ;;  %v4679_v7 = vor.u32 %v5187_v11, %v4676_v52 }
 0x393   : > { %3253 = vmatmul.bf16.gmra.mxu3 %v4659_v49  ;;  %3342 = vmatmul.bf16.gmra.mxu0 %v4663_v20  ;;  %v6719_v8 = vadd.f32 %v2280_v27, %v2192_v54  ;;  %v5191_v49 = vld [vmem:[%s5705_s25 + $0x1d8] sm:$0xf0]  ;;  %v5188_v27 = vld [vmem:[%s5705_s25 + $0x1c4] sm:$0xf]  ;;  %v4684_v20 = vld [vmem:[%s5705_s25 + $0x1d4] sm:$0xf0] }
 0x394   : > { %3431 = vmatmul.bf16.gmra.mxu1 %v4667_v41 }
 0x395   : > { %7070 = vst [vmem:[#allocation17_spill] sm:$0xff] %v6719_v8  ;;  %3520 = vmatmul.bf16.gmra.mxu2 %v4671_v16 }
 0x396   : > { %v3214_v35 = vpop.f32.mrf.mxu3 }
 0x397   : > { %v3215_v2 = vadd.f32 %v3214_v35, %v6455_v14  ;;  %v4683_v14 = vor.u32 %v5190_v37, %v4682_v0 }
 0x398   : > { %v3481_v42 = vpop.f32.mrf.mxu2  ;;  %v3305_v57 = vpop.f32.mrf.mxu0 }
 0x399   : > { %v3304_v45 = vadd.f32 %v3303_v31, %v3215_v2  ;;  %v3394_v4 = vpop.f32.mrf.mxu1  ;;  %v4691_v31 = vor.u32 %v5191_v49, %v4690_v28  ;;  %v4687_v2 = vor.u32 %v5188_v27, %v4684_v20  ;;  %v5192_v28 = vld [vmem:[%s5705_s25 + $0x1e4] sm:$0xf]  ;;  %v4702_v49 = vld [vmem:[%s5705_s25 + $0x1e8] sm:$0xf]  ;;  %v5195_v27 = vld [vmem:[%s5705_s25 + $0x1f8] sm:$0xf0] }
 0x39a   : > { %v4710_v20 = vld [vmem:[%s5705_s25 + $0x1f0] sm:$0xf] }
 0x39b   : > { %v3393_v15 = vadd.f32 %v3392_v17, %v3304_v45 }
 0x39d   : > { %v3482_v16 = vadd.f32 %v3481_v42, %v3393_v15 }
 0x39e   : > { %v3216_v54 = vpop.f32.mrf.mxu3 }
 0x39f   : > { %v3217_v41 = vadd.f32 %v3216_v54, %v6462_v3  ;;  %v3561_v23 = vadd.f32 %v3482_v16, %v6457_v29  ;;  %v5196_v54 = vld [vmem:[%s5705_s25 + $0x200] sm:$0xf0]  ;;  %v5193_v16 = vld [vmem:[%s5705_s25 + $0x1ec] sm:$0xf] }
 0x3a0   : > { %v3483_v8 = vpop.f32.mrf.mxu2  ;;  %v3308_v35 = vpop.f32.mrf.mxu0 }
 0x3a1   : > { %v3306_v17 = vadd.f32 %v3305_v57, %v3217_v41  ;;  %v3397_v45 = vpop.f32.mrf.mxu1  ;;  %v3597_v57 = vadd.f32 %v6735_v33, %v3561_v23  ;;  %v4696_v23 = vld [vmem:[%s5705_s25 + $0x1f4] sm:$0xf0] }
 0x3a3   : > { %v3395_v39 = vadd.f32 %v3394_v4, %v3306_v17  ;;  %3258 = vmatmul.bf16.gmra.mxu3 %v4679_v7  ;;  %3347 = vmatmul.bf16.gmra.mxu0 %v4683_v14  ;;  %v4703_v17 = vor.u32 %v5195_v27, %v4702_v49 }
 0x3a4   : > { %3436 = vmatmul.bf16.gmra.mxu1 %v4687_v2  ;;  %v4699_v2 = vor.u32 %v5192_v28, %v4696_v23 }
 0x3a5   : > { %3525 = vmatmul.bf16.gmra.mxu2 %v4691_v31  ;;  %v3484_v3 = vadd.f32 %v3483_v8, %v3395_v39  ;;  %v3629_v8 = vmax.f32 %v3597_v57, 0.0 }
 0x3a6   : > { %v3219_v42 = vpop.f32.mrf.mxu3 }
 0x3a7   : > { %v3562_v29 = vadd.f32 %v3484_v3, %v6466_v19  ;;  %v3220_v15 = vadd.f32 %v3219_v42, %v6470_v53  ;;  %v4704_v53 = vld [vmem:[%s5705_s25 + $0x1fc] sm:$0xf0]  ;;  %v4711_v3 = vor.u32 %v5196_v54, %v4710_v20  ;;  %v5197_v20 = vld [vmem:[%s5705_s25 + $0x20c] sm:$0xf]  ;;  %v4722_v54 = vld [vmem:[%s5705_s25 + $0x210] sm:$0xf] }
 0x3a8   : > { %v3486_v7 = vpop.f32.mrf.mxu2  ;;  %v3310_v4 = vpop.f32.mrf.mxu0  ;;  %v4707_v42 = vor.u32 %v5193_v16, %v4704_v53  ;;  %v5200_v16 = vld [vmem:[%s5705_s25 + $0x220] sm:$0xf0] }
 0x3a9   : > { %v3598_v11 = vadd.f32 %v6735_v33, %v3562_v29  ;;  %v3309_v52 = vadd.f32 %v3308_v35, %v3220_v15  ;;  %v3399_v39 = vpop.f32.mrf.mxu1 }
 0x3ab   : > { %v3630_v0 = vmax.f32 %v3598_v11, 0.0  ;;  %v3398_v37 = vadd.f32 %v3397_v45, %v3309_v52 }
 0x3ad   : > { %v5266_v19 = vpack.c.bf16 %v3630_v0, %v3629_v8  ;;  %v3487_v14 = vadd.f32 %v3486_v7, %v3398_v37 }
 0x3ae   : > { %v3221_v41 = vpop.f32.mrf.mxu3 }
 0x3af   : > { %5267 = vst [vmem:[%s6750_s20] sm:$0xff] %v5266_v19   ;;  %v3222_v35 = vadd.f32 %v3221_v41, %v6477_v61  ;;  %v3563_v15 = vadd.f32 %v3487_v14, %v6472_v36  ;;  %v4716_v19 = vld [vmem:[%s5705_s25 + $0x21c] sm:$0xf0]  ;;  %v5201_v41 = vld [vmem:[%s5705_s25 + $0x228] sm:$0xf0]  ;;  %v4724_v14 = vld [vmem:[%s5705_s25 + $0x224] sm:$0xf0] }
 0x3b0   : > { %v3488_v31 = vpop.f32.mrf.mxu2  ;;  %v3313_v45 = vpop.f32.mrf.mxu0 }
 0x3b1   : > { %v3311_v57 = vadd.f32 %v3310_v4, %v3222_v35  ;;  %v3402_v29 = vpop.f32.mrf.mxu1  ;;  %v3599_v52 = vadd.f32 %v6735_v33, %v3563_v15 }
 0x3b3   : > { %v3400_v11 = vadd.f32 %v3399_v39, %v3311_v57  ;;  %3263 = vmatmul.bf16.gmra.mxu3 %v4699_v2  ;;  %3352 = vmatmul.bf16.gmra.mxu0 %v4703_v17  ;;  %v3631_v23 = vmax.f32 %v3599_v52, 0.0 }
 0x3b4   : > { %3441 = vmatmul.bf16.gmra.mxu1 %v4707_v42 }
 0x3b5   : > { %3530 = vmatmul.bf16.gmra.mxu2 %v4711_v3  ;;  %v3489_v7 = vadd.f32 %v3488_v31, %v3400_v11  ;;  %v4723_v3 = vor.u32 %v5200_v16, %v4722_v54  ;;  %v4742_v54 = vld [vmem:[%s5705_s25 + $0x238] sm:$0xf]  ;;  %v5205_v16 = vld [vmem:[%s5705_s25 + $0x248] sm:$0xf0] }
 0x3b6   : > { %v3224_v61 = vpop.f32.mrf.mxu3 }
 0x3b7   : > { %v3564_v8 = vadd.f32 %v3489_v7, %v6481_v46  ;;  %v3225_v4 = vadd.f32 %v3224_v61, %v6485_v1  ;;  %v4730_v46 = vld [vmem:[%s5705_s25 + $0x218] sm:$0xf]  ;;  %v5198_v1 = vld [vmem:[%s5705_s25 + $0x214] sm:$0xf] }
 0x3b8   : > { %v3491_v36 = vpop.f32.mrf.mxu2  ;;  %v3315_v39 = vpop.f32.mrf.mxu0  ;;  %v4731_v57 = vor.u32 %v5201_v41, %v4730_v46  ;;  %v4744_v41 = vld [vmem:[%s5705_s25 + $0x24c] sm:$0xf0] }
 0x3b9   : > { %v3600_v0 = vadd.f32 %v6735_v33, %v3564_v8  ;;  %v3314_v37 = vadd.f32 %v3313_v45, %v3225_v4  ;;  %v3404_v28 = vpop.f32.mrf.mxu1  ;;  %v4719_v45 = vor.u32 %v5197_v20, %v4716_v19  ;;  %v5202_v20 = vld [vmem:[%s5705_s25 + $0x234] sm:$0xf]  ;;  %v4736_v19 = vld [vmem:[%s5705_s25 + $0x244] sm:$0xf0] }
 0x3bb   : > { %v3632_v49 = vmax.f32 %v3600_v0, 0.0  ;;  %v3403_v27 = vadd.f32 %v3402_v29, %v3314_v37  ;;  %v4727_v29 = vor.u32 %v5198_v1, %v4724_v14 }
 0x3bd   : > { %v5271_v53 = vpack.c.bf16 %v3632_v49, %v3631_v23  ;;  %v3492_v31 = vadd.f32 %v3491_v36, %v3403_v27 }
 0x3be   : > { %v3226_v35 = vpop.f32.mrf.mxu3 }
 0x3bf   : > { %5343 = vst [vmem:[%s6750_s20 + $0x8] sm:$0xff] %v5271_v53   ;;  %v3227_v2 = vadd.f32 %v3226_v35, %v6492_v51  ;;  %v3565_v7 = vadd.f32 %v3492_v31, %v6487_v40  ;;  %v5206_v53 = vld [vmem:[%s5705_s25 + $0x250] sm:$0xf0] }
 0x3c0   : > { %v3493_v17 = vpop.f32.mrf.mxu2  ;;  %v3318_v42 = vpop.f32.mrf.mxu0 }
 0x3c1   : > { %v3316_v15 = vadd.f32 %v3315_v39, %v3227_v2  ;;  %v3407_v11 = vpop.f32.mrf.mxu1  ;;  %v3601_v8 = vadd.f32 %v6735_v33, %v3565_v7  ;;  %v4739_v2 = vor.u32 %v5202_v20, %v4736_v19  ;;  %v5211_v19 = vld [vmem:[%s5705_s25 + $0x278] sm:$0xf0] }
 0x3c3   : > { %v3405_v61 = vadd.f32 %v3404_v28, %v3316_v15  ;;  %3268 = vmatmul.bf16.gmra.mxu3 %v4719_v45  ;;  %3357 = vmatmul.bf16.gmra.mxu0 %v4723_v3  ;;  %v3633_v23 = vmax.f32 %v3601_v8, 0.0 }
 0x3c4   : > { %3446 = vmatmul.bf16.gmra.mxu1 %v4727_v29 }
 0x3c5   : > { %3535 = vmatmul.bf16.gmra.mxu2 %v4731_v57  ;;  %v3494_v52 = vadd.f32 %v3493_v17, %v3405_v61  ;;  %v4743_v17 = vor.u32 %v5205_v16, %v4742_v54  ;;  %v4764_v54 = vld [vmem:[%s5705_s25 + $0x274] sm:$0xf0] }
 0x3c6   : > { %v3229_v51 = vpop.f32.mrf.mxu3 }
 0x3c7   : > { %v3566_v4 = vadd.f32 %v3494_v52, %v6496_v48  ;;  %v3230_v36 = vadd.f32 %v3229_v51, %v6500_v22  ;;  %v4750_v48 = vld [vmem:[%s5705_s25 + $0x240] sm:$0xf]  ;;  %v5203_v22 = vld [vmem:[%s5705_s25 + $0x23c] sm:$0xf] }
 0x3c8   : > { %v3496_v40 = vpop.f32.mrf.mxu2  ;;  %v3320_v39 = vpop.f32.mrf.mxu0  ;;  %v4751_v3 = vor.u32 %v5206_v53, %v4750_v48 }
 0x3c9   : > { %v3602_v0 = vadd.f32 %v6735_v33, %v3566_v4  ;;  %v3319_v37 = vadd.f32 %v3318_v42, %v3230_v36  ;;  %v3409_v28 = vpop.f32.mrf.mxu1  ;;  %v4747_v42 = vor.u32 %v5203_v22, %v4744_v41 }
 0x3cb   : > { %v3634_v49 = vmax.f32 %v3602_v0, 0.0  ;;  %v3408_v27 = vadd.f32 %v3407_v11, %v3319_v37 }
 0x3cd   : > { %v5276_v46 = vpack.c.bf16 %v3634_v49, %v3633_v23  ;;  %v3497_v14 = vadd.f32 %v3496_v40, %v3408_v27  ;;  %v4756_v23 = vld [vmem:[%s5705_s25 + $0x26c] sm:$0xf0]  ;;  %v4762_v49 = vld [vmem:[%s5705_s25 + $0x260] sm:$0xf]  ;;  %v5210_v27 = vld [vmem:[%s5705_s25 + $0x270] sm:$0xf0] }
 0x3ce   : > { %v3231_v1 = vpop.f32.mrf.mxu3  ;;  %v4763_v41 = vor.u32 %v5210_v27, %v4762_v49 }
 0x3cf   : > { %5344 = vst [vmem:[%s6750_s20 + $0x10] sm:$0xff] %v5276_v46   ;;  %v3232_v35 = vadd.f32 %v3231_v1, %v6507_v10  ;;  %v3567_v15 = vadd.f32 %v3497_v14, %v6502_v6 }
 0x3d0   : > { %v3498_v31 = vpop.f32.mrf.mxu2  ;;  %v3323_v45 = vpop.f32.mrf.mxu0 }
 0x3d1   : > { %v3321_v57 = vadd.f32 %v3320_v39, %v3232_v35  ;;  %v3412_v29 = vpop.f32.mrf.mxu1  ;;  %v3603_v61 = vadd.f32 %v6735_v33, %v3567_v15 }
 0x3d3   : > { %v3410_v11 = vadd.f32 %v3409_v28, %v3321_v57  ;;  %3273 = vmatmul.bf16.gmra.mxu3 %v4739_v2  ;;  %3362 = vmatmul.bf16.gmra.mxu0 %v4743_v17  ;;  %v3635_v39 = vmax.f32 %v3603_v61, 0.0  ;;  %v5207_v28 = vld [vmem:[%s5705_s25 + $0x25c] sm:$0xf] }
 0x3d4   : > { %3451 = vmatmul.bf16.gmra.mxu1 %v4747_v42  ;;  %v4759_v22 = vor.u32 %v5207_v28, %v4756_v23 }
 0x3d5   : > { %3540 = vmatmul.bf16.gmra.mxu2 %v4751_v3  ;;  %v3499_v7 = vadd.f32 %v3498_v31, %v3410_v11 }
 0x3d6   : > { %v3234_v10 = vpop.f32.mrf.mxu3 }
 0x3d7   : > { %v3568_v52 = vadd.f32 %v3499_v7, %v6511_v59  ;;  %v3235_v51 = vadd.f32 %v3234_v10, %v6515_v58  ;;  %v4770_v59 = vld [vmem:[%s5705_s25 + $0x268] sm:$0xf]  ;;  %v5208_v58 = vld [vmem:[%s5705_s25 + $0x264] sm:$0xf] }
 0x3d8   : > { %v3501_v6 = vpop.f32.mrf.mxu2  ;;  %v3325_v8 = vpop.f32.mrf.mxu0  ;;  %v4771_v14 = vor.u32 %v5211_v19, %v4770_v59  ;;  %v4767_v35 = vor.u32 %v5208_v58, %v4764_v54 }
 0x3d9   : > { %v3604_v4 = vadd.f32 %v6735_v33, %v3568_v52  ;;  %v3324_v36 = vadd.f32 %v3323_v45, %v3235_v51  ;;  %v3414_v40 = vpop.f32.mrf.mxu1 }
 0x3db   : > { %v3636_v0 = vmax.f32 %v3604_v4, 0.0  ;;  %v3413_v37 = vadd.f32 %v3412_v29, %v3324_v36  ;;  %v4782_v4 = vld [vmem:[%s5705_s25 + $0x288] sm:$0xf]  ;;  %v5215_v36 = vld [vmem:[%s5705_s25 + $0x298] sm:$0xf0] }
 0x3dc   : > { %v4783_v59 = vor.u32 %v5215_v36, %v4782_v4 }
 0x3dd   : > { %v5281_v20 = vpack.c.bf16 %v3636_v0, %v3635_v39  ;;  %v3502_v48 = vadd.f32 %v3501_v6, %v3413_v37  ;;  %v5212_v6 = vld [vmem:[%s5705_s25 + $0x284] sm:$0xf]  ;;  %v4784_v0 = vld [vmem:[%s5705_s25 + $0x29c] sm:$0xf0] }
 0x3de   : > { %v3236_v16 = vpop.f32.mrf.mxu3  ;;  %v5216_v39 = vld [vmem:[%s5705_s25 + $0x2a0] sm:$0xf0] }
 0x3df   : > { %5345 = vst [vmem:[%s6750_s20 + $0x18] sm:$0xff] %v5281_v20   ;;  %v3237_v46 = vadd.f32 %v3236_v16, %v6522_v26  ;;  %v3569_v17 = vadd.f32 %v3502_v48, %v6517_v13 }
 0x3e0   : > { %v3503_v53 = vpop.f32.mrf.mxu2  ;;  %v3328_v1 = vpop.f32.mrf.mxu0 }
 0x3e1   : > { %v3326_v31 = vadd.f32 %v3325_v8, %v3237_v46  ;;  %v3417_v2 = vpop.f32.mrf.mxu1  ;;  %v3605_v42 = vadd.f32 %v6735_v33, %v3569_v17  ;;  %v4776_v8 = vld [vmem:[%s5705_s25 + $0x294] sm:$0xf0] }
 0x3e2   : > { %v4779_v27 = vor.u32 %v5212_v6, %v4776_v8 }
 0x3e3   : > { %v3415_v45 = vadd.f32 %v3414_v40, %v3326_v31  ;;  %3278 = vmatmul.bf16.gmra.mxu3 %v4759_v22  ;;  %3367 = vmatmul.bf16.gmra.mxu0 %v4763_v41  ;;  %v3637_v61 = vmax.f32 %v3605_v42, 0.0  ;;  %v4796_v42 = vld [vmem:[%s5705_s25 + $0x2bc] sm:$0xf0] }
 0x3e4   : > { %3456 = vmatmul.bf16.gmra.mxu1 %v4767_v35 }
 0x3e5   : > { %3545 = vmatmul.bf16.gmra.mxu2 %v4771_v14  ;;  %v3504_v3 = vadd.f32 %v3503_v53, %v3415_v45 }
 0x3e6   : > { %v3239_v26 = vpop.f32.mrf.mxu3 }
 0x3e7   : > { %v3570_v57 = vadd.f32 %v3504_v3, %v6526_v5  ;;  %v3240_v29 = vadd.f32 %v3239_v26, %v6530_v50  ;;  %v4790_v5 = vld [vmem:[%s5705_s25 + $0x290] sm:$0xf]  ;;  %v5213_v50 = vld [vmem:[%s5705_s25 + $0x28c] sm:$0xf] }
 0x3e8   : > { %v3506_v13 = vpop.f32.mrf.mxu2  ;;  %v3330_v15 = vpop.f32.mrf.mxu0  ;;  %v4791_v19 = vor.u32 %v5216_v39, %v4790_v5  ;;  %v4787_v58 = vor.u32 %v5213_v50, %v4784_v0  ;;  %v5217_v26 = vld [vmem:[%s5705_s25 + $0x2ac] sm:$0xf]  ;;  %v7071_v39 = vld [vmem:[#allocation25_spill] sm:$0xff] }
 0x3e9   : > { %v3606_v11 = vadd.f32 %v6735_v33, %v3570_v57  ;;  %v3329_v7 = vadd.f32 %v3328_v1, %v3240_v29  ;;  %v3419_v10 = vpop.f32.mrf.mxu1  ;;  %v4802_v57 = vld [vmem:[%s5705_s25 + $0x2b0] sm:$0xf]  ;;  %v5220_v29 = vld [vmem:[%s5705_s25 + $0x2c0] sm:$0xf0] }
 0x3ea   : > { %v4803_v6 = vor.u32 %v5220_v29, %v4802_v57  ;;  %v7075_v29 = vld [vmem:[#allocation28_spill] sm:$0xff] }
 0x3eb   : > { %v3638_v52 = vmax.f32 %v3606_v11, 0.0  ;;  %v3418_v51 = vadd.f32 %v3417_v2, %v3329_v7  ;;  %v4804_v11 = vld [vmem:[%s5705_s25 + $0x2c4] sm:$0xf0] }
 0x3ed   : > { %v5286_v40 = vpack.c.bf16 %v3638_v52, %v3637_v61  ;;  %v3507_v28 = vadd.f32 %v3506_v13, %v3418_v51  ;;  %v4799_v51 = vor.u32 %v5217_v26, %v4796_v42 }
 0x3ee   : > { %v3241_v37 = vpop.f32.mrf.mxu3 }
 0x3ef   : > { %5346 = vst [vmem:[%s6750_s20 + $0x20] sm:$0xff] %v5286_v40   ;;  %v3242_v23 = vadd.f32 %v3241_v37, %v6537_v34  ;;  %v3571_v48 = vadd.f32 %v3507_v28, %v6532_v60 }
 0x3f0   : > { %v3508_v49 = vpop.f32.mrf.mxu2  ;;  %v3333_v20 = vpop.f32.mrf.mxu0 }
 0x3f1   : > { %v3331_v54 = vadd.f32 %v3330_v15, %v3242_v23  ;;  %v3422_v16 = vpop.f32.mrf.mxu1  ;;  %v3607_v22 = vadd.f32 %v6735_v33, %v3571_v48  ;;  %v5221_v15 = vld [vmem:[%s5705_s25 + $0x2c8] sm:$0xf0] }
 0x3f2   : > { %v7072_v23 = vld [vmem:[#allocation26_spill] sm:$0xff] }
 0x3f3   : > { %v3420_v46 = vadd.f32 %v3419_v10, %v3331_v54  ;;  %3283 = vmatmul.bf16.gmra.mxu3 %v4779_v27  ;;  %3372 = vmatmul.bf16.gmra.mxu0 %v4783_v59  ;;  %v3639_v17 = vmax.f32 %v3607_v22, 0.0  ;;  %v7073_v27 = vld [vmem:[#allocation11_spill] sm:$0xff] }
 0x3f4   : > { %3461 = vmatmul.bf16.gmra.mxu1 %v4787_v58 }
 0x3f5   : > { %3550 = vmatmul.bf16.gmra.mxu2 %v4791_v19  ;;  %v3509_v53 = vadd.f32 %v3508_v49, %v3420_v46 }
 0x3f6   : > { %v3244_v34 = vpop.f32.mrf.mxu3 }
 0x3f7   : > { %v3572_v41 = vadd.f32 %v3509_v53, %v6541_v56  ;;  %v3245_v1 = vadd.f32 %v3244_v34, %v6545_v12  ;;  %v4810_v56 = vld [vmem:[%s5705_s25 + $0x2b8] sm:$0xf]  ;;  %v5218_v12 = vld [vmem:[%s5705_s25 + $0x2b4] sm:$0xf] }
 0x3f8   : > { %v3511_v60 = vpop.f32.mrf.mxu2  ;;  %v3335_v14 = vpop.f32.mrf.mxu0  ;;  %v4811_v4 = vor.u32 %v5221_v15, %v4810_v56  ;;  %v4807_v36 = vor.u32 %v5218_v12, %v4804_v11 }
 0x3f9   : > { %v3608_v35 = vadd.f32 %v6735_v33, %v3572_v41  ;;  %v3334_v31 = vadd.f32 %v3333_v20, %v3245_v1  ;;  %v3424_v2 = vpop.f32.mrf.mxu1 }
 0x3fb   : > { %v3640_v45 = vmax.f32 %v3608_v35, 0.0  ;;  %v3423_v3 = vadd.f32 %v3422_v16, %v3334_v31 }
 0x3fd   : > { %v5291_v13 = vpack.c.bf16 %v3640_v45, %v3639_v17  ;;  %v3512_v10 = vadd.f32 %v3511_v60, %v3423_v3 }
 0x3fe   : > { %v3246_v7 = vpop.f32.mrf.mxu3 }
 0x3ff   : > { %5347 = vst [vmem:[%s6750_s20 + $0x28] sm:$0xff] %v5291_v13   ;;  %v3247_v61 = vadd.f32 %v3246_v7, %v6552_v24  ;;  %v3573_v50 = vadd.f32 %v3512_v10, %v7071_v39 }
 0x400   : > { %v3513_v52 = vpop.f32.mrf.mxu2  ;;  %v3338_v8 = vpop.f32.mrf.mxu0 }
 0x401   : > { %v3336_v5 = vadd.f32 %v3335_v14, %v3247_v61  ;;  %v3427_v40 = vpop.f32.mrf.mxu1  ;;  %v3609_v24 = vadd.f32 %v6735_v33, %v3573_v50 }
 0x403   : > { %v3425_v0 = vadd.f32 %v3424_v2, %v3336_v5  ;;  %3288 = vmatmul.bf16.gmra.mxu3 %v4799_v51  ;;  %3377 = vmatmul.bf16.gmra.mxu0 %v4803_v6  ;;  %v3641_v48 = vmax.f32 %v3609_v24, 0.0  ;;  %v7074_v2 = vld [vmem:[#allocation27_spill] sm:$0xff] }
 0x404   : > { %3466 = vmatmul.bf16.gmra.mxu1 %v4807_v36 }
 0x405   : > { %3555 = vmatmul.bf16.gmra.mxu2 %v4811_v4  ;;  %v3514_v37 = vadd.f32 %v3513_v52, %v3425_v0 }
 0x406   : > { %v3249_v28 = vpop.f32.mrf.mxu3 }
 0x407   : > { %v3574_v49 = vadd.f32 %v3514_v37, %v7072_v23  ;;  %v3250_v59 = vadd.f32 %v3249_v28, %v7073_v27  ;;  %v7077_v23 = vld [vmem:[#allocation29_spill] sm:$0xff] }
 0x408   : > { %v3516_v20 = vpop.f32.mrf.mxu2  ;;  %v3340_v19 = vpop.f32.mrf.mxu0 }
 0x409   : > { %v3610_v58 = vadd.f32 %v6735_v33, %v3574_v49  ;;  %v3339_v54 = vadd.f32 %v3338_v8, %v3250_v59  ;;  %v3429_v16 = vpop.f32.mrf.mxu1 }
 0x40b   : > { %v3642_v46 = vmax.f32 %v3610_v58, 0.0  ;;  %v3428_v53 = vadd.f32 %v3427_v40, %v3339_v54  ;;  %v7076_v40 = vld [vmem:[#allocation12_spill] sm:$0xff] }
 0x40d   : > { %v5296_v34 = vpack.c.bf16 %v3642_v46, %v3641_v48  ;;  %v3517_v41 = vadd.f32 %v3516_v20, %v3428_v53 }
 0x40e   : > { %v3251_v22 = vpop.f32.mrf.mxu3 }
 0x40f   : > { %5348 = vst [vmem:[%s6750_s20 + $0x30] sm:$0xff] %v5296_v34   ;;  %v3252_v1 = vadd.f32 %v3251_v22, %v6573_v25  ;;  %v3575_v17 = vadd.f32 %v3517_v41, %v7074_v2 }
 0x410   : > { %v3518_v60 = vpop.f32.mrf.mxu2  ;;  %v3343_v14 = vpop.f32.mrf.mxu0 }
 0x411   : > { %v3341_v35 = vadd.f32 %v3340_v19, %v3252_v1  ;;  %v3432_v31 = vpop.f32.mrf.mxu1  ;;  %v3611_v42 = vadd.f32 %v6735_v33, %v3575_v17 }
 0x413   : > { %v3430_v45 = vadd.f32 %v3429_v16, %v3341_v35  ;;  %v3643_v7 = vmax.f32 %v3611_v42, 0.0 }
 0x415   : > { %v3519_v3 = vadd.f32 %v3518_v60, %v3430_v45  ;;  %v7078_v60 = vld [vmem:[#allocation30_spill] sm:$0xff] }
 0x416   : > { %v3254_v26 = vpop.f32.mrf.mxu3 }
 0x417   : > { %v3576_v57 = vadd.f32 %v3519_v3, %v6575_v32  ;;  %v3255_v56 = vadd.f32 %v3254_v26, %v7075_v29  ;;  %v7079_v3 = vld [vmem:[#allocation13_spill] sm:$0xff] }
 0x418   : > { %v3521_v13 = vpop.f32.mrf.mxu2  ;;  %v3345_v15 = vpop.f32.mrf.mxu0 }
 0x419   : > { %v3612_v25 = vadd.f32 %v6735_v33, %v3576_v57  ;;  %v3344_v12 = vadd.f32 %v3343_v14, %v3255_v56  ;;  %v3434_v11 = vpop.f32.mrf.mxu1 }
 0x41b   : > { %v3644_v10 = vmax.f32 %v3612_v25, 0.0  ;;  %v3433_v61 = vadd.f32 %v3432_v31, %v3344_v12 }
 0x41d   : > { %v5301_v52 = vpack.c.bf16 %v3644_v10, %v3643_v7  ;;  %v3522_v6 = vadd.f32 %v3521_v13, %v3433_v61 }
 0x41e   : > { %v3256_v51 = vpop.f32.mrf.mxu3 }
 0x41f   : > { %5349 = vst [vmem:[%s6750_s20 + $0x38] sm:$0xff] %v5301_v52   ;;  %v3257_v8 = vadd.f32 %v3256_v51, %v6591_v55  ;;  %v3577_v39 = vadd.f32 %v3522_v6, %v7076_v40  ;;  %v7080_v6 = vld [vmem:[#allocation31_spill] sm:$0xff] }
 0x420   : > { %v3523_v4 = vpop.f32.mrf.mxu2  ;;  %v3348_v36 = vpop.f32.mrf.mxu0 }
 0x421   : > { %v3346_v32 = vadd.f32 %v3345_v15, %v3257_v8  ;;  %v3437_v5 = vpop.f32.mrf.mxu1  ;;  %v3613_v28 = vadd.f32 %v6735_v33, %v3577_v39  ;;  %v7081_v39 = vld [vmem:[#allocation32_spill] sm:$0xff] }
 0x423   : > { %v3435_v50 = vadd.f32 %v3434_v11, %v3346_v32  ;;  %v3645_v58 = vmax.f32 %v3613_v28, 0.0 }
 0x425   : > { %v3524_v0 = vadd.f32 %v3523_v4, %v3435_v50 }
 0x426   : > { %v3259_v37 = vpop.f32.mrf.mxu3 }
 0x427   : > { %v3578_v24 = vadd.f32 %v3524_v0, %v6593_v18  ;;  %v3260_v49 = vadd.f32 %v3259_v37, %v7077_v23 }
 0x428   : > { %v3526_v27 = vpop.f32.mrf.mxu2  ;;  %v3350_v59 = vpop.f32.mrf.mxu0 }
 0x429   : > { %v3614_v55 = vadd.f32 %v6735_v33, %v3578_v24  ;;  %v3349_v20 = vadd.f32 %v3348_v36, %v3260_v49  ;;  %v3439_v19 = vpop.f32.mrf.mxu1 }
 0x42b   : > { %v3646_v54 = vmax.f32 %v3614_v55, 0.0  ;;  %v3438_v16 = vadd.f32 %v3437_v5, %v3349_v20 }
 0x42d   : > { %v5306_v48 = vpack.c.bf16 %v3646_v54, %v3645_v58  ;;  %v3527_v53 = vadd.f32 %v3526_v27, %v3438_v16 }
 0x42e   : > { %v3261_v46 = vpop.f32.mrf.mxu3 }
 0x42f   : > { %5350 = vst [vmem:[%s6750_s20 + $0x40] sm:$0xff] %v5306_v48   ;;  %v3262_v34 = vadd.f32 %v3261_v46, %v6609_v38  ;;  %v3579_v14 = vadd.f32 %v3527_v53, %v7078_v60  ;;  %v7082_v48 = vld [vmem:[#allocation14_spill] sm:$0xff] }
 0x430   : > { %v3528_v22 = vpop.f32.mrf.mxu2  ;;  %v3353_v41 = vpop.f32.mrf.mxu0 }
 0x431   : > { %v3351_v18 = vadd.f32 %v3350_v59, %v3262_v34  ;;  %v3442_v1 = vpop.f32.mrf.mxu1  ;;  %v3615_v17 = vadd.f32 %v6735_v33, %v3579_v14 }
 0x433   : > { %v3440_v35 = vadd.f32 %v3439_v19, %v3351_v18  ;;  %v3647_v13 = vmax.f32 %v3615_v17, 0.0 }
 0x435   : > { %v3529_v31 = vadd.f32 %v3528_v22, %v3440_v35 }
 0x436   : > { %v3264_v2 = vpop.f32.mrf.mxu3 }
 0x437   : > { %v3580_v45 = vadd.f32 %v3529_v31, %v6611_v30  ;;  %v3265_v26 = vadd.f32 %v3264_v2, %v7079_v3 }
 0x438   : > { %v3531_v42 = vpop.f32.mrf.mxu2  ;;  %v3355_v57 = vpop.f32.mrf.mxu0 }
 0x439   : > { %v3616_v38 = vadd.f32 %v6735_v33, %v3580_v45  ;;  %v3354_v29 = vadd.f32 %v3353_v41, %v3265_v26  ;;  %v3444_v56 = vpop.f32.mrf.mxu1 }
 0x43b   : > { %v3648_v15 = vmax.f32 %v3616_v38, 0.0  ;;  %v3443_v25 = vadd.f32 %v3442_v1, %v3354_v29  ;;  %v7083_v1 = vld [vmem:[#allocation33_spill] sm:$0xff] }
 0x43d   : > { %v5311_v12 = vpack.c.bf16 %v3648_v15, %v3647_v13  ;;  %v3532_v7 = vadd.f32 %v3531_v42, %v3443_v25  ;;  %v7084_v15 = vld [vmem:[#allocation34_spill] sm:$0xff] }
 0x43e   : > { %v3266_v11 = vpop.f32.mrf.mxu3 }
 0x43f   : > { %5351 = vst [vmem:[%s6750_s20 + $0x48] sm:$0xff] %v5311_v12   ;;  %v3267_v10 = vadd.f32 %v3266_v11, %v6627_v9  ;;  %v3581_v8 = vadd.f32 %v3532_v7, %v7080_v6 }
 0x440   : > { %v3533_v61 = vpop.f32.mrf.mxu2  ;;  %v3358_v52 = vpop.f32.mrf.mxu0 }
 0x441   : > { %v3356_v30 = vadd.f32 %v3355_v57, %v3267_v10  ;;  %v3447_v51 = vpop.f32.mrf.mxu1  ;;  %v3617_v5 = vadd.f32 %v6735_v33, %v3581_v8 }
 0x443   : > { %v3445_v4 = vadd.f32 %v3444_v56, %v3356_v30  ;;  %v3649_v23 = vmax.f32 %v3617_v5, 0.0 }
 0x445   : > { %v3534_v36 = vadd.f32 %v3533_v61, %v3445_v4 }
 0x446   : > { %v3269_v32 = vpop.f32.mrf.mxu3 }
 0x447   : > { %v3582_v40 = vadd.f32 %v3534_v36, %v6629_v47  ;;  %v3270_v50 = vadd.f32 %v3269_v32, %v7081_v39 }
 0x448   : > { %v3536_v0 = vpop.f32.mrf.mxu2  ;;  %v3360_v37 = vpop.f32.mrf.mxu0 }
 0x449   : > { %v3618_v9 = vadd.f32 %v6735_v33, %v3582_v40  ;;  %v3359_v28 = vadd.f32 %v3358_v52, %v3270_v50  ;;  %v3449_v24 = vpop.f32.mrf.mxu1  ;;  %v7085_v52 = vld [vmem:[#allocation37_spill] sm:$0xff] }
 0x44b   : > { %v3650_v49 = vmax.f32 %v3618_v9, 0.0  ;;  %v3448_v27 = vadd.f32 %v3447_v51, %v3359_v28  ;;  %v7086_v28 = vld [vmem:[#allocation38_spill] sm:$0xff] }
 0x44d   : > { %v5316_v59 = vpack.c.bf16 %v3650_v49, %v3649_v23  ;;  %v3537_v20 = vadd.f32 %v3536_v0, %v3448_v27 }
 0x44e   : > { %v3271_v55 = vpop.f32.mrf.mxu3 }
 0x44f   : > { %5352 = vst [vmem:[%s6750_s20 + $0x50] sm:$0xff] %v5316_v59   ;;  %v3272_v19 = vadd.f32 %v3271_v55, %v6645_v21  ;;  %v3583_v46 = vadd.f32 %v3537_v20, %v7082_v48  ;;  %v7087_v20 = vld [vmem:[#allocation15_spill] sm:$0xff] }
 0x450   : > { %v3538_v58 = vpop.f32.mrf.mxu2  ;;  %v3363_v54 = vpop.f32.mrf.mxu0 }
 0x451   : > { %v3361_v47 = vadd.f32 %v3360_v37, %v3272_v19  ;;  %v3452_v16 = vpop.f32.mrf.mxu1  ;;  %v3619_v41 = vadd.f32 %v6735_v33, %v3583_v46 }
 0x453   : > { %v3450_v53 = vadd.f32 %v3449_v24, %v3361_v47  ;;  %v3651_v17 = vmax.f32 %v3619_v41, 0.0 }
 0x455   : > { %v3539_v34 = vadd.f32 %v3538_v58, %v3450_v53  ;;  %v7088_v58 = vld [vmem:[#allocation35_spill] sm:$0xff] }
 0x456   : > { %v3274_v22 = vpop.f32.mrf.mxu3 }
 0x457   : > { %v3584_v18 = vadd.f32 %v3539_v34, %v6647_v43  ;;  %v3275_v60 = vadd.f32 %v3274_v22, %v7083_v1 }
 0x458   : > { %v3541_v14 = vpop.f32.mrf.mxu2  ;;  %v3365_v35 = vpop.f32.mrf.mxu0 }
 0x459   : > { %v3620_v21 = vadd.f32 %v6735_v33, %v3584_v18  ;;  %v3364_v31 = vadd.f32 %v3363_v54, %v3275_v60  ;;  %v3454_v2 = vpop.f32.mrf.mxu1  ;;  %v7089_v60 = vld [vmem:[#allocation16_spill] sm:$0xff] }
 0x45b   : > { %v3652_v45 = vmax.f32 %v3620_v21, 0.0  ;;  %v3453_v3 = vadd.f32 %v3452_v16, %v3364_v31  ;;  %v7090_v31 = vld [vmem:[#allocation36_spill] sm:$0xff] }
 0x45d   : > { %v5321_v26 = vpack.c.bf16 %v3652_v45, %v3651_v17  ;;  %v3542_v57 = vadd.f32 %v3541_v14, %v3453_v3 }
 0x45e   : > { %v3276_v42 = vpop.f32.mrf.mxu3 }
 0x45f   : > { %5353 = vst [vmem:[%s6750_s20 + $0x58] sm:$0xff] %v5321_v26   ;;  %v3277_v38 = vadd.f32 %v3276_v42, %v6663_v63  ;;  %v3585_v25 = vadd.f32 %v3542_v57, %v7084_v15  ;;  %v7091_v57 = vld [vmem:[#allocation39_spill] sm:$0xff] }
 0x460   : > { %v3543_v29 = vpop.f32.mrf.mxu2  ;;  %v3368_v56 = vpop.f32.mrf.mxu0 }
 0x461   : > { %v3366_v43 = vadd.f32 %v3365_v35, %v3277_v38  ;;  %v3457_v13 = vpop.f32.mrf.mxu1  ;;  %v3621_v10 = vadd.f32 %v6735_v33, %v3585_v25 }
 0x463   : > { %v3455_v12 = vadd.f32 %v3454_v2, %v3366_v43  ;;  %v3653_v36 = vmax.f32 %v3621_v10, 0.0 }
 0x465   : > { %v3544_v11 = vadd.f32 %v3543_v29, %v3455_v12  ;;  %v7092_v29 = vld [vmem:[#allocation40_spill] sm:$0xff] }
 0x466   : > { %v3279_v7 = vpop.f32.mrf.mxu3 }
 0x467   : > { %v3586_v61 = vadd.f32 %v3544_v11, %v6665_v44  ;;  %v3280_v30 = vadd.f32 %v3279_v7, %v7085_v52 }
 0x468   : > { %v3546_v51 = vpop.f32.mrf.mxu2  ;;  %v3370_v6 = vpop.f32.mrf.mxu0 }
 0x469   : > { %v3622_v63 = vadd.f32 %v6735_v33, %v3586_v61  ;;  %v3369_v8 = vadd.f32 %v3368_v56, %v3280_v30  ;;  %v3459_v4 = vpop.f32.mrf.mxu1  ;;  %v7093_v30 = vld [vmem:[#allocation44_spill] sm:$0xff] }
 0x46b   : > { %v3654_v32 = vmax.f32 %v3622_v63, 0.0  ;;  %v3458_v5 = vadd.f32 %v3457_v13, %v3369_v8 }
 0x46d   : > { %v5326_v40 = vpack.c.bf16 %v3654_v32, %v3653_v36  ;;  %v3547_v50 = vadd.f32 %v3546_v51, %v3458_v5 }
 0x46e   : > { %v3281_v39 = vpop.f32.mrf.mxu3 }
 0x46f   : > { %5354 = vst [vmem:[%s6750_s20 + $0x60] sm:$0xff] %v5326_v40   ;;  %v3282_v0 = vadd.f32 %v3281_v39, %v6681_v62  ;;  %v3587_v24 = vadd.f32 %v3547_v50, %v7086_v28  ;;  %v7095_v50 = vld [vmem:[#allocation17_spill] sm:$0xff] }
 0x470   : > { %v3548_v37 = vpop.f32.mrf.mxu2  ;;  %v3373_v44 = vpop.f32.mrf.mxu0 }
 0x471   : > { %v3371_v9 = vadd.f32 %v3370_v6, %v3282_v0  ;;  %v3462_v49 = vpop.f32.mrf.mxu1  ;;  %v3623_v55 = vadd.f32 %v6735_v33, %v3587_v24 }
 0x473   : > { %v3460_v23 = vadd.f32 %v3459_v4, %v3371_v9  ;;  %v3655_v48 = vmax.f32 %v3623_v55, 0.0  ;;  %v7094_v4 = vld [vmem:[#allocation43_spill] sm:$0xff] }
 0x475   : > { %v3549_v27 = vadd.f32 %v3548_v37, %v3460_v23 }
 0x476   : > { %v3284_v59 = vpop.f32.mrf.mxu3 }
 0x477   : > { %v3588_v19 = vadd.f32 %v3549_v27, %v7087_v20  ;;  %v3285_v54 = vadd.f32 %v3284_v59, %v7088_v58 }
 0x478   : > { %v3551_v47 = vpop.f32.mrf.mxu2  ;;  %v3375_v34 = vpop.f32.mrf.mxu0 }
 0x479   : > { %v3624_v16 = vadd.f32 %v6735_v33, %v3588_v19  ;;  %v3374_v62 = vadd.f32 %v3373_v44, %v3285_v54  ;;  %v3464_v41 = vpop.f32.mrf.mxu1 }
 0x47b   : > { %v3656_v46 = vmax.f32 %v3624_v16, 0.0  ;;  %v3463_v53 = vadd.f32 %v3462_v49, %v3374_v62 }
 0x47d   : > { %v5331_v22 = vpack.c.bf16 %v3656_v46, %v3655_v48  ;;  %v3552_v1 = vadd.f32 %v3551_v47, %v3463_v53 }
 0x47e   : > { %v3286_v18 = vpop.f32.mrf.mxu3 }
 0x47f   : > { %5355 = vst [vmem:[%s6750_s20 + $0x68] sm:$0xff] %v5331_v22   ;;  %v3287_v14 = vadd.f32 %v3286_v18, %v7089_v60  ;;  %v3589_v2 = vadd.f32 %v3552_v1, %v7090_v31 }
 0x480   : > { %v3553_v35 = vpop.f32.mrf.mxu2  ;;  %v3378_v3 = vpop.f32.mrf.mxu0 }
 0x481   : > { %v3376_v21 = vadd.f32 %v3375_v34, %v3287_v14  ;;  %v3625_v42 = vadd.f32 %v6735_v33, %v3589_v2  ;;  %v3467_v43 = vpop.f32.mrf.mxu1 }
 0x483   : > { %v3465_v17 = vadd.f32 %v3464_v41, %v3376_v21  ;;  %v3657_v12 = vmax.f32 %v3625_v42, 0.0 }
 0x485   : > { %v3554_v45 = vadd.f32 %v3553_v35, %v3465_v17 }
 0x486   : > { %v3289_v26 = vpop.f32.mrf.mxu3 }
 0x487   : > { %v3590_v38 = vadd.f32 %v3554_v45, %v7091_v57  ;;  %v3290_v56 = vadd.f32 %v3289_v26, %v7092_v29 }
 0x488   : > { %v3556_v25 = vpop.f32.mrf.mxu2  ;;  %v3380_v6 = vpop.f32.mrf.mxu0 }
 0x489   : > { %v3626_v13 = vadd.f32 %v6735_v33, %v3590_v38  ;;  %v3379_v15 = vadd.f32 %v3378_v3, %v3290_v56  ;;  %v3469_v8 = vpop.f32.mrf.mxu1 }
 0x48b   : > { %v3658_v11 = vmax.f32 %v3626_v13, 0.0  ;;  %v3468_v7 = vadd.f32 %v3467_v43, %v3379_v15 }
 0x48d   : > { %v5336_v10 = vpack.c.bf16 %v3658_v11, %v3657_v12  ;;  %v3557_v52 = vadd.f32 %v3556_v25, %v3468_v7 }
 0x48e   : > { %v3291_v61 = vpop.f32.mrf.mxu3 }
 0x48f   : > { %5356 = vst [vmem:[%s6750_s20 + $0x70] sm:$0xff] %v5336_v10   ;;  %v3292_v51 = vadd.f32 %v3291_v61, %v7093_v30  ;;  %v3591_v36 = vadd.f32 %v3557_v52, %v7094_v4 }
 0x490   : > { %v3558_v5 = vpop.f32.mrf.mxu2 }
 0x491   : > { %v3381_v63 = vadd.f32 %v3380_v6, %v3292_v51  ;;  %v3627_v39 = vadd.f32 %v6735_v33, %v3591_v36 }
 0x493   : > { %v3470_v32 = vadd.f32 %v3469_v8, %v3381_v63  ;;  %v3659_v9 = vmax.f32 %v3627_v39, 0.0 }
 0x495   : > { %v3559_v40 = vadd.f32 %v3558_v5, %v3470_v32 }
 0x497   : > { %v3592_v0 = vadd.f32 %v3559_v40, %v7095_v50 }
 0x499   : > { %v3628_v37 = vadd.f32 %v6735_v33, %v3592_v0 }
 0x49b   : > { %v3660_v44 = vmax.f32 %v3628_v37, 0.0 }
 0x49d   : > { %v5341_v28 = vpack.c.bf16 %v3660_v44, %v3659_v9 }
 0x49f   : > { %5357 = vst [vmem:[%s6750_s20 + $0x78] sm:$0xff] %v5341_v28  }
 0x4a0   : > { %5536 = shalt.err (!%p5533_p10)
}
 0x4a1   : > { %s5586_s10 = smov 64   ;;  %s5587_s18 = smov 4  }
 0x4a2   : > { %5391 = dma.vmem_to_hbm [thread:$0]  (%p5675_p7), %s3739_s29, 2048, %s3741_s30, %s3726_s16, %s5586_s10, %s5586_s10, %s5587_s18  }
 0x4a3 PF: > { %s3755_s23 = sand.u32 1, %s5567_s12   ;;  %p7096_p12 = scmp.ge.s32.totalorder %s5579_s15, 2 }
 0x4a4   : > { %s3756_s17 = scalar_lea.sflag [#allocation4], %s3755_s23 }
 0x4a5   : > { %p5402_p13 = pnand %p7096_p12, %p5643_p6 }
 0x4a7   : > { %p5403_p0 = pneg %p5402_p13 }
 0x4a9   : > { %5562 = dma.done.wait (%p5403_p0), %s3756_s17, 2048  }
 0x4aa   : > { %5564 = vsyncadd (%p5403_p0), %s3756_s17, 4294965248  ;;  %p17_p3 = scmp.ge.s32.totalorder %s5661_s26, 4   ;;  %s7097_s12 = smov %s5571_s13 }
 0x4ab   : > { %s7098_s13 = smov %s5575_s14  ;;  %s7099_s14 = smov %s5671_s4 }
 0x4ac   : > { %s7100_s15 = smov %s5661_s26  ;;  %19 = sbr.rel (!%p17_p3) target bundleno = 6 (0x6), region = 83 }
 0x4b1   :  { %3762 = vsyncpa [#allocation3], 1 }
 0x4b2   :  { %3764 = vsyncpa [#allocation3 + $0x1], 1 }
 0x4b3   :  { %3765 = vsyncpa [#allocation6], 1 }
 0x4b4   :  { %3766 = vsyncpa [#allocation4], 1 }
 0x4b5   :  { %3768 = vsyncpa [#allocation4 + $0x1], 1 }

</bundles_post_ra>
